<compile_context>
chip_gen: v7x
topology: tpu7x:2x2x1
jax: 0.10.0
libtpu: 0.0.40
codegen_flags: <defaults>
</compile_context>

<pallas_src>
import jax
import jax.numpy as jnp
from jax import lax
from jax.experimental import pallas as pl
from jax.experimental.pallas import tpu as pltpu

# ------------- config (mirrors SAGLearner argparse defaults, shrunk) ---------
WAY = 4                 # num_classes (the `way` ctor arg)
NHID = 32               # args.nhid (110 in the module; shrunk for a small demo)
POOL_RATIO = 0.5        # args.pooling_ratio
NUM_FEATURES = 1        # args.num_features
B_GRAPHS = 4            # graphs in the batch
NODES_PER_GRAPH = 16    # demo: contiguous, equal-sized graphs (PyG batching order)
N = B_GRAPHS * NODES_PER_GRAPH
OUT_ROWS, OUT_COLS = 8, 128     # lane-dense padded output block (log-probs in corner)


# --------------------------- fused Pallas kernel ------------------------------
def sagnet_fused_kernel(A_ref, x_ref, gidc_ref, gidr_ref, W_ref, PW_ref, bias_ref,
                        out_ref, rmax_ref, rmean_ref):
    f32 = jnp.float32
    FMIN = jnp.finfo(jnp.float32).min       # max-pool sentinel (dtype-safe)
    NEG = jnp.float32(-1e30)                # "dropped" marker for score row

    A = A_ref[...]                          # [N,N] adjacency (rows of dropped nodes zeroed)
    x = x_ref[...]                          # [N,H] node features (feature in col 0)
    gid_c = gidc_ref[...]                   # [N,1] graph id of node i
    gid_r = gidr_ref[...]                   # [1,N] graph id of node j

    ri = lax.broadcasted_iota(jnp.int32, (N, 1), 0)   # node index as a column
    ci = lax.broadcasted_iota(jnp.int32, (1, N), 1)   # node index as a row

    keep = jnp.ones((N, 1), f32)            # nodes still alive entering the layer

    rmax_ref[...] = jnp.zeros((B_GRAPHS, NHID), f32)
    rmean_ref[...] = jnp.zeros((B_GRAPHS, NHID), f32)

    for l in range(3):   # static unroll: 3 GCN+SAGPool layers
        # ---- symmetric GCN normalization without materializing Anorm ----------
        # deg_i = sum_j A_ij * keep_j + keep_i  (self-loop on kept nodes)
        deg = jnp.dot(A, keep, preferred_element_type=f32) + keep            # [N,1]
        dinv = jnp.where(deg > 0.0, lax.rsqrt(jnp.maximum(deg, 1e-12)), 0.0)  # [N,1]
        self_scale = keep * dinv * dinv                                      # [N,1]

        # ---- conv_l + relu:  D^-1/2 (A + diag(keep)) D^-1/2 (x W) + b ----------
        xw = jnp.dot(x, W_ref[l], preferred_element_type=f32)                # [N,H]
        x = jnp.maximum(
            dinv * jnp.dot(A, dinv * xw, preferred_element_type=f32)
            + self_scale * xw + bias_ref[l:l + 1, :], 0.0)

        # ---- SAGPool score layer: GCNConv(nhid, 1) on the NEW x ----------------
        sw = jnp.dot(x, PW_ref[:, l:l + 1], preferred_element_type=f32)      # [N,1]
        score = (dinv * jnp.dot(A, dinv * sw, preferred_element_type=f32)
                 + self_scale * sw + bias_ref[3:4, l:l + 1])                 # [N,1]

        # ---- in-kernel per-graph top-k via comparison rank ---------------------
        # score of node j as a row; dropped competitors marked with NEG so they
        # never count as "higher" and double as the kept-row mask.
        score_kept = jnp.where(keep > 0.5, score, NEG)                       # [N,1]
        skr = jnp.sum(jnp.where(ri == ci, score_kept, 0.0),
                      axis=0, keepdims=True)                                 # [1,N] bit-exact copy
        valid = (gid_r == gid_c) & (skr > 0.5 * NEG)     # same graph AND competitor kept
        higher = (skr > score) | ((skr == score) & (ci < ri))   # stable index tie-break
        rank = jnp.sum(jnp.where(valid & higher, 1.0, 0.0), axis=1, keepdims=True)
        n_node = jnp.sum(jnp.where(valid, 1.0, 0.0), axis=1, keepdims=True)
        new_keep = jnp.where(
            (rank < jnp.ceil(POOL_RATIO * n_node)) & (keep > 0.5), 1.0, 0.0)  # [N,1]

        # ---- gating fused with keep mask (tanh -> EUP slot) --------------------
        x = x * jnp.tanh(score) * new_keep

        # ---- filter_adj: only row-mask; dropped columns are neutralized by
        #      deg = A @ keep and by the zeroed x rows of dropped nodes ----------
        A = A * new_keep

        # ---- readout: per-graph masked max / mean pool, accumulated in scratch --
        for b in range(B_GRAPHS):
            s = b * NODES_PER_GRAPH
            xb = x[s:s + NODES_PER_GRAPH, :]                                 # [NPG,H]
            kb = new_keep[s:s + NODES_PER_GRAPH, :]                          # [NPG,1]
            cnt = jnp.sum(kb, axis=0, keepdims=True)                         # [1,1]
            gmax = jnp.max(jnp.where(kb > 0.5, xb, FMIN), axis=0, keepdims=True)
            gmax = jnp.where(cnt > 0.5, gmax, 0.0)                           # empty-graph guard
            gsum = jnp.sum(xb, axis=0, keepdims=True)                        # dropped rows are 0
            gmean = gsum * pl.reciprocal(jnp.maximum(cnt, 1.0), approx=True)
            rmax_ref[b:b + 1, :] = rmax_ref[b:b + 1, :] + gmax
            rmean_ref[b:b + 1, :] = rmean_ref[b:b + 1, :] + gmean

        keep = new_keep

    # ---- MLP head: relu(lin1) -> [dropout=identity in eval] -> relu(lin2) ->
    #      log_softmax(lin3).  lin1 weight is pre-split into max/mean halves so the
    #      [max, mean] concat never happens; lin2/lin3 weights are zero-padded.
    h = (jnp.dot(rmax_ref[...], W_ref[3], preferred_element_type=jnp.float32)
         + jnp.dot(rmean_ref[...], W_ref[4], preferred_element_type=jnp.float32)
         + bias_ref[4:5, :])
    h = jnp.maximum(h, 0.0)
    h = jnp.maximum(
        jnp.dot(h, W_ref[5], preferred_element_type=jnp.float32) + bias_ref[5:6, :], 0.0)
    logits = (jnp.dot(h, W_ref[6], preferred_element_type=jnp.float32)
              + bias_ref[6:7, :])[:, :WAY]                                   # [B, WAY]
    m = jnp.max(logits, axis=-1, keepdims=True)
    z = logits - m
    lse = jnp.log(jnp.sum(jnp.exp(z), axis=-1, keepdims=True))
    logp = z - lse                                                           # [B, WAY]

    # lane-dense padded output block; log-probs live in the top-left corner
    out_ref[...] = jnp.zeros((OUT_ROWS, OUT_COLS), jnp.float32)
    out_ref[0:B_GRAPHS, 0:WAY] = logp


# ------------------------------- JAX glue -------------------------------------
def pack_params(p):
    """Pack 23 tiny parameter tensors into 3 arrays (fewer DMA descriptors)."""
    H = NHID
    conv1_pad = jnp.zeros((H, H), jnp.float32).at[:NUM_FEATURES, :].set(p["conv1_w"])
    lin2_pad = jnp.zeros((H, H), jnp.float32).at[:, :H // 2].set(p["lin2_w"])
    lin3_pad = jnp.zeros((H, H), jnp.float32).at[:H // 2, :WAY].set(p["lin3_w"])
    W = jnp.stack([conv1_pad, p["conv2_w"], p["conv3_w"],
                   p["lin1_w"][:H, :], p["lin1_w"][H:, :],
                   lin2_pad, lin3_pad], axis=0)                  # [7,H,H]
    PW = jnp.zeros((H, 4), jnp.float32)
    for l in range(3):
        PW = PW.at[:, l].set(p[f"pool{l + 1}_w"][:, 0])          # [H,4]
    BIAS = jnp.zeros((8, H), jnp.float32)
    BIAS = BIAS.at[0, :].set(p["conv1_b"])
    BIAS = BIAS.at[1, :].set(p["conv2_b"])
    BIAS = BIAS.at[2, :].set(p["conv3_b"])
    BIAS = BIAS.at[3, 0].set(p["pool1_b"])
    BIAS = BIAS.at[3, 1].set(p["pool2_b"])
    BIAS = BIAS.at[3, 2].set(p["pool3_b"])
    BIAS = BIAS.at[4, :].set(p["lin1_b"])
    BIAS = BIAS.at[5, :H // 2].set(p["lin2_b"])
    BIAS = BIAS.at[6, :WAY].set(p["lin3_b"])
    return W, PW, BIAS


def sagnet_forward(params, x0, A, batch_ids):
    """One fused pallas_call for the full SAGNet forward (eval path)."""
    W, PW, BIAS = pack_params(params)
    gid_col = batch_ids.astype(jnp.float32).reshape(N, 1)
    gid_row = batch_ids.astype(jnp.float32).reshape(1, N)
    args = (A, x0, gid_col, gid_row, W, PW, BIAS)
    out_pad = pl.pallas_call(
        sagnet_fused_kernel,
        out_shape=jax.ShapeDtypeStruct((OUT_ROWS, OUT_COLS), jnp.float32),
        grid=(1,),
        in_specs=[pl.BlockSpec(a.shape, lambda i, nd=a.ndim: (0,) * nd) for a in args],
        out_specs=pl.BlockSpec((OUT_ROWS, OUT_COLS), lambda i: (0, 0)),
        scratch_shapes=[pltpu.VMEM((B_GRAPHS, NHID), jnp.float32),   # max readout acc
                        pltpu.VMEM((B_GRAPHS, NHID), jnp.float32)],  # mean readout acc
        # Single fused block; with many graphs per batch one would add a leading
        # "parallel" graph-block grid axis (2x on v7x's two TensorCores) and
        # node-block tiling of the dense adjacency to respect v7x's 64 MiB VMEM.
        compiler_params=pltpu.CompilerParams(dimension_semantics=("arbitrary",)),
    )(*args)
    return out_pad[:B_GRAPHS, :WAY]


def remap_labels(y):
    """zeta: labels remapped by order of first appearance (as in the module)."""
    # TODO(synk): data-dependent label remapping stays in plain JAX glue.
    sz = y.shape[0]
    idx = jnp.arange(sz)
    eq = (y[None, :] == y[:, None])
    fo = jnp.min(jnp.where(eq, idx[None, :], sz), axis=1)     # first occurrence of y[i]
    is_first = (fo == idx)
    zeta = jnp.sum((is_first[None, :] & (idx[None, :] < fo[:, None])).astype(jnp.int32),
                   axis=1)
    return zeta


@jax.jit
def sag_learner_forward(params, x0, A, batch_ids, y):
    """Mirrors SAGLearner.forward (eval path): returns (out, pred, loss, correct)."""
    out = sagnet_forward(params, x0, A, batch_ids)            # log-probs [B, WAY]
    pred = jnp.argmax(out, axis=1)
    zeta = remap_labels(y)
    loss = -jnp.mean(out[jnp.arange(B_GRAPHS), zeta])         # F.nll_loss (mean)
    correct = jnp.mean((pred == zeta).astype(jnp.float32))
    return out, pred, loss, correct


# ------------------------------ parameter init --------------------------------
def glorot(key, shape):
    fan_in, fan_out = shape[0], shape[1]
    limit = jnp.sqrt(6.0 / (fan_in + fan_out))
    return jax.random.uniform(key, shape, jnp.float32, -limit, limit)


def init_params(key):
    ks = jax.random.split(key, 12)
    p = {}
    p["conv1_w"] = glorot(ks[0], (NUM_FEATURES, NHID))        # true (1, nhid) weight
    p["conv1_b"] = jnp.zeros((NHID,), jnp.float32)
    p["conv2_w"] = glorot(ks[1], (NHID, NHID))
    p["conv2_b"] = jnp.zeros((NHID,), jnp.float32)
    p["conv3_w"] = glorot(ks[2], (NHID, NHID))
    p["conv3_b"] = jnp.zeros((NHID,), jnp.float32)
    for l, k in zip((1, 2, 3), (ks[3], ks[4], ks[5])):
        p[f"pool{l}_w"] = glorot(k, (NHID, 1))
        p[f"pool{l}_b"] = jnp.float32(0.0)
    p["lin1_w"] = glorot(ks[6], (2 * NHID, NHID))
    p["lin1_b"] = jax.random.uniform(ks[9], (NHID,), jnp.float32, -0.05, 0.05)
    p["lin2_w"] = glorot(ks[7], (NHID, NHID // 2))
    p["lin2_b"] = jax.random.uniform(ks[10], (NHID // 2,), jnp.float32, -0.05, 0.05)
    p["lin3_w"] = glorot(ks[8], (NHID // 2, WAY))
    p["lin3_b"] = jax.random.uniform(ks[11], (WAY,), jnp.float32, -0.05, 0.05)
    return p


# ----------------------------------- main --------------------------------------
if __name__ == "__main__":
    key = jax.random.PRNGKey(0)
    k_par, k_adj, k_x = jax.random.split(key, 3)

    params = init_params(k_par)

    # Synthetic batch of B_GRAPHS graphs: block-diagonal dense adjacency (0/1,
    # undirected, no self-loops), 1-channel node features, per-graph labels.
    A = jnp.zeros((N, N), jnp.float32)
    for g in range(B_GRAPHS):
        kg = jax.random.fold_in(k_adj, g)
        blk = (jax.random.uniform(kg, (NODES_PER_GRAPH, NODES_PER_GRAPH)) < 0.3
               ).astype(jnp.float32)
        blk = jnp.maximum(blk, blk.T) * (1.0 - jnp.eye(NODES_PER_GRAPH))
        s = g * NODES_PER_GRAPH
        A = A.at[s:s + NODES_PER_GRAPH, s:s + NODES_PER_GRAPH].set(blk)

    x_raw = jax.random.normal(k_x, (N, NUM_FEATURES), jnp.float32)      # data.x
    x0 = jnp.zeros((N, NHID), jnp.float32).at[:, :NUM_FEATURES].set(x_raw)
    batch_ids = jnp.repeat(jnp.arange(B_GRAPHS, dtype=jnp.int32), NODES_PER_GRAPH)
    y = jnp.array([2, 0, 2, 1], dtype=jnp.int32)                        # data.y

    out, pred, loss, correct = sag_learner_forward(params, x0, A, batch_ids, y)
    jax.block_until_ready((out, pred, loss, correct))
    print("KERNEL_OK")
</pallas_src>

<mosaic_0001>
module attributes {stable_mosaic.version = 11 : i64} {
  func.func @sagnet_fused_kernel(%arg0: i32, %arg1: memref<64x64xf32, #tpu.memory_space<vmem>>, %arg2: memref<64x32xf32, #tpu.memory_space<vmem>>, %arg3: memref<64x1xf32, #tpu.memory_space<vmem>>, %arg4: memref<1x64xf32, #tpu.memory_space<vmem>>, %arg5: memref<7x32x32xf32, #tpu.memory_space<vmem>>, %arg6: memref<32x4xf32, #tpu.memory_space<vmem>>, %arg7: memref<8x32xf32, #tpu.memory_space<vmem>>, %arg8: memref<8x128xf32, #tpu.memory_space<vmem>>, %arg9: memref<4x32xf32, #tpu.memory_space<vmem>>, %arg10: memref<4x32xf32, #tpu.memory_space<vmem>>) attributes {dimension_semantics = [#tpu.dimension_semantics<arbitrary>], iteration_bounds = array<i64: 1>, scalar_prefetch = 0 : i64, scratch_operands = 2 : i64, tpu.core_type = #tpu.core_type<tc>, window_params = [{pipeline_mode = #tpu.pipeline_mode<synchronous>, transform_indices = @transform_0, window_bounds = array<i64: 64, 64>}, {pipeline_mode = #tpu.pipeline_mode<synchronous>, transform_indices = @transform_1, window_bounds = array<i64: 64, 32>}, {pipeline_mode = #tpu.pipeline_mode<synchronous>, transform_indices = @transform_2, window_bounds = array<i64: 64, 1>}, {pipeline_mode = #tpu.pipeline_mode<synchronous>, transform_indices = @transform_3, window_bounds = array<i64: 1, 64>}, {pipeline_mode = #tpu.pipeline_mode<synchronous>, transform_indices = @transform_4, window_bounds = array<i64: 7, 32, 32>}, {pipeline_mode = #tpu.pipeline_mode<synchronous>, transform_indices = @transform_5, window_bounds = array<i64: 32, 4>}, {pipeline_mode = #tpu.pipeline_mode<synchronous>, transform_indices = @transform_6, window_bounds = array<i64: 8, 32>}, {pipeline_mode = #tpu.pipeline_mode<synchronous>, transform_indices = @transform_7, window_bounds = array<i64: 8, 128>}]} {
    %c0 = arith.constant 0 : index
    %c0_0 = arith.constant 0 : index
    %0 = vector.load %arg1[%c0, %c0_0] : memref<64x64xf32, #tpu.memory_space<vmem>>, vector<64x64xf32>
    %c0_1 = arith.constant 0 : index
    %c0_2 = arith.constant 0 : index
    %1 = vector.load %arg2[%c0_1, %c0_2] : memref<64x32xf32, #tpu.memory_space<vmem>>, vector<64x32xf32>
    %c0_3 = arith.constant 0 : index
    %c0_4 = arith.constant 0 : index
    %2 = vector.load %arg3[%c0_3, %c0_4] : memref<64x1xf32, #tpu.memory_space<vmem>>, vector<64x1xf32>
    %c0_5 = arith.constant 0 : index
    %c0_6 = arith.constant 0 : index
    %3 = vector.load %arg4[%c0_5, %c0_6] : memref<1x64xf32, #tpu.memory_space<vmem>>, vector<1x64xf32>
    %4 = tpu.iota {dimensions = array<i32: 0>} : vector<64x1xi32>
    %5 = tpu.iota {dimensions = array<i32: 1>} : vector<1x64xi32>
    %cst = arith.constant 1.000000e+00 : f32
    %6 = vector.broadcast %cst : f32 to vector<64x1xf32>
    %cst_7 = arith.constant 0.000000e+00 : f32
    %7 = vector.broadcast %cst_7 : f32 to vector<4x32xf32>
    %c0_8 = arith.constant 0 : index
    %c0_9 = arith.constant 0 : index
    %8 = vector.load %arg9[%c0_8, %c0_9] : memref<4x32xf32, #tpu.memory_space<vmem>>, vector<4x32xf32>
    tpu.vector_store %arg9[%c0_8, %c0_9], %7 {strides = array<i32>} : memref<4x32xf32, #tpu.memory_space<vmem>>, vector<4x32xf32>,
    %cst_10 = arith.constant 0.000000e+00 : f32
    %9 = vector.broadcast %cst_10 : f32 to vector<4x32xf32>
    %c0_11 = arith.constant 0 : index
    %c0_12 = arith.constant 0 : index
    %10 = vector.load %arg10[%c0_11, %c0_12] : memref<4x32xf32, #tpu.memory_space<vmem>>, vector<4x32xf32>
    tpu.vector_store %arg10[%c0_11, %c0_12], %9 {strides = array<i32>} : memref<4x32xf32, #tpu.memory_space<vmem>>, vector<4x32xf32>,
    %cst_13 = arith.constant dense<0.000000e+00> : vector<64x1xf32>
    %11 = tpu.matmul %0, %6, %cst_13 {dimension_numbers = #tpu.dot_dimension_numbers<[1], [0], [0], [1], [0, 0, 1, 1], [], []>} : vector<64x64xf32>, vector<64x1xf32>, vector<64x1xf32> -> vector<64x1xf32>
    %12 = arith.addf %11, %6 : vector<64x1xf32>
    %cst_14 = arith.constant 0.000000e+00 : f32
    %13 = vector.broadcast %cst_14 : f32 to vector<64x1xf32>
    %14 = arith.cmpf ogt, %12, %13 : vector<64x1xf32>
    %cst_15 = arith.constant 9.99999996E-13 : f32
    %15 = vector.broadcast %cst_15 : f32 to vector<64x1xf32>
    %16 = arith.maximumf %12, %15 : vector<64x1xf32>
    %17 = math.rsqrt %16 : vector<64x1xf32>
    %cst_16 = arith.constant 0.000000e+00 : f32
    %18 = vector.broadcast %cst_16 : f32 to vector<64x1xf32>
    %19 = arith.select %14, %17, %18 : vector<64x1xi1>, vector<64x1xf32>
    %20 = arith.mulf %6, %19 : vector<64x1xf32>
    %21 = arith.mulf %20, %19 : vector<64x1xf32>
    %c0_17 = arith.constant 0 : index
    %c0_18 = arith.constant 0 : index
    %c0_19 = arith.constant 0 : index
    %22 = vector.load %arg5[%c0_17, %c0_18, %c0_19] : memref<7x32x32xf32, #tpu.memory_space<vmem>>, vector<1x32x32xf32>
    %23 = vector.shape_cast %22 : vector<1x32x32xf32> to vector<32x32xf32>
    %cst_20 = arith.constant dense<0.000000e+00> : vector<64x32xf32>
    %24 = tpu.matmul %1, %23, %cst_20 {dimension_numbers = #tpu.dot_dimension_numbers<[1], [0], [0], [1], [0, 0, 1, 1], [], []>} : vector<64x32xf32>, vector<32x32xf32>, vector<64x32xf32> -> vector<64x32xf32>
    %25 = vector.broadcast %19 : vector<64x1xf32> to vector<64x32xf32>
    %26 = arith.mulf %25, %24 : vector<64x32xf32>
    %cst_21 = arith.constant dense<0.000000e+00> : vector<64x32xf32>
    %27 = tpu.matmul %0, %26, %cst_21 {dimension_numbers = #tpu.dot_dimension_numbers<[1], [0], [0], [1], [0, 0, 1, 1], [], []>} : vector<64x64xf32>, vector<64x32xf32>, vector<64x32xf32> -> vector<64x32xf32>
    %28 = vector.broadcast %19 : vector<64x1xf32> to vector<64x32xf32>
    %29 = arith.mulf %28, %27 : vector<64x32xf32>
    %30 = vector.broadcast %21 : vector<64x1xf32> to vector<64x32xf32>
    %31 = arith.mulf %30, %24 : vector<64x32xf32>
    %32 = arith.addf %29, %31 : vector<64x32xf32>
    %c0_22 = arith.constant 0 : index
    %c0_23 = arith.constant 0 : index
    %33 = vector.load %arg7[%c0_22, %c0_23] : memref<8x32xf32, #tpu.memory_space<vmem>>, vector<1x32xf32>
    %34 = vector.broadcast %33 : vector<1x32xf32> to vector<64x32xf32>
    %35 = arith.addf %32, %34 : vector<64x32xf32>
    %cst_24 = arith.constant 0.000000e+00 : f32
    %36 = vector.broadcast %cst_24 : f32 to vector<64x32xf32>
    %37 = arith.maximumf %35, %36 : vector<64x32xf32>
    %c0_25 = arith.constant 0 : index
    %c0_26 = arith.constant 0 : index
    %38 = vector.load %arg6[%c0_25, %c0_26] : memref<32x4xf32, #tpu.memory_space<vmem>>, vector<32x1xf32>
    %cst_27 = arith.constant dense<0.000000e+00> : vector<64x1xf32>
    %39 = tpu.matmul %37, %38, %cst_27 {dimension_numbers = #tpu.dot_dimension_numbers<[1], [0], [0], [1], [0, 0, 1, 1], [], []>} : vector<64x32xf32>, vector<32x1xf32>, vector<64x1xf32> -> vector<64x1xf32>
    %40 = arith.mulf %19, %39 : vector<64x1xf32>
    %cst_28 = arith.constant dense<0.000000e+00> : vector<64x1xf32>
    %41 = tpu.matmul %0, %40, %cst_28 {dimension_numbers = #tpu.dot_dimension_numbers<[1], [0], [0], [1], [0, 0, 1, 1], [], []>} : vector<64x64xf32>, vector<64x1xf32>, vector<64x1xf32> -> vector<64x1xf32>
    %42 = arith.mulf %19, %41 : vector<64x1xf32>
    %43 = arith.mulf %21, %39 : vector<64x1xf32>
    %44 = arith.addf %42, %43 : vector<64x1xf32>
    %c3 = arith.constant 3 : index
    %c0_29 = arith.constant 0 : index
    %45 = vector.load %arg7[%c3, %c0_29] : memref<8x32xf32, #tpu.memory_space<vmem>>, vector<1x1xf32>
    %46 = vector.broadcast %45 : vector<1x1xf32> to vector<64x1xf32>
    %47 = arith.addf %44, %46 : vector<64x1xf32>
    %cst_30 = arith.constant 5.000000e-01 : f32
    %48 = vector.broadcast %cst_30 : f32 to vector<64x1xf32>
    %49 = arith.cmpf ogt, %6, %48 : vector<64x1xf32>
    %cst_31 = arith.constant -1.000000e+30 : f32
    %50 = vector.broadcast %cst_31 : f32 to vector<64x1xf32>
    %51 = arith.select %49, %47, %50 : vector<64x1xi1>, vector<64x1xf32>
    %52 = vector.broadcast %4 : vector<64x1xi32> to vector<64x64xi32>
    %53 = vector.broadcast %5 : vector<1x64xi32> to vector<64x64xi32>
    %54 = arith.cmpi eq, %52, %53 : vector<64x64xi32>
    %cst_32 = arith.constant 0.000000e+00 : f32
    %55 = vector.shape_cast %51 : vector<64x1xf32> to vector<64x1xf32>
    %56 = vector.broadcast %55 : vector<64x1xf32> to vector<64x64xf32>
    %57 = vector.broadcast %cst_32 : f32 to vector<64x64xf32>
    %58 = arith.select %54, %56, %57 : vector<64x64xi1>, vector<64x64xf32>
    %cst_33 = arith.constant dense<0.000000e+00> : vector<64xf32>
    %59 = vector.multi_reduction <add>, %58, %cst_33 [0] : vector<64x64xf32> to vector<64xf32>
    %60 = vector.shape_cast %59 : vector<64xf32> to vector<1x64xf32>
    %61 = vector.broadcast %3 : vector<1x64xf32> to vector<64x64xf32>
    %62 = vector.broadcast %2 : vector<64x1xf32> to vector<64x64xf32>
    %63 = arith.cmpf oeq, %61, %62 : vector<64x64xf32>
    %cst_34 = arith.constant 5.000000e-01 : f32
    %cst_35 = arith.constant -1.000000e+30 : f32
    %64 = arith.mulf %cst_34, %cst_35 : f32
    %65 = vector.broadcast %64 : f32 to vector<1x64xf32>
    %66 = arith.cmpf ogt, %60, %65 : vector<1x64xf32>
    %67 = vector.broadcast %66 : vector<1x64xi1> to vector<64x64xi1>
    %68 = arith.andi %63, %67 : vector<64x64xi1>
    %69 = vector.broadcast %60 : vector<1x64xf32> to vector<64x64xf32>
    %70 = vector.broadcast %47 : vector<64x1xf32> to vector<64x64xf32>
    %71 = arith.cmpf ogt, %69, %70 : vector<64x64xf32>
    %72 = vector.broadcast %60 : vector<1x64xf32> to vector<64x64xf32>
    %73 = vector.broadcast %47 : vector<64x1xf32> to vector<64x64xf32>
    %74 = arith.cmpf oeq, %72, %73 : vector<64x64xf32>
    %75 = vector.broadcast %5 : vector<1x64xi32> to vector<64x64xi32>
    %76 = vector.broadcast %4 : vector<64x1xi32> to vector<64x64xi32>
    %77 = arith.cmpi slt, %75, %76 : vector<64x64xi32>
    %78 = arith.andi %74, %77 : vector<64x64xi1>
    %79 = arith.ori %71, %78 : vector<64x64xi1>
    %80 = arith.andi %68, %79 : vector<64x64xi1>
    %cst_36 = arith.constant 1.000000e+00 : f32
    %cst_37 = arith.constant 0.000000e+00 : f32
    %81 = vector.broadcast %cst_36 : f32 to vector<64x64xf32>
    %82 = vector.broadcast %cst_37 : f32 to vector<64x64xf32>
    %83 = arith.select %80, %81, %82 : vector<64x64xi1>, vector<64x64xf32>
    %cst_38 = arith.constant dense<0.000000e+00> : vector<64xf32>
    %84 = vector.multi_reduction <add>, %83, %cst_38 [1] : vector<64x64xf32> to vector<64xf32>
    %85 = vector.shape_cast %84 : vector<64xf32> to vector<64x1xf32>
    %cst_39 = arith.constant 1.000000e+00 : f32
    %cst_40 = arith.constant 0.000000e+00 : f32
    %86 = vector.broadcast %cst_39 : f32 to vector<64x64xf32>
    %87 = vector.broadcast %cst_40 : f32 to vector<64x64xf32>
    %88 = arith.select %68, %86, %87 : vector<64x64xi1>, vector<64x64xf32>
    %cst_41 = arith.constant dense<0.000000e+00> : vector<64xf32>
    %89 = vector.multi_reduction <add>, %88, %cst_41 [1] : vector<64x64xf32> to vector<64xf32>
    %90 = vector.shape_cast %89 : vector<64xf32> to vector<64x1xf32>
    %cst_42 = arith.constant 5.000000e-01 : f32
    %91 = vector.broadcast %cst_42 : f32 to vector<64x1xf32>
    %92 = arith.mulf %91, %90 : vector<64x1xf32>
    %93 = math.ceil %92 : vector<64x1xf32>
    %94 = arith.cmpf olt, %85, %93 : vector<64x1xf32>
    %cst_43 = arith.constant 5.000000e-01 : f32
    %95 = vector.broadcast %cst_43 : f32 to vector<64x1xf32>
    %96 = arith.cmpf ogt, %6, %95 : vector<64x1xf32>
    %97 = arith.andi %94, %96 : vector<64x1xi1>
    %cst_44 = arith.constant 1.000000e+00 : f32
    %cst_45 = arith.constant 0.000000e+00 : f32
    %98 = vector.broadcast %cst_44 : f32 to vector<64x1xf32>
    %99 = vector.broadcast %cst_45 : f32 to vector<64x1xf32>
    %100 = arith.select %97, %98, %99 : vector<64x1xi1>, vector<64x1xf32>
    %101 = math.tanh %47 : vector<64x1xf32>
    %102 = vector.broadcast %101 : vector<64x1xf32> to vector<64x32xf32>
    %103 = arith.mulf %37, %102 : vector<64x32xf32>
    %104 = vector.broadcast %100 : vector<64x1xf32> to vector<64x32xf32>
    %105 = arith.mulf %103, %104 : vector<64x32xf32>
    %106 = vector.broadcast %100 : vector<64x1xf32> to vector<64x64xf32>
    %107 = arith.mulf %0, %106 : vector<64x64xf32>
    %108 = vector.extract_strided_slice %105 {offsets = [0, 0], sizes = [16, 32], strides = [1, 1]} : vector<64x32xf32> to vector<16x32xf32>
    %109 = vector.extract_strided_slice %100 {offsets = [0, 0], sizes = [16, 1], strides = [1, 1]} : vector<64x1xf32> to vector<16x1xf32>
    %cst_46 = arith.constant dense<0.000000e+00> : vector<1xf32>
    %110 = vector.multi_reduction <add>, %109, %cst_46 [0] : vector<16x1xf32> to vector<1xf32>
    %111 = vector.shape_cast %110 : vector<1xf32> to vector<1x1xf32>
    %cst_47 = arith.constant 5.000000e-01 : f32
    %112 = vector.broadcast %cst_47 : f32 to vector<16x1xf32>
    %113 = arith.cmpf ogt, %109, %112 : vector<16x1xf32>
    %cst_48 = arith.constant -3.40282347E+38 : f32
    %114 = vector.shape_cast %113 : vector<16x1xi1> to vector<16x1xi1>
    %115 = vector.broadcast %114 : vector<16x1xi1> to vector<16x32xi1>
    %116 = vector.broadcast %cst_48 : f32 to vector<16x32xf32>
    %117 = arith.select %115, %108, %116 : vector<16x32xi1>, vector<16x32xf32>
    %cst_49 = arith.constant dense<0xFF800000> : vector<32xf32>
    %118 = vector.multi_reduction <maximumf>, %117, %cst_49 [0] : vector<16x32xf32> to vector<32xf32>
    %119 = vector.shape_cast %118 : vector<32xf32> to vector<1x32xf32>
    %cst_50 = arith.constant 5.000000e-01 : f32
    %120 = vector.broadcast %cst_50 : f32 to vector<1x1xf32>
    %121 = arith.cmpf ogt, %111, %120 : vector<1x1xf32>
    %cst_51 = arith.constant 0.000000e+00 : f32
    %122 = vector.shape_cast %121 : vector<1x1xi1> to vector<1x1xi1>
    %123 = vector.broadcast %122 : vector<1x1xi1> to vector<1x32xi1>
    %124 = vector.broadcast %cst_51 : f32 to vector<1x32xf32>
    %125 = arith.select %123, %119, %124 : vector<1x32xi1>, vector<1x32xf32>
    %cst_52 = arith.constant dense<0.000000e+00> : vector<32xf32>
    %126 = vector.multi_reduction <add>, %108, %cst_52 [0] : vector<16x32xf32> to vector<32xf32>
    %127 = vector.shape_cast %126 : vector<32xf32> to vector<1x32xf32>
    %cst_53 = arith.constant 1.000000e+00 : f32
    %128 = vector.broadcast %cst_53 : f32 to vector<1x1xf32>
    %129 = arith.maximumf %111, %128 : vector<1x1xf32>
    %130 = tpu.reciprocal %129 {approx = true} : vector<1x1xf32> -> vector<1x1xf32>
    %131 = vector.broadcast %130 : vector<1x1xf32> to vector<1x32xf32>
    %132 = arith.mulf %127, %131 : vector<1x32xf32>
    %c0_54 = arith.constant 0 : index
    %c0_55 = arith.constant 0 : index
    %133 = vector.load %arg9[%c0_54, %c0_55] : memref<4x32xf32, #tpu.memory_space<vmem>>, vector<1x32xf32>
    %134 = arith.addf %133, %125 : vector<1x32xf32>
    %c0_56 = arith.constant 0 : index
    %c0_57 = arith.constant 0 : index
    %135 = vector.load %arg9[%c0_56, %c0_57] : memref<4x32xf32, #tpu.memory_space<vmem>>, vector<1x32xf32>
    tpu.vector_store %arg9[%c0_56, %c0_57], %134 {strides = array<i32>} : memref<4x32xf32, #tpu.memory_space<vmem>>, vector<1x32xf32>,
    %c0_58 = arith.constant 0 : index
    %c0_59 = arith.constant 0 : index
    %136 = vector.load %arg10[%c0_58, %c0_59] : memref<4x32xf32, #tpu.memory_space<vmem>>, vector<1x32xf32>
    %137 = arith.addf %136, %132 : vector<1x32xf32>
    %c0_60 = arith.constant 0 : index
    %c0_61 = arith.constant 0 : index
    %138 = vector.load %arg10[%c0_60, %c0_61] : memref<4x32xf32, #tpu.memory_space<vmem>>, vector<1x32xf32>
    tpu.vector_store %arg10[%c0_60, %c0_61], %137 {strides = array<i32>} : memref<4x32xf32, #tpu.memory_space<vmem>>, vector<1x32xf32>,
    %139 = vector.extract_strided_slice %105 {offsets = [16, 0], sizes = [16, 32], strides = [1, 1]} : vector<64x32xf32> to vector<16x32xf32>
    %140 = vector.extract_strided_slice %100 {offsets = [16, 0], sizes = [16, 1], strides = [1, 1]} : vector<64x1xf32> to vector<16x1xf32>
    %cst_62 = arith.constant dense<0.000000e+00> : vector<1xf32>
    %141 = vector.multi_reduction <add>, %140, %cst_62 [0] : vector<16x1xf32> to vector<1xf32>
    %142 = vector.shape_cast %141 : vector<1xf32> to vector<1x1xf32>
    %cst_63 = arith.constant 5.000000e-01 : f32
    %143 = vector.broadcast %cst_63 : f32 to vector<16x1xf32>
    %144 = arith.cmpf ogt, %140, %143 : vector<16x1xf32>
    %cst_64 = arith.constant -3.40282347E+38 : f32
    %145 = vector.shape_cast %144 : vector<16x1xi1> to vector<16x1xi1>
    %146 = vector.broadcast %145 : vector<16x1xi1> to vector<16x32xi1>
    %147 = vector.broadcast %cst_64 : f32 to vector<16x32xf32>
    %148 = arith.select %146, %139, %147 : vector<16x32xi1>, vector<16x32xf32>
    %cst_65 = arith.constant dense<0xFF800000> : vector<32xf32>
    %149 = vector.multi_reduction <maximumf>, %148, %cst_65 [0] : vector<16x32xf32> to vector<32xf32>
    %150 = vector.shape_cast %149 : vector<32xf32> to vector<1x32xf32>
    %cst_66 = arith.constant 5.000000e-01 : f32
    %151 = vector.broadcast %cst_66 : f32 to vector<1x1xf32>
    %152 = arith.cmpf ogt, %142, %151 : vector<1x1xf32>
    %cst_67 = arith.constant 0.000000e+00 : f32
    %153 = vector.shape_cast %152 : vector<1x1xi1> to vector<1x1xi1>
    %154 = vector.broadcast %153 : vector<1x1xi1> to vector<1x32xi1>
    %155 = vector.broadcast %cst_67 : f32 to vector<1x32xf32>
    %156 = arith.select %154, %150, %155 : vector<1x32xi1>, vector<1x32xf32>
    %cst_68 = arith.constant dense<0.000000e+00> : vector<32xf32>
    %157 = vector.multi_reduction <add>, %139, %cst_68 [0] : vector<16x32xf32> to vector<32xf32>
    %158 = vector.shape_cast %157 : vector<32xf32> to vector<1x32xf32>
    %cst_69 = arith.constant 1.000000e+00 : f32
    %159 = vector.broadcast %cst_69 : f32 to vector<1x1xf32>
    %160 = arith.maximumf %142, %159 : vector<1x1xf32>
    %161 = tpu.reciprocal %160 {approx = true} : vector<1x1xf32> -> vector<1x1xf32>
    %162 = vector.broadcast %161 : vector<1x1xf32> to vector<1x32xf32>
    %163 = arith.mulf %158, %162 : vector<1x32xf32>
    %c1 = arith.constant 1 : index
    %c0_70 = arith.constant 0 : index
    %164 = vector.load %arg9[%c1, %c0_70] : memref<4x32xf32, #tpu.memory_space<vmem>>, vector<1x32xf32>
    %165 = arith.addf %164, %156 : vector<1x32xf32>
    %c1_71 = arith.constant 1 : index
    %c0_72 = arith.constant 0 : index
    %166 = vector.load %arg9[%c1_71, %c0_72] : memref<4x32xf32, #tpu.memory_space<vmem>>, vector<1x32xf32>
    tpu.vector_store %arg9[%c1_71, %c0_72], %165 {strides = array<i32>} : memref<4x32xf32, #tpu.memory_space<vmem>>, vector<1x32xf32>,
    %c1_73 = arith.constant 1 : index
    %c0_74 = arith.constant 0 : index
    %167 = vector.load %arg10[%c1_73, %c0_74] : memref<4x32xf32, #tpu.memory_space<vmem>>, vector<1x32xf32>
    %168 = arith.addf %167, %163 : vector<1x32xf32>
    %c1_75 = arith.constant 1 : index
    %c0_76 = arith.constant 0 : index
    %169 = vector.load %arg10[%c1_75, %c0_76] : memref<4x32xf32, #tpu.memory_space<vmem>>, vector<1x32xf32>
    tpu.vector_store %arg10[%c1_75, %c0_76], %168 {strides = array<i32>} : memref<4x32xf32, #tpu.memory_space<vmem>>, vector<1x32xf32>,
    %170 = vector.extract_strided_slice %105 {offsets = [32, 0], sizes = [16, 32], strides = [1, 1]} : vector<64x32xf32> to vector<16x32xf32>
    %171 = vector.extract_strided_slice %100 {offsets = [32, 0], sizes = [16, 1], strides = [1, 1]} : vector<64x1xf32> to vector<16x1xf32>
    %cst_77 = arith.constant dense<0.000000e+00> : vector<1xf32>
    %172 = vector.multi_reduction <add>, %171, %cst_77 [0] : vector<16x1xf32> to vector<1xf32>
    %173 = vector.shape_cast %172 : vector<1xf32> to vector<1x1xf32>
    %cst_78 = arith.constant 5.000000e-01 : f32
    %174 = vector.broadcast %cst_78 : f32 to vector<16x1xf32>
    %175 = arith.cmpf ogt, %171, %174 : vector<16x1xf32>
    %cst_79 = arith.constant -3.40282347E+38 : f32
    %176 = vector.shape_cast %175 : vector<16x1xi1> to vector<16x1xi1>
    %177 = vector.broadcast %176 : vector<16x1xi1> to vector<16x32xi1>
    %178 = vector.broadcast %cst_79 : f32 to vector<16x32xf32>
    %179 = arith.select %177, %170, %178 : vector<16x32xi1>, vector<16x32xf32>
    %cst_80 = arith.constant dense<0xFF800000> : vector<32xf32>
    %180 = vector.multi_reduction <maximumf>, %179, %cst_80 [0] : vector<16x32xf32> to vector<32xf32>
    %181 = vector.shape_cast %180 : vector<32xf32> to vector<1x32xf32>
    %cst_81 = arith.constant 5.000000e-01 : f32
    %182 = vector.broadcast %cst_81 : f32 to vector<1x1xf32>
    %183 = arith.cmpf ogt, %173, %182 : vector<1x1xf32>
    %cst_82 = arith.constant 0.000000e+00 : f32
    %184 = vector.shape_cast %183 : vector<1x1xi1> to vector<1x1xi1>
    %185 = vector.broadcast %184 : vector<1x1xi1> to vector<1x32xi1>
    %186 = vector.broadcast %cst_82 : f32 to vector<1x32xf32>
    %187 = arith.select %185, %181, %186 : vector<1x32xi1>, vector<1x32xf32>
    %cst_83 = arith.constant dense<0.000000e+00> : vector<32xf32>
    %188 = vector.multi_reduction <add>, %170, %cst_83 [0] : vector<16x32xf32> to vector<32xf32>
    %189 = vector.shape_cast %188 : vector<32xf32> to vector<1x32xf32>
    %cst_84 = arith.constant 1.000000e+00 : f32
    %190 = vector.broadcast %cst_84 : f32 to vector<1x1xf32>
    %191 = arith.maximumf %173, %190 : vector<1x1xf32>
    %192 = tpu.reciprocal %191 {approx = true} : vector<1x1xf32> -> vector<1x1xf32>
    %193 = vector.broadcast %192 : vector<1x1xf32> to vector<1x32xf32>
    %194 = arith.mulf %189, %193 : vector<1x32xf32>
    %c2 = arith.constant 2 : index
    %c0_85 = arith.constant 0 : index
    %195 = vector.load %arg9[%c2, %c0_85] : memref<4x32xf32, #tpu.memory_space<vmem>>, vector<1x32xf32>
    %196 = arith.addf %195, %187 : vector<1x32xf32>
    %c2_86 = arith.constant 2 : index
    %c0_87 = arith.constant 0 : index
    %197 = vector.load %arg9[%c2_86, %c0_87] : memref<4x32xf32, #tpu.memory_space<vmem>>, vector<1x32xf32>
    tpu.vector_store %arg9[%c2_86, %c0_87], %196 {strides = array<i32>} : memref<4x32xf32, #tpu.memory_space<vmem>>, vector<1x32xf32>,
    %c2_88 = arith.constant 2 : index
    %c0_89 = arith.constant 0 : index
    %198 = vector.load %arg10[%c2_88, %c0_89] : memref<4x32xf32, #tpu.memory_space<vmem>>, vector<1x32xf32>
    %199 = arith.addf %198, %194 : vector<1x32xf32>
    %c2_90 = arith.constant 2 : index
    %c0_91 = arith.constant 0 : index
    %200 = vector.load %arg10[%c2_90, %c0_91] : memref<4x32xf32, #tpu.memory_space<vmem>>, vector<1x32xf32>
    tpu.vector_store %arg10[%c2_90, %c0_91], %199 {strides = array<i32>} : memref<4x32xf32, #tpu.memory_space<vmem>>, vector<1x32xf32>,
    %201 = vector.extract_strided_slice %105 {offsets = [48, 0], sizes = [16, 32], strides = [1, 1]} : vector<64x32xf32> to vector<16x32xf32>
    %202 = vector.extract_strided_slice %100 {offsets = [48, 0], sizes = [16, 1], strides = [1, 1]} : vector<64x1xf32> to vector<16x1xf32>
    %cst_92 = arith.constant dense<0.000000e+00> : vector<1xf32>
    %203 = vector.multi_reduction <add>, %202, %cst_92 [0] : vector<16x1xf32> to vector<1xf32>
    %204 = vector.shape_cast %203 : vector<1xf32> to vector<1x1xf32>
    %cst_93 = arith.constant 5.000000e-01 : f32
    %205 = vector.broadcast %cst_93 : f32 to vector<16x1xf32>
    %206 = arith.cmpf ogt, %202, %205 : vector<16x1xf32>
    %cst_94 = arith.constant -3.40282347E+38 : f32
    %207 = vector.shape_cast %206 : vector<16x1xi1> to vector<16x1xi1>
    %208 = vector.broadcast %207 : vector<16x1xi1> to vector<16x32xi1>
    %209 = vector.broadcast %cst_94 : f32 to vector<16x32xf32>
    %210 = arith.select %208, %201, %209 : vector<16x32xi1>, vector<16x32xf32>
    %cst_95 = arith.constant dense<0xFF800000> : vector<32xf32>
    %211 = vector.multi_reduction <maximumf>, %210, %cst_95 [0] : vector<16x32xf32> to vector<32xf32>
    %212 = vector.shape_cast %211 : vector<32xf32> to vector<1x32xf32>
    %cst_96 = arith.constant 5.000000e-01 : f32
    %213 = vector.broadcast %cst_96 : f32 to vector<1x1xf32>
    %214 = arith.cmpf ogt, %204, %213 : vector<1x1xf32>
    %cst_97 = arith.constant 0.000000e+00 : f32
    %215 = vector.shape_cast %214 : vector<1x1xi1> to vector<1x1xi1>
    %216 = vector.broadcast %215 : vector<1x1xi1> to vector<1x32xi1>
    %217 = vector.broadcast %cst_97 : f32 to vector<1x32xf32>
    %218 = arith.select %216, %212, %217 : vector<1x32xi1>, vector<1x32xf32>
    %cst_98 = arith.constant dense<0.000000e+00> : vector<32xf32>
    %219 = vector.multi_reduction <add>, %201, %cst_98 [0] : vector<16x32xf32> to vector<32xf32>
    %220 = vector.shape_cast %219 : vector<32xf32> to vector<1x32xf32>
    %cst_99 = arith.constant 1.000000e+00 : f32
    %221 = vector.broadcast %cst_99 : f32 to vector<1x1xf32>
    %222 = arith.maximumf %204, %221 : vector<1x1xf32>
    %223 = tpu.reciprocal %222 {approx = true} : vector<1x1xf32> -> vector<1x1xf32>
    %224 = vector.broadcast %223 : vector<1x1xf32> to vector<1x32xf32>
    %225 = arith.mulf %220, %224 : vector<1x32xf32>
    %c3_100 = arith.constant 3 : index
    %c0_101 = arith.constant 0 : index
    %226 = vector.load %arg9[%c3_100, %c0_101] : memref<4x32xf32, #tpu.memory_space<vmem>>, vector<1x32xf32>
    %227 = arith.addf %226, %218 : vector<1x32xf32>
    %c3_102 = arith.constant 3 : index
    %c0_103 = arith.constant 0 : index
    %228 = vector.load %arg9[%c3_102, %c0_103] : memref<4x32xf32, #tpu.memory_space<vmem>>, vector<1x32xf32>
    tpu.vector_store %arg9[%c3_102, %c0_103], %227 {strides = array<i32>} : memref<4x32xf32, #tpu.memory_space<vmem>>, vector<1x32xf32>,
    %c3_104 = arith.constant 3 : index
    %c0_105 = arith.constant 0 : index
    %229 = vector.load %arg10[%c3_104, %c0_105] : memref<4x32xf32, #tpu.memory_space<vmem>>, vector<1x32xf32>
    %230 = arith.addf %229, %225 : vector<1x32xf32>
    %c3_106 = arith.constant 3 : index
    %c0_107 = arith.constant 0 : index
    %231 = vector.load %arg10[%c3_106, %c0_107] : memref<4x32xf32, #tpu.memory_space<vmem>>, vector<1x32xf32>
    tpu.vector_store %arg10[%c3_106, %c0_107], %230 {strides = array<i32>} : memref<4x32xf32, #tpu.memory_space<vmem>>, vector<1x32xf32>,
    %cst_108 = arith.constant dense<0.000000e+00> : vector<64x1xf32>
    %232 = tpu.matmul %107, %100, %cst_108 {dimension_numbers = #tpu.dot_dimension_numbers<[1], [0], [0], [1], [0, 0, 1, 1], [], []>} : vector<64x64xf32>, vector<64x1xf32>, vector<64x1xf32> -> vector<64x1xf32>
    %233 = arith.addf %232, %100 : vector<64x1xf32>
    %cst_109 = arith.constant 0.000000e+00 : f32
    %234 = vector.broadcast %cst_109 : f32 to vector<64x1xf32>
    %235 = arith.cmpf ogt, %233, %234 : vector<64x1xf32>
    %cst_110 = arith.constant 9.99999996E-13 : f32
    %236 = vector.broadcast %cst_110 : f32 to vector<64x1xf32>
    %237 = arith.maximumf %233, %236 : vector<64x1xf32>
    %238 = math.rsqrt %237 : vector<64x1xf32>
    %cst_111 = arith.constant 0.000000e+00 : f32
    %239 = vector.broadcast %cst_111 : f32 to vector<64x1xf32>
    %240 = arith.select %235, %238, %239 : vector<64x1xi1>, vector<64x1xf32>
    %241 = arith.mulf %100, %240 : vector<64x1xf32>
    %242 = arith.mulf %241, %240 : vector<64x1xf32>
    %c1_112 = arith.constant 1 : index
    %c0_113 = arith.constant 0 : index
    %c0_114 = arith.constant 0 : index
    %243 = vector.load %arg5[%c1_112, %c0_113, %c0_114] : memref<7x32x32xf32, #tpu.memory_space<vmem>>, vector<1x32x32xf32>
    %244 = vector.shape_cast %243 : vector<1x32x32xf32> to vector<32x32xf32>
    %cst_115 = arith.constant dense<0.000000e+00> : vector<64x32xf32>
    %245 = tpu.matmul %105, %244, %cst_115 {dimension_numbers = #tpu.dot_dimension_numbers<[1], [0], [0], [1], [0, 0, 1, 1], [], []>} : vector<64x32xf32>, vector<32x32xf32>, vector<64x32xf32> -> vector<64x32xf32>
    %246 = vector.broadcast %240 : vector<64x1xf32> to vector<64x32xf32>
    %247 = arith.mulf %246, %245 : vector<64x32xf32>
    %cst_116 = arith.constant dense<0.000000e+00> : vector<64x32xf32>
    %248 = tpu.matmul %107, %247, %cst_116 {dimension_numbers = #tpu.dot_dimension_numbers<[1], [0], [0], [1], [0, 0, 1, 1], [], []>} : vector<64x64xf32>, vector<64x32xf32>, vector<64x32xf32> -> vector<64x32xf32>
    %249 = vector.broadcast %240 : vector<64x1xf32> to vector<64x32xf32>
    %250 = arith.mulf %249, %248 : vector<64x32xf32>
    %251 = vector.broadcast %242 : vector<64x1xf32> to vector<64x32xf32>
    %252 = arith.mulf %251, %245 : vector<64x32xf32>
    %253 = arith.addf %250, %252 : vector<64x32xf32>
    %c1_117 = arith.constant 1 : index
    %c0_118 = arith.constant 0 : index
    %254 = vector.load %arg7[%c1_117, %c0_118] : memref<8x32xf32, #tpu.memory_space<vmem>>, vector<1x32xf32>
    %255 = vector.broadcast %254 : vector<1x32xf32> to vector<64x32xf32>
    %256 = arith.addf %253, %255 : vector<64x32xf32>
    %cst_119 = arith.constant 0.000000e+00 : f32
    %257 = vector.broadcast %cst_119 : f32 to vector<64x32xf32>
    %258 = arith.maximumf %256, %257 : vector<64x32xf32>
    %c0_120 = arith.constant 0 : index
    %c1_121 = arith.constant 1 : index
    %259 = vector.load %arg6[%c0_120, %c1_121] : memref<32x4xf32, #tpu.memory_space<vmem>>, vector<32x1xf32>
    %cst_122 = arith.constant dense<0.000000e+00> : vector<64x1xf32>
    %260 = tpu.matmul %258, %259, %cst_122 {dimension_numbers = #tpu.dot_dimension_numbers<[1], [0], [0], [1], [0, 0, 1, 1], [], []>} : vector<64x32xf32>, vector<32x1xf32>, vector<64x1xf32> -> vector<64x1xf32>
    %261 = arith.mulf %240, %260 : vector<64x1xf32>
    %cst_123 = arith.constant dense<0.000000e+00> : vector<64x1xf32>
    %262 = tpu.matmul %107, %261, %cst_123 {dimension_numbers = #tpu.dot_dimension_numbers<[1], [0], [0], [1], [0, 0, 1, 1], [], []>} : vector<64x64xf32>, vector<64x1xf32>, vector<64x1xf32> -> vector<64x1xf32>
    %263 = arith.mulf %240, %262 : vector<64x1xf32>
    %264 = arith.mulf %242, %260 : vector<64x1xf32>
    %265 = arith.addf %263, %264 : vector<64x1xf32>
    %c3_124 = arith.constant 3 : index
    %c1_125 = arith.constant 1 : index
    %266 = vector.load %arg7[%c3_124, %c1_125] : memref<8x32xf32, #tpu.memory_space<vmem>>, vector<1x1xf32>
    %267 = vector.broadcast %266 : vector<1x1xf32> to vector<64x1xf32>
    %268 = arith.addf %265, %267 : vector<64x1xf32>
    %cst_126 = arith.constant 5.000000e-01 : f32
    %269 = vector.broadcast %cst_126 : f32 to vector<64x1xf32>
    %270 = arith.cmpf ogt, %100, %269 : vector<64x1xf32>
    %cst_127 = arith.constant -1.000000e+30 : f32
    %271 = vector.broadcast %cst_127 : f32 to vector<64x1xf32>
    %272 = arith.select %270, %268, %271 : vector<64x1xi1>, vector<64x1xf32>
    %273 = vector.broadcast %4 : vector<64x1xi32> to vector<64x64xi32>
    %274 = vector.broadcast %5 : vector<1x64xi32> to vector<64x64xi32>
    %275 = arith.cmpi eq, %273, %274 : vector<64x64xi32>
    %cst_128 = arith.constant 0.000000e+00 : f32
    %276 = vector.shape_cast %272 : vector<64x1xf32> to vector<64x1xf32>
    %277 = vector.broadcast %276 : vector<64x1xf32> to vector<64x64xf32>
    %278 = vector.broadcast %cst_128 : f32 to vector<64x64xf32>
    %279 = arith.select %275, %277, %278 : vector<64x64xi1>, vector<64x64xf32>
    %cst_129 = arith.constant dense<0.000000e+00> : vector<64xf32>
    %280 = vector.multi_reduction <add>, %279, %cst_129 [0] : vector<64x64xf32> to vector<64xf32>
    %281 = vector.shape_cast %280 : vector<64xf32> to vector<1x64xf32>
    %282 = vector.broadcast %3 : vector<1x64xf32> to vector<64x64xf32>
    %283 = vector.broadcast %2 : vector<64x1xf32> to vector<64x64xf32>
    %284 = arith.cmpf oeq, %282, %283 : vector<64x64xf32>
    %cst_130 = arith.constant 5.000000e-01 : f32
    %cst_131 = arith.constant -1.000000e+30 : f32
    %285 = arith.mulf %cst_130, %cst_131 : f32
    %286 = vector.broadcast %285 : f32 to vector<1x64xf32>
    %287 = arith.cmpf ogt, %281, %286 : vector<1x64xf32>
    %288 = vector.broadcast %287 : vector<1x64xi1> to vector<64x64xi1>
    %289 = arith.andi %284, %288 : vector<64x64xi1>
    %290 = vector.broadcast %281 : vector<1x64xf32> to vector<64x64xf32>
    %291 = vector.broadcast %268 : vector<64x1xf32> to vector<64x64xf32>
    %292 = arith.cmpf ogt, %290, %291 : vector<64x64xf32>
    %293 = vector.broadcast %281 : vector<1x64xf32> to vector<64x64xf32>
    %294 = vector.broadcast %268 : vector<64x1xf32> to vector<64x64xf32>
    %295 = arith.cmpf oeq, %293, %294 : vector<64x64xf32>
    %296 = vector.broadcast %5 : vector<1x64xi32> to vector<64x64xi32>
    %297 = vector.broadcast %4 : vector<64x1xi32> to vector<64x64xi32>
    %298 = arith.cmpi slt, %296, %297 : vector<64x64xi32>
    %299 = arith.andi %295, %298 : vector<64x64xi1>
    %300 = arith.ori %292, %299 : vector<64x64xi1>
    %301 = arith.andi %289, %300 : vector<64x64xi1>
    %cst_132 = arith.constant 1.000000e+00 : f32
    %cst_133 = arith.constant 0.000000e+00 : f32
    %302 = vector.broadcast %cst_132 : f32 to vector<64x64xf32>
    %303 = vector.broadcast %cst_133 : f32 to vector<64x64xf32>
    %304 = arith.select %301, %302, %303 : vector<64x64xi1>, vector<64x64xf32>
    %cst_134 = arith.constant dense<0.000000e+00> : vector<64xf32>
    %305 = vector.multi_reduction <add>, %304, %cst_134 [1] : vector<64x64xf32> to vector<64xf32>
    %306 = vector.shape_cast %305 : vector<64xf32> to vector<64x1xf32>
    %cst_135 = arith.constant 1.000000e+00 : f32
    %cst_136 = arith.constant 0.000000e+00 : f32
    %307 = vector.broadcast %cst_135 : f32 to vector<64x64xf32>
    %308 = vector.broadcast %cst_136 : f32 to vector<64x64xf32>
    %309 = arith.select %289, %307, %308 : vector<64x64xi1>, vector<64x64xf32>
    %cst_137 = arith.constant dense<0.000000e+00> : vector<64xf32>
    %310 = vector.multi_reduction <add>, %309, %cst_137 [1] : vector<64x64xf32> to vector<64xf32>
    %311 = vector.shape_cast %310 : vector<64xf32> to vector<64x1xf32>
    %cst_138 = arith.constant 5.000000e-01 : f32
    %312 = vector.broadcast %cst_138 : f32 to vector<64x1xf32>
    %313 = arith.mulf %312, %311 : vector<64x1xf32>
    %314 = math.ceil %313 : vector<64x1xf32>
    %315 = arith.cmpf olt, %306, %314 : vector<64x1xf32>
    %cst_139 = arith.constant 5.000000e-01 : f32
    %316 = vector.broadcast %cst_139 : f32 to vector<64x1xf32>
    %317 = arith.cmpf ogt, %100, %316 : vector<64x1xf32>
    %318 = arith.andi %315, %317 : vector<64x1xi1>
    %cst_140 = arith.constant 1.000000e+00 : f32
    %cst_141 = arith.constant 0.000000e+00 : f32
    %319 = vector.broadcast %cst_140 : f32 to vector<64x1xf32>
    %320 = vector.broadcast %cst_141 : f32 to vector<64x1xf32>
    %321 = arith.select %318, %319, %320 : vector<64x1xi1>, vector<64x1xf32>
    %322 = math.tanh %268 : vector<64x1xf32>
    %323 = vector.broadcast %322 : vector<64x1xf32> to vector<64x32xf32>
    %324 = arith.mulf %258, %323 : vector<64x32xf32>
    %325 = vector.broadcast %321 : vector<64x1xf32> to vector<64x32xf32>
    %326 = arith.mulf %324, %325 : vector<64x32xf32>
    %327 = vector.broadcast %321 : vector<64x1xf32> to vector<64x64xf32>
    %328 = arith.mulf %107, %327 : vector<64x64xf32>
    %329 = vector.extract_strided_slice %326 {offsets = [0, 0], sizes = [16, 32], strides = [1, 1]} : vector<64x32xf32> to vector<16x32xf32>
    %330 = vector.extract_strided_slice %321 {offsets = [0, 0], sizes = [16, 1], strides = [1, 1]} : vector<64x1xf32> to vector<16x1xf32>
    %cst_142 = arith.constant dense<0.000000e+00> : vector<1xf32>
    %331 = vector.multi_reduction <add>, %330, %cst_142 [0] : vector<16x1xf32> to vector<1xf32>
    %332 = vector.shape_cast %331 : vector<1xf32> to vector<1x1xf32>
    %cst_143 = arith.constant 5.000000e-01 : f32
    %333 = vector.broadcast %cst_143 : f32 to vector<16x1xf32>
    %334 = arith.cmpf ogt, %330, %333 : vector<16x1xf32>
    %cst_144 = arith.constant -3.40282347E+38 : f32
    %335 = vector.shape_cast %334 : vector<16x1xi1> to vector<16x1xi1>
    %336 = vector.broadcast %335 : vector<16x1xi1> to vector<16x32xi1>
    %337 = vector.broadcast %cst_144 : f32 to vector<16x32xf32>
    %338 = arith.select %336, %329, %337 : vector<16x32xi1>, vector<16x32xf32>
    %cst_145 = arith.constant dense<0xFF800000> : vector<32xf32>
    %339 = vector.multi_reduction <maximumf>, %338, %cst_145 [0] : vector<16x32xf32> to vector<32xf32>
    %340 = vector.shape_cast %339 : vector<32xf32> to vector<1x32xf32>
    %cst_146 = arith.constant 5.000000e-01 : f32
    %341 = vector.broadcast %cst_146 : f32 to vector<1x1xf32>
    %342 = arith.cmpf ogt, %332, %341 : vector<1x1xf32>
    %cst_147 = arith.constant 0.000000e+00 : f32
    %343 = vector.shape_cast %342 : vector<1x1xi1> to vector<1x1xi1>
    %344 = vector.broadcast %343 : vector<1x1xi1> to vector<1x32xi1>
    %345 = vector.broadcast %cst_147 : f32 to vector<1x32xf32>
    %346 = arith.select %344, %340, %345 : vector<1x32xi1>, vector<1x32xf32>
    %cst_148 = arith.constant dense<0.000000e+00> : vector<32xf32>
    %347 = vector.multi_reduction <add>, %329, %cst_148 [0] : vector<16x32xf32> to vector<32xf32>
    %348 = vector.shape_cast %347 : vector<32xf32> to vector<1x32xf32>
    %cst_149 = arith.constant 1.000000e+00 : f32
    %349 = vector.broadcast %cst_149 : f32 to vector<1x1xf32>
    %350 = arith.maximumf %332, %349 : vector<1x1xf32>
    %351 = tpu.reciprocal %350 {approx = true} : vector<1x1xf32> -> vector<1x1xf32>
    %352 = vector.broadcast %351 : vector<1x1xf32> to vector<1x32xf32>
    %353 = arith.mulf %348, %352 : vector<1x32xf32>
    %c0_150 = arith.constant 0 : index
    %c0_151 = arith.constant 0 : index
    %354 = vector.load %arg9[%c0_150, %c0_151] : memref<4x32xf32, #tpu.memory_space<vmem>>, vector<1x32xf32>
    %355 = arith.addf %354, %346 : vector<1x32xf32>
    %c0_152 = arith.constant 0 : index
    %c0_153 = arith.constant 0 : index
    %356 = vector.load %arg9[%c0_152, %c0_153] : memref<4x32xf32, #tpu.memory_space<vmem>>, vector<1x32xf32>
    tpu.vector_store %arg9[%c0_152, %c0_153], %355 {strides = array<i32>} : memref<4x32xf32, #tpu.memory_space<vmem>>, vector<1x32xf32>,
    %c0_154 = arith.constant 0 : index
    %c0_155 = arith.constant 0 : index
    %357 = vector.load %arg10[%c0_154, %c0_155] : memref<4x32xf32, #tpu.memory_space<vmem>>, vector<1x32xf32>
    %358 = arith.addf %357, %353 : vector<1x32xf32>
    %c0_156 = arith.constant 0 : index
    %c0_157 = arith.constant 0 : index
    %359 = vector.load %arg10[%c0_156, %c0_157] : memref<4x32xf32, #tpu.memory_space<vmem>>, vector<1x32xf32>
    tpu.vector_store %arg10[%c0_156, %c0_157], %358 {strides = array<i32>} : memref<4x32xf32, #tpu.memory_space<vmem>>, vector<1x32xf32>,
    %360 = vector.extract_strided_slice %326 {offsets = [16, 0], sizes = [16, 32], strides = [1, 1]} : vector<64x32xf32> to vector<16x32xf32>
    %361 = vector.extract_strided_slice %321 {offsets = [16, 0], sizes = [16, 1], strides = [1, 1]} : vector<64x1xf32> to vector<16x1xf32>
    %cst_158 = arith.constant dense<0.000000e+00> : vector<1xf32>
    %362 = vector.multi_reduction <add>, %361, %cst_158 [0] : vector<16x1xf32> to vector<1xf32>
    %363 = vector.shape_cast %362 : vector<1xf32> to vector<1x1xf32>
    %cst_159 = arith.constant 5.000000e-01 : f32
    %364 = vector.broadcast %cst_159 : f32 to vector<16x1xf32>
    %365 = arith.cmpf ogt, %361, %364 : vector<16x1xf32>
    %cst_160 = arith.constant -3.40282347E+38 : f32
    %366 = vector.shape_cast %365 : vector<16x1xi1> to vector<16x1xi1>
    %367 = vector.broadcast %366 : vector<16x1xi1> to vector<16x32xi1>
    %368 = vector.broadcast %cst_160 : f32 to vector<16x32xf32>
    %369 = arith.select %367, %360, %368 : vector<16x32xi1>, vector<16x32xf32>
    %cst_161 = arith.constant dense<0xFF800000> : vector<32xf32>
    %370 = vector.multi_reduction <maximumf>, %369, %cst_161 [0] : vector<16x32xf32> to vector<32xf32>
    %371 = vector.shape_cast %370 : vector<32xf32> to vector<1x32xf32>
    %cst_162 = arith.constant 5.000000e-01 : f32
    %372 = vector.broadcast %cst_162 : f32 to vector<1x1xf32>
    %373 = arith.cmpf ogt, %363, %372 : vector<1x1xf32>
    %cst_163 = arith.constant 0.000000e+00 : f32
    %374 = vector.shape_cast %373 : vector<1x1xi1> to vector<1x1xi1>
    %375 = vector.broadcast %374 : vector<1x1xi1> to vector<1x32xi1>
    %376 = vector.broadcast %cst_163 : f32 to vector<1x32xf32>
    %377 = arith.select %375, %371, %376 : vector<1x32xi1>, vector<1x32xf32>
    %cst_164 = arith.constant dense<0.000000e+00> : vector<32xf32>
    %378 = vector.multi_reduction <add>, %360, %cst_164 [0] : vector<16x32xf32> to vector<32xf32>
    %379 = vector.shape_cast %378 : vector<32xf32> to vector<1x32xf32>
    %cst_165 = arith.constant 1.000000e+00 : f32
    %380 = vector.broadcast %cst_165 : f32 to vector<1x1xf32>
    %381 = arith.maximumf %363, %380 : vector<1x1xf32>
    %382 = tpu.reciprocal %381 {approx = true} : vector<1x1xf32> -> vector<1x1xf32>
    %383 = vector.broadcast %382 : vector<1x1xf32> to vector<1x32xf32>
    %384 = arith.mulf %379, %383 : vector<1x32xf32>
    %c1_166 = arith.constant 1 : index
    %c0_167 = arith.constant 0 : index
    %385 = vector.load %arg9[%c1_166, %c0_167] : memref<4x32xf32, #tpu.memory_space<vmem>>, vector<1x32xf32>
    %386 = arith.addf %385, %377 : vector<1x32xf32>
    %c1_168 = arith.constant 1 : index
    %c0_169 = arith.constant 0 : index
    %387 = vector.load %arg9[%c1_168, %c0_169] : memref<4x32xf32, #tpu.memory_space<vmem>>, vector<1x32xf32>
    tpu.vector_store %arg9[%c1_168, %c0_169], %386 {strides = array<i32>} : memref<4x32xf32, #tpu.memory_space<vmem>>, vector<1x32xf32>,
    %c1_170 = arith.constant 1 : index
    %c0_171 = arith.constant 0 : index
    %388 = vector.load %arg10[%c1_170, %c0_171] : memref<4x32xf32, #tpu.memory_space<vmem>>, vector<1x32xf32>
    %389 = arith.addf %388, %384 : vector<1x32xf32>
    %c1_172 = arith.constant 1 : index
    %c0_173 = arith.constant 0 : index
    %390 = vector.load %arg10[%c1_172, %c0_173] : memref<4x32xf32, #tpu.memory_space<vmem>>, vector<1x32xf32>
    tpu.vector_store %arg10[%c1_172, %c0_173], %389 {strides = array<i32>} : memref<4x32xf32, #tpu.memory_space<vmem>>, vector<1x32xf32>,
    %391 = vector.extract_strided_slice %326 {offsets = [32, 0], sizes = [16, 32], strides = [1, 1]} : vector<64x32xf32> to vector<16x32xf32>
    %392 = vector.extract_strided_slice %321 {offsets = [32, 0], sizes = [16, 1], strides = [1, 1]} : vector<64x1xf32> to vector<16x1xf32>
    %cst_174 = arith.constant dense<0.000000e+00> : vector<1xf32>
    %393 = vector.multi_reduction <add>, %392, %cst_174 [0] : vector<16x1xf32> to vector<1xf32>
    %394 = vector.shape_cast %393 : vector<1xf32> to vector<1x1xf32>
    %cst_175 = arith.constant 5.000000e-01 : f32
    %395 = vector.broadcast %cst_175 : f32 to vector<16x1xf32>
    %396 = arith.cmpf ogt, %392, %395 : vector<16x1xf32>
    %cst_176 = arith.constant -3.40282347E+38 : f32
    %397 = vector.shape_cast %396 : vector<16x1xi1> to vector<16x1xi1>
    %398 = vector.broadcast %397 : vector<16x1xi1> to vector<16x32xi1>
    %399 = vector.broadcast %cst_176 : f32 to vector<16x32xf32>
    %400 = arith.select %398, %391, %399 : vector<16x32xi1>, vector<16x32xf32>
    %cst_177 = arith.constant dense<0xFF800000> : vector<32xf32>
    %401 = vector.multi_reduction <maximumf>, %400, %cst_177 [0] : vector<16x32xf32> to vector<32xf32>
    %402 = vector.shape_cast %401 : vector<32xf32> to vector<1x32xf32>
    %cst_178 = arith.constant 5.000000e-01 : f32
    %403 = vector.broadcast %cst_178 : f32 to vector<1x1xf32>
    %404 = arith.cmpf ogt, %394, %403 : vector<1x1xf32>
    %cst_179 = arith.constant 0.000000e+00 : f32
    %405 = vector.shape_cast %404 : vector<1x1xi1> to vector<1x1xi1>
    %406 = vector.broadcast %405 : vector<1x1xi1> to vector<1x32xi1>
    %407 = vector.broadcast %cst_179 : f32 to vector<1x32xf32>
    %408 = arith.select %406, %402, %407 : vector<1x32xi1>, vector<1x32xf32>
    %cst_180 = arith.constant dense<0.000000e+00> : vector<32xf32>
    %409 = vector.multi_reduction <add>, %391, %cst_180 [0] : vector<16x32xf32> to vector<32xf32>
    %410 = vector.shape_cast %409 : vector<32xf32> to vector<1x32xf32>
    %cst_181 = arith.constant 1.000000e+00 : f32
    %411 = vector.broadcast %cst_181 : f32 to vector<1x1xf32>
    %412 = arith.maximumf %394, %411 : vector<1x1xf32>
    %413 = tpu.reciprocal %412 {approx = true} : vector<1x1xf32> -> vector<1x1xf32>
    %414 = vector.broadcast %413 : vector<1x1xf32> to vector<1x32xf32>
    %415 = arith.mulf %410, %414 : vector<1x32xf32>
    %c2_182 = arith.constant 2 : index
    %c0_183 = arith.constant 0 : index
    %416 = vector.load %arg9[%c2_182, %c0_183] : memref<4x32xf32, #tpu.memory_space<vmem>>, vector<1x32xf32>
    %417 = arith.addf %416, %408 : vector<1x32xf32>
    %c2_184 = arith.constant 2 : index
    %c0_185 = arith.constant 0 : index
    %418 = vector.load %arg9[%c2_184, %c0_185] : memref<4x32xf32, #tpu.memory_space<vmem>>, vector<1x32xf32>
    tpu.vector_store %arg9[%c2_184, %c0_185], %417 {strides = array<i32>} : memref<4x32xf32, #tpu.memory_space<vmem>>, vector<1x32xf32>,
    %c2_186 = arith.constant 2 : index
    %c0_187 = arith.constant 0 : index
    %419 = vector.load %arg10[%c2_186, %c0_187] : memref<4x32xf32, #tpu.memory_space<vmem>>, vector<1x32xf32>
    %420 = arith.addf %419, %415 : vector<1x32xf32>
    %c2_188 = arith.constant 2 : index
    %c0_189 = arith.constant 0 : index
    %421 = vector.load %arg10[%c2_188, %c0_189] : memref<4x32xf32, #tpu.memory_space<vmem>>, vector<1x32xf32>
    tpu.vector_store %arg10[%c2_188, %c0_189], %420 {strides = array<i32>} : memref<4x32xf32, #tpu.memory_space<vmem>>, vector<1x32xf32>,
    %422 = vector.extract_strided_slice %326 {offsets = [48, 0], sizes = [16, 32], strides = [1, 1]} : vector<64x32xf32> to vector<16x32xf32>
    %423 = vector.extract_strided_slice %321 {offsets = [48, 0], sizes = [16, 1], strides = [1, 1]} : vector<64x1xf32> to vector<16x1xf32>
    %cst_190 = arith.constant dense<0.000000e+00> : vector<1xf32>
    %424 = vector.multi_reduction <add>, %423, %cst_190 [0] : vector<16x1xf32> to vector<1xf32>
    %425 = vector.shape_cast %424 : vector<1xf32> to vector<1x1xf32>
    %cst_191 = arith.constant 5.000000e-01 : f32
    %426 = vector.broadcast %cst_191 : f32 to vector<16x1xf32>
    %427 = arith.cmpf ogt, %423, %426 : vector<16x1xf32>
    %cst_192 = arith.constant -3.40282347E+38 : f32
    %428 = vector.shape_cast %427 : vector<16x1xi1> to vector<16x1xi1>
    %429 = vector.broadcast %428 : vector<16x1xi1> to vector<16x32xi1>
    %430 = vector.broadcast %cst_192 : f32 to vector<16x32xf32>
    %431 = arith.select %429, %422, %430 : vector<16x32xi1>, vector<16x32xf32>
    %cst_193 = arith.constant dense<0xFF800000> : vector<32xf32>
    %432 = vector.multi_reduction <maximumf>, %431, %cst_193 [0] : vector<16x32xf32> to vector<32xf32>
    %433 = vector.shape_cast %432 : vector<32xf32> to vector<1x32xf32>
    %cst_194 = arith.constant 5.000000e-01 : f32
    %434 = vector.broadcast %cst_194 : f32 to vector<1x1xf32>
    %435 = arith.cmpf ogt, %425, %434 : vector<1x1xf32>
    %cst_195 = arith.constant 0.000000e+00 : f32
    %436 = vector.shape_cast %435 : vector<1x1xi1> to vector<1x1xi1>
    %437 = vector.broadcast %436 : vector<1x1xi1> to vector<1x32xi1>
    %438 = vector.broadcast %cst_195 : f32 to vector<1x32xf32>
    %439 = arith.select %437, %433, %438 : vector<1x32xi1>, vector<1x32xf32>
    %cst_196 = arith.constant dense<0.000000e+00> : vector<32xf32>
    %440 = vector.multi_reduction <add>, %422, %cst_196 [0] : vector<16x32xf32> to vector<32xf32>
    %441 = vector.shape_cast %440 : vector<32xf32> to vector<1x32xf32>
    %cst_197 = arith.constant 1.000000e+00 : f32
    %442 = vector.broadcast %cst_197 : f32 to vector<1x1xf32>
    %443 = arith.maximumf %425, %442 : vector<1x1xf32>
    %444 = tpu.reciprocal %443 {approx = true} : vector<1x1xf32> -> vector<1x1xf32>
    %445 = vector.broadcast %444 : vector<1x1xf32> to vector<1x32xf32>
    %446 = arith.mulf %441, %445 : vector<1x32xf32>
    %c3_198 = arith.constant 3 : index
    %c0_199 = arith.constant 0 : index
    %447 = vector.load %arg9[%c3_198, %c0_199] : memref<4x32xf32, #tpu.memory_space<vmem>>, vector<1x32xf32>
    %448 = arith.addf %447, %439 : vector<1x32xf32>
    %c3_200 = arith.constant 3 : index
    %c0_201 = arith.constant 0 : index
    %449 = vector.load %arg9[%c3_200, %c0_201] : memref<4x32xf32, #tpu.memory_space<vmem>>, vector<1x32xf32>
    tpu.vector_store %arg9[%c3_200, %c0_201], %448 {strides = array<i32>} : memref<4x32xf32, #tpu.memory_space<vmem>>, vector<1x32xf32>,
    %c3_202 = arith.constant 3 : index
    %c0_203 = arith.constant 0 : index
    %450 = vector.load %arg10[%c3_202, %c0_203] : memref<4x32xf32, #tpu.memory_space<vmem>>, vector<1x32xf32>
    %451 = arith.addf %450, %446 : vector<1x32xf32>
    %c3_204 = arith.constant 3 : index
    %c0_205 = arith.constant 0 : index
    %452 = vector.load %arg10[%c3_204, %c0_205] : memref<4x32xf32, #tpu.memory_space<vmem>>, vector<1x32xf32>
    tpu.vector_store %arg10[%c3_204, %c0_205], %451 {strides = array<i32>} : memref<4x32xf32, #tpu.memory_space<vmem>>, vector<1x32xf32>,
    %cst_206 = arith.constant dense<0.000000e+00> : vector<64x1xf32>
    %453 = tpu.matmul %328, %321, %cst_206 {dimension_numbers = #tpu.dot_dimension_numbers<[1], [0], [0], [1], [0, 0, 1, 1], [], []>} : vector<64x64xf32>, vector<64x1xf32>, vector<64x1xf32> -> vector<64x1xf32>
    %454 = arith.addf %453, %321 : vector<64x1xf32>
    %cst_207 = arith.constant 0.000000e+00 : f32
    %455 = vector.broadcast %cst_207 : f32 to vector<64x1xf32>
    %456 = arith.cmpf ogt, %454, %455 : vector<64x1xf32>
    %cst_208 = arith.constant 9.99999996E-13 : f32
    %457 = vector.broadcast %cst_208 : f32 to vector<64x1xf32>
    %458 = arith.maximumf %454, %457 : vector<64x1xf32>
    %459 = math.rsqrt %458 : vector<64x1xf32>
    %cst_209 = arith.constant 0.000000e+00 : f32
    %460 = vector.broadcast %cst_209 : f32 to vector<64x1xf32>
    %461 = arith.select %456, %459, %460 : vector<64x1xi1>, vector<64x1xf32>
    %462 = arith.mulf %321, %461 : vector<64x1xf32>
    %463 = arith.mulf %462, %461 : vector<64x1xf32>
    %c2_210 = arith.constant 2 : index
    %c0_211 = arith.constant 0 : index
    %c0_212 = arith.constant 0 : index
    %464 = vector.load %arg5[%c2_210, %c0_211, %c0_212] : memref<7x32x32xf32, #tpu.memory_space<vmem>>, vector<1x32x32xf32>
    %465 = vector.shape_cast %464 : vector<1x32x32xf32> to vector<32x32xf32>
    %cst_213 = arith.constant dense<0.000000e+00> : vector<64x32xf32>
    %466 = tpu.matmul %326, %465, %cst_213 {dimension_numbers = #tpu.dot_dimension_numbers<[1], [0], [0], [1], [0, 0, 1, 1], [], []>} : vector<64x32xf32>, vector<32x32xf32>, vector<64x32xf32> -> vector<64x32xf32>
    %467 = vector.broadcast %461 : vector<64x1xf32> to vector<64x32xf32>
    %468 = arith.mulf %467, %466 : vector<64x32xf32>
    %cst_214 = arith.constant dense<0.000000e+00> : vector<64x32xf32>
    %469 = tpu.matmul %328, %468, %cst_214 {dimension_numbers = #tpu.dot_dimension_numbers<[1], [0], [0], [1], [0, 0, 1, 1], [], []>} : vector<64x64xf32>, vector<64x32xf32>, vector<64x32xf32> -> vector<64x32xf32>
    %470 = vector.broadcast %461 : vector<64x1xf32> to vector<64x32xf32>
    %471 = arith.mulf %470, %469 : vector<64x32xf32>
    %472 = vector.broadcast %463 : vector<64x1xf32> to vector<64x32xf32>
    %473 = arith.mulf %472, %466 : vector<64x32xf32>
    %474 = arith.addf %471, %473 : vector<64x32xf32>
    %c2_215 = arith.constant 2 : index
    %c0_216 = arith.constant 0 : index
    %475 = vector.load %arg7[%c2_215, %c0_216] : memref<8x32xf32, #tpu.memory_space<vmem>>, vector<1x32xf32>
    %476 = vector.broadcast %475 : vector<1x32xf32> to vector<64x32xf32>
    %477 = arith.addf %474, %476 : vector<64x32xf32>
    %cst_217 = arith.constant 0.000000e+00 : f32
    %478 = vector.broadcast %cst_217 : f32 to vector<64x32xf32>
    %479 = arith.maximumf %477, %478 : vector<64x32xf32>
    %c0_218 = arith.constant 0 : index
    %c2_219 = arith.constant 2 : index
    %480 = vector.load %arg6[%c0_218, %c2_219] : memref<32x4xf32, #tpu.memory_space<vmem>>, vector<32x1xf32>
    %cst_220 = arith.constant dense<0.000000e+00> : vector<64x1xf32>
    %481 = tpu.matmul %479, %480, %cst_220 {dimension_numbers = #tpu.dot_dimension_numbers<[1], [0], [0], [1], [0, 0, 1, 1], [], []>} : vector<64x32xf32>, vector<32x1xf32>, vector<64x1xf32> -> vector<64x1xf32>
    %482 = arith.mulf %461, %481 : vector<64x1xf32>
    %cst_221 = arith.constant dense<0.000000e+00> : vector<64x1xf32>
    %483 = tpu.matmul %328, %482, %cst_221 {dimension_numbers = #tpu.dot_dimension_numbers<[1], [0], [0], [1], [0, 0, 1, 1], [], []>} : vector<64x64xf32>, vector<64x1xf32>, vector<64x1xf32> -> vector<64x1xf32>
    %484 = arith.mulf %461, %483 : vector<64x1xf32>
    %485 = arith.mulf %463, %481 : vector<64x1xf32>
    %486 = arith.addf %484, %485 : vector<64x1xf32>
    %c3_222 = arith.constant 3 : index
    %c2_223 = arith.constant 2 : index
    %487 = vector.load %arg7[%c3_222, %c2_223] : memref<8x32xf32, #tpu.memory_space<vmem>>, vector<1x1xf32>
    %488 = vector.broadcast %487 : vector<1x1xf32> to vector<64x1xf32>
    %489 = arith.addf %486, %488 : vector<64x1xf32>
    %cst_224 = arith.constant 5.000000e-01 : f32
    %490 = vector.broadcast %cst_224 : f32 to vector<64x1xf32>
    %491 = arith.cmpf ogt, %321, %490 : vector<64x1xf32>
    %cst_225 = arith.constant -1.000000e+30 : f32
    %492 = vector.broadcast %cst_225 : f32 to vector<64x1xf32>
    %493 = arith.select %491, %489, %492 : vector<64x1xi1>, vector<64x1xf32>
    %494 = vector.broadcast %4 : vector<64x1xi32> to vector<64x64xi32>
    %495 = vector.broadcast %5 : vector<1x64xi32> to vector<64x64xi32>
    %496 = arith.cmpi eq, %494, %495 : vector<64x64xi32>
    %cst_226 = arith.constant 0.000000e+00 : f32
    %497 = vector.shape_cast %493 : vector<64x1xf32> to vector<64x1xf32>
    %498 = vector.broadcast %497 : vector<64x1xf32> to vector<64x64xf32>
    %499 = vector.broadcast %cst_226 : f32 to vector<64x64xf32>
    %500 = arith.select %496, %498, %499 : vector<64x64xi1>, vector<64x64xf32>
    %cst_227 = arith.constant dense<0.000000e+00> : vector<64xf32>
    %501 = vector.multi_reduction <add>, %500, %cst_227 [0] : vector<64x64xf32> to vector<64xf32>
    %502 = vector.shape_cast %501 : vector<64xf32> to vector<1x64xf32>
    %503 = vector.broadcast %3 : vector<1x64xf32> to vector<64x64xf32>
    %504 = vector.broadcast %2 : vector<64x1xf32> to vector<64x64xf32>
    %505 = arith.cmpf oeq, %503, %504 : vector<64x64xf32>
    %cst_228 = arith.constant 5.000000e-01 : f32
    %cst_229 = arith.constant -1.000000e+30 : f32
    %506 = arith.mulf %cst_228, %cst_229 : f32
    %507 = vector.broadcast %506 : f32 to vector<1x64xf32>
    %508 = arith.cmpf ogt, %502, %507 : vector<1x64xf32>
    %509 = vector.broadcast %508 : vector<1x64xi1> to vector<64x64xi1>
    %510 = arith.andi %505, %509 : vector<64x64xi1>
    %511 = vector.broadcast %502 : vector<1x64xf32> to vector<64x64xf32>
    %512 = vector.broadcast %489 : vector<64x1xf32> to vector<64x64xf32>
    %513 = arith.cmpf ogt, %511, %512 : vector<64x64xf32>
    %514 = vector.broadcast %502 : vector<1x64xf32> to vector<64x64xf32>
    %515 = vector.broadcast %489 : vector<64x1xf32> to vector<64x64xf32>
    %516 = arith.cmpf oeq, %514, %515 : vector<64x64xf32>
    %517 = vector.broadcast %5 : vector<1x64xi32> to vector<64x64xi32>
    %518 = vector.broadcast %4 : vector<64x1xi32> to vector<64x64xi32>
    %519 = arith.cmpi slt, %517, %518 : vector<64x64xi32>
    %520 = arith.andi %516, %519 : vector<64x64xi1>
    %521 = arith.ori %513, %520 : vector<64x64xi1>
    %522 = arith.andi %510, %521 : vector<64x64xi1>
    %cst_230 = arith.constant 1.000000e+00 : f32
    %cst_231 = arith.constant 0.000000e+00 : f32
    %523 = vector.broadcast %cst_230 : f32 to vector<64x64xf32>
    %524 = vector.broadcast %cst_231 : f32 to vector<64x64xf32>
    %525 = arith.select %522, %523, %524 : vector<64x64xi1>, vector<64x64xf32>
    %cst_232 = arith.constant dense<0.000000e+00> : vector<64xf32>
    %526 = vector.multi_reduction <add>, %525, %cst_232 [1] : vector<64x64xf32> to vector<64xf32>
    %527 = vector.shape_cast %526 : vector<64xf32> to vector<64x1xf32>
    %cst_233 = arith.constant 1.000000e+00 : f32
    %cst_234 = arith.constant 0.000000e+00 : f32
    %528 = vector.broadcast %cst_233 : f32 to vector<64x64xf32>
    %529 = vector.broadcast %cst_234 : f32 to vector<64x64xf32>
    %530 = arith.select %510, %528, %529 : vector<64x64xi1>, vector<64x64xf32>
    %cst_235 = arith.constant dense<0.000000e+00> : vector<64xf32>
    %531 = vector.multi_reduction <add>, %530, %cst_235 [1] : vector<64x64xf32> to vector<64xf32>
    %532 = vector.shape_cast %531 : vector<64xf32> to vector<64x1xf32>
    %cst_236 = arith.constant 5.000000e-01 : f32
    %533 = vector.broadcast %cst_236 : f32 to vector<64x1xf32>
    %534 = arith.mulf %533, %532 : vector<64x1xf32>
    %535 = math.ceil %534 : vector<64x1xf32>
    %536 = arith.cmpf olt, %527, %535 : vector<64x1xf32>
    %cst_237 = arith.constant 5.000000e-01 : f32
    %537 = vector.broadcast %cst_237 : f32 to vector<64x1xf32>
    %538 = arith.cmpf ogt, %321, %537 : vector<64x1xf32>
    %539 = arith.andi %536, %538 : vector<64x1xi1>
    %cst_238 = arith.constant 1.000000e+00 : f32
    %cst_239 = arith.constant 0.000000e+00 : f32
    %540 = vector.broadcast %cst_238 : f32 to vector<64x1xf32>
    %541 = vector.broadcast %cst_239 : f32 to vector<64x1xf32>
    %542 = arith.select %539, %540, %541 : vector<64x1xi1>, vector<64x1xf32>
    %543 = math.tanh %489 : vector<64x1xf32>
    %544 = vector.broadcast %543 : vector<64x1xf32> to vector<64x32xf32>
    %545 = arith.mulf %479, %544 : vector<64x32xf32>
    %546 = vector.broadcast %542 : vector<64x1xf32> to vector<64x32xf32>
    %547 = arith.mulf %545, %546 : vector<64x32xf32>
    %548 = vector.extract_strided_slice %547 {offsets = [0, 0], sizes = [16, 32], strides = [1, 1]} : vector<64x32xf32> to vector<16x32xf32>
    %549 = vector.extract_strided_slice %542 {offsets = [0, 0], sizes = [16, 1], strides = [1, 1]} : vector<64x1xf32> to vector<16x1xf32>
    %cst_240 = arith.constant dense<0.000000e+00> : vector<1xf32>
    %550 = vector.multi_reduction <add>, %549, %cst_240 [0] : vector<16x1xf32> to vector<1xf32>
    %551 = vector.shape_cast %550 : vector<1xf32> to vector<1x1xf32>
    %cst_241 = arith.constant 5.000000e-01 : f32
    %552 = vector.broadcast %cst_241 : f32 to vector<16x1xf32>
    %553 = arith.cmpf ogt, %549, %552 : vector<16x1xf32>
    %cst_242 = arith.constant -3.40282347E+38 : f32
    %554 = vector.shape_cast %553 : vector<16x1xi1> to vector<16x1xi1>
    %555 = vector.broadcast %554 : vector<16x1xi1> to vector<16x32xi1>
    %556 = vector.broadcast %cst_242 : f32 to vector<16x32xf32>
    %557 = arith.select %555, %548, %556 : vector<16x32xi1>, vector<16x32xf32>
    %cst_243 = arith.constant dense<0xFF800000> : vector<32xf32>
    %558 = vector.multi_reduction <maximumf>, %557, %cst_243 [0] : vector<16x32xf32> to vector<32xf32>
    %559 = vector.shape_cast %558 : vector<32xf32> to vector<1x32xf32>
    %cst_244 = arith.constant 5.000000e-01 : f32
    %560 = vector.broadcast %cst_244 : f32 to vector<1x1xf32>
    %561 = arith.cmpf ogt, %551, %560 : vector<1x1xf32>
    %cst_245 = arith.constant 0.000000e+00 : f32
    %562 = vector.shape_cast %561 : vector<1x1xi1> to vector<1x1xi1>
    %563 = vector.broadcast %562 : vector<1x1xi1> to vector<1x32xi1>
    %564 = vector.broadcast %cst_245 : f32 to vector<1x32xf32>
    %565 = arith.select %563, %559, %564 : vector<1x32xi1>, vector<1x32xf32>
    %cst_246 = arith.constant dense<0.000000e+00> : vector<32xf32>
    %566 = vector.multi_reduction <add>, %548, %cst_246 [0] : vector<16x32xf32> to vector<32xf32>
    %567 = vector.shape_cast %566 : vector<32xf32> to vector<1x32xf32>
    %cst_247 = arith.constant 1.000000e+00 : f32
    %568 = vector.broadcast %cst_247 : f32 to vector<1x1xf32>
    %569 = arith.maximumf %551, %568 : vector<1x1xf32>
    %570 = tpu.reciprocal %569 {approx = true} : vector<1x1xf32> -> vector<1x1xf32>
    %571 = vector.broadcast %570 : vector<1x1xf32> to vector<1x32xf32>
    %572 = arith.mulf %567, %571 : vector<1x32xf32>
    %c0_248 = arith.constant 0 : index
    %c0_249 = arith.constant 0 : index
    %573 = vector.load %arg9[%c0_248, %c0_249] : memref<4x32xf32, #tpu.memory_space<vmem>>, vector<1x32xf32>
    %574 = arith.addf %573, %565 : vector<1x32xf32>
    %c0_250 = arith.constant 0 : index
    %c0_251 = arith.constant 0 : index
    %575 = vector.load %arg9[%c0_250, %c0_251] : memref<4x32xf32, #tpu.memory_space<vmem>>, vector<1x32xf32>
    tpu.vector_store %arg9[%c0_250, %c0_251], %574 {strides = array<i32>} : memref<4x32xf32, #tpu.memory_space<vmem>>, vector<1x32xf32>,
    %c0_252 = arith.constant 0 : index
    %c0_253 = arith.constant 0 : index
    %576 = vector.load %arg10[%c0_252, %c0_253] : memref<4x32xf32, #tpu.memory_space<vmem>>, vector<1x32xf32>
    %577 = arith.addf %576, %572 : vector<1x32xf32>
    %c0_254 = arith.constant 0 : index
    %c0_255 = arith.constant 0 : index
    %578 = vector.load %arg10[%c0_254, %c0_255] : memref<4x32xf32, #tpu.memory_space<vmem>>, vector<1x32xf32>
    tpu.vector_store %arg10[%c0_254, %c0_255], %577 {strides = array<i32>} : memref<4x32xf32, #tpu.memory_space<vmem>>, vector<1x32xf32>,
    %579 = vector.extract_strided_slice %547 {offsets = [16, 0], sizes = [16, 32], strides = [1, 1]} : vector<64x32xf32> to vector<16x32xf32>
    %580 = vector.extract_strided_slice %542 {offsets = [16, 0], sizes = [16, 1], strides = [1, 1]} : vector<64x1xf32> to vector<16x1xf32>
    %cst_256 = arith.constant dense<0.000000e+00> : vector<1xf32>
    %581 = vector.multi_reduction <add>, %580, %cst_256 [0] : vector<16x1xf32> to vector<1xf32>
    %582 = vector.shape_cast %581 : vector<1xf32> to vector<1x1xf32>
    %cst_257 = arith.constant 5.000000e-01 : f32
    %583 = vector.broadcast %cst_257 : f32 to vector<16x1xf32>
    %584 = arith.cmpf ogt, %580, %583 : vector<16x1xf32>
    %cst_258 = arith.constant -3.40282347E+38 : f32
    %585 = vector.shape_cast %584 : vector<16x1xi1> to vector<16x1xi1>
    %586 = vector.broadcast %585 : vector<16x1xi1> to vector<16x32xi1>
    %587 = vector.broadcast %cst_258 : f32 to vector<16x32xf32>
    %588 = arith.select %586, %579, %587 : vector<16x32xi1>, vector<16x32xf32>
    %cst_259 = arith.constant dense<0xFF800000> : vector<32xf32>
    %589 = vector.multi_reduction <maximumf>, %588, %cst_259 [0] : vector<16x32xf32> to vector<32xf32>
    %590 = vector.shape_cast %589 : vector<32xf32> to vector<1x32xf32>
    %cst_260 = arith.constant 5.000000e-01 : f32
    %591 = vector.broadcast %cst_260 : f32 to vector<1x1xf32>
    %592 = arith.cmpf ogt, %582, %591 : vector<1x1xf32>
    %cst_261 = arith.constant 0.000000e+00 : f32
    %593 = vector.shape_cast %592 : vector<1x1xi1> to vector<1x1xi1>
    %594 = vector.broadcast %593 : vector<1x1xi1> to vector<1x32xi1>
    %595 = vector.broadcast %cst_261 : f32 to vector<1x32xf32>
    %596 = arith.select %594, %590, %595 : vector<1x32xi1>, vector<1x32xf32>
    %cst_262 = arith.constant dense<0.000000e+00> : vector<32xf32>
    %597 = vector.multi_reduction <add>, %579, %cst_262 [0] : vector<16x32xf32> to vector<32xf32>
    %598 = vector.shape_cast %597 : vector<32xf32> to vector<1x32xf32>
    %cst_263 = arith.constant 1.000000e+00 : f32
    %599 = vector.broadcast %cst_263 : f32 to vector<1x1xf32>
    %600 = arith.maximumf %582, %599 : vector<1x1xf32>
    %601 = tpu.reciprocal %600 {approx = true} : vector<1x1xf32> -> vector<1x1xf32>
    %602 = vector.broadcast %601 : vector<1x1xf32> to vector<1x32xf32>
    %603 = arith.mulf %598, %602 : vector<1x32xf32>
    %c1_264 = arith.constant 1 : index
    %c0_265 = arith.constant 0 : index
    %604 = vector.load %arg9[%c1_264, %c0_265] : memref<4x32xf32, #tpu.memory_space<vmem>>, vector<1x32xf32>
    %605 = arith.addf %604, %596 : vector<1x32xf32>
    %c1_266 = arith.constant 1 : index
    %c0_267 = arith.constant 0 : index
    %606 = vector.load %arg9[%c1_266, %c0_267] : memref<4x32xf32, #tpu.memory_space<vmem>>, vector<1x32xf32>
    tpu.vector_store %arg9[%c1_266, %c0_267], %605 {strides = array<i32>} : memref<4x32xf32, #tpu.memory_space<vmem>>, vector<1x32xf32>,
    %c1_268 = arith.constant 1 : index
    %c0_269 = arith.constant 0 : index
    %607 = vector.load %arg10[%c1_268, %c0_269] : memref<4x32xf32, #tpu.memory_space<vmem>>, vector<1x32xf32>
    %608 = arith.addf %607, %603 : vector<1x32xf32>
    %c1_270 = arith.constant 1 : index
    %c0_271 = arith.constant 0 : index
    %609 = vector.load %arg10[%c1_270, %c0_271] : memref<4x32xf32, #tpu.memory_space<vmem>>, vector<1x32xf32>
    tpu.vector_store %arg10[%c1_270, %c0_271], %608 {strides = array<i32>} : memref<4x32xf32, #tpu.memory_space<vmem>>, vector<1x32xf32>,
    %610 = vector.extract_strided_slice %547 {offsets = [32, 0], sizes = [16, 32], strides = [1, 1]} : vector<64x32xf32> to vector<16x32xf32>
    %611 = vector.extract_strided_slice %542 {offsets = [32, 0], sizes = [16, 1], strides = [1, 1]} : vector<64x1xf32> to vector<16x1xf32>
    %cst_272 = arith.constant dense<0.000000e+00> : vector<1xf32>
    %612 = vector.multi_reduction <add>, %611, %cst_272 [0] : vector<16x1xf32> to vector<1xf32>
    %613 = vector.shape_cast %612 : vector<1xf32> to vector<1x1xf32>
    %cst_273 = arith.constant 5.000000e-01 : f32
    %614 = vector.broadcast %cst_273 : f32 to vector<16x1xf32>
    %615 = arith.cmpf ogt, %611, %614 : vector<16x1xf32>
    %cst_274 = arith.constant -3.40282347E+38 : f32
    %616 = vector.shape_cast %615 : vector<16x1xi1> to vector<16x1xi1>
    %617 = vector.broadcast %616 : vector<16x1xi1> to vector<16x32xi1>
    %618 = vector.broadcast %cst_274 : f32 to vector<16x32xf32>
    %619 = arith.select %617, %610, %618 : vector<16x32xi1>, vector<16x32xf32>
    %cst_275 = arith.constant dense<0xFF800000> : vector<32xf32>
    %620 = vector.multi_reduction <maximumf>, %619, %cst_275 [0] : vector<16x32xf32> to vector<32xf32>
    %621 = vector.shape_cast %620 : vector<32xf32> to vector<1x32xf32>
    %cst_276 = arith.constant 5.000000e-01 : f32
    %622 = vector.broadcast %cst_276 : f32 to vector<1x1xf32>
    %623 = arith.cmpf ogt, %613, %622 : vector<1x1xf32>
    %cst_277 = arith.constant 0.000000e+00 : f32
    %624 = vector.shape_cast %623 : vector<1x1xi1> to vector<1x1xi1>
    %625 = vector.broadcast %624 : vector<1x1xi1> to vector<1x32xi1>
    %626 = vector.broadcast %cst_277 : f32 to vector<1x32xf32>
    %627 = arith.select %625, %621, %626 : vector<1x32xi1>, vector<1x32xf32>
    %cst_278 = arith.constant dense<0.000000e+00> : vector<32xf32>
    %628 = vector.multi_reduction <add>, %610, %cst_278 [0] : vector<16x32xf32> to vector<32xf32>
    %629 = vector.shape_cast %628 : vector<32xf32> to vector<1x32xf32>
    %cst_279 = arith.constant 1.000000e+00 : f32
    %630 = vector.broadcast %cst_279 : f32 to vector<1x1xf32>
    %631 = arith.maximumf %613, %630 : vector<1x1xf32>
    %632 = tpu.reciprocal %631 {approx = true} : vector<1x1xf32> -> vector<1x1xf32>
    %633 = vector.broadcast %632 : vector<1x1xf32> to vector<1x32xf32>
    %634 = arith.mulf %629, %633 : vector<1x32xf32>
    %c2_280 = arith.constant 2 : index
    %c0_281 = arith.constant 0 : index
    %635 = vector.load %arg9[%c2_280, %c0_281] : memref<4x32xf32, #tpu.memory_space<vmem>>, vector<1x32xf32>
    %636 = arith.addf %635, %627 : vector<1x32xf32>
    %c2_282 = arith.constant 2 : index
    %c0_283 = arith.constant 0 : index
    %637 = vector.load %arg9[%c2_282, %c0_283] : memref<4x32xf32, #tpu.memory_space<vmem>>, vector<1x32xf32>
    tpu.vector_store %arg9[%c2_282, %c0_283], %636 {strides = array<i32>} : memref<4x32xf32, #tpu.memory_space<vmem>>, vector<1x32xf32>,
    %c2_284 = arith.constant 2 : index
    %c0_285 = arith.constant 0 : index
    %638 = vector.load %arg10[%c2_284, %c0_285] : memref<4x32xf32, #tpu.memory_space<vmem>>, vector<1x32xf32>
    %639 = arith.addf %638, %634 : vector<1x32xf32>
    %c2_286 = arith.constant 2 : index
    %c0_287 = arith.constant 0 : index
    %640 = vector.load %arg10[%c2_286, %c0_287] : memref<4x32xf32, #tpu.memory_space<vmem>>, vector<1x32xf32>
    tpu.vector_store %arg10[%c2_286, %c0_287], %639 {strides = array<i32>} : memref<4x32xf32, #tpu.memory_space<vmem>>, vector<1x32xf32>,
    %641 = vector.extract_strided_slice %547 {offsets = [48, 0], sizes = [16, 32], strides = [1, 1]} : vector<64x32xf32> to vector<16x32xf32>
    %642 = vector.extract_strided_slice %542 {offsets = [48, 0], sizes = [16, 1], strides = [1, 1]} : vector<64x1xf32> to vector<16x1xf32>
    %cst_288 = arith.constant dense<0.000000e+00> : vector<1xf32>
    %643 = vector.multi_reduction <add>, %642, %cst_288 [0] : vector<16x1xf32> to vector<1xf32>
    %644 = vector.shape_cast %643 : vector<1xf32> to vector<1x1xf32>
    %cst_289 = arith.constant 5.000000e-01 : f32
    %645 = vector.broadcast %cst_289 : f32 to vector<16x1xf32>
    %646 = arith.cmpf ogt, %642, %645 : vector<16x1xf32>
    %cst_290 = arith.constant -3.40282347E+38 : f32
    %647 = vector.shape_cast %646 : vector<16x1xi1> to vector<16x1xi1>
    %648 = vector.broadcast %647 : vector<16x1xi1> to vector<16x32xi1>
    %649 = vector.broadcast %cst_290 : f32 to vector<16x32xf32>
    %650 = arith.select %648, %641, %649 : vector<16x32xi1>, vector<16x32xf32>
    %cst_291 = arith.constant dense<0xFF800000> : vector<32xf32>
    %651 = vector.multi_reduction <maximumf>, %650, %cst_291 [0] : vector<16x32xf32> to vector<32xf32>
    %652 = vector.shape_cast %651 : vector<32xf32> to vector<1x32xf32>
    %cst_292 = arith.constant 5.000000e-01 : f32
    %653 = vector.broadcast %cst_292 : f32 to vector<1x1xf32>
    %654 = arith.cmpf ogt, %644, %653 : vector<1x1xf32>
    %cst_293 = arith.constant 0.000000e+00 : f32
    %655 = vector.shape_cast %654 : vector<1x1xi1> to vector<1x1xi1>
    %656 = vector.broadcast %655 : vector<1x1xi1> to vector<1x32xi1>
    %657 = vector.broadcast %cst_293 : f32 to vector<1x32xf32>
    %658 = arith.select %656, %652, %657 : vector<1x32xi1>, vector<1x32xf32>
    %cst_294 = arith.constant dense<0.000000e+00> : vector<32xf32>
    %659 = vector.multi_reduction <add>, %641, %cst_294 [0] : vector<16x32xf32> to vector<32xf32>
    %660 = vector.shape_cast %659 : vector<32xf32> to vector<1x32xf32>
    %cst_295 = arith.constant 1.000000e+00 : f32
    %661 = vector.broadcast %cst_295 : f32 to vector<1x1xf32>
    %662 = arith.maximumf %644, %661 : vector<1x1xf32>
    %663 = tpu.reciprocal %662 {approx = true} : vector<1x1xf32> -> vector<1x1xf32>
    %664 = vector.broadcast %663 : vector<1x1xf32> to vector<1x32xf32>
    %665 = arith.mulf %660, %664 : vector<1x32xf32>
    %c3_296 = arith.constant 3 : index
    %c0_297 = arith.constant 0 : index
    %666 = vector.load %arg9[%c3_296, %c0_297] : memref<4x32xf32, #tpu.memory_space<vmem>>, vector<1x32xf32>
    %667 = arith.addf %666, %658 : vector<1x32xf32>
    %c3_298 = arith.constant 3 : index
    %c0_299 = arith.constant 0 : index
    %668 = vector.load %arg9[%c3_298, %c0_299] : memref<4x32xf32, #tpu.memory_space<vmem>>, vector<1x32xf32>
    tpu.vector_store %arg9[%c3_298, %c0_299], %667 {strides = array<i32>} : memref<4x32xf32, #tpu.memory_space<vmem>>, vector<1x32xf32>,
    %c3_300 = arith.constant 3 : index
    %c0_301 = arith.constant 0 : index
    %669 = vector.load %arg10[%c3_300, %c0_301] : memref<4x32xf32, #tpu.memory_space<vmem>>, vector<1x32xf32>
    %670 = arith.addf %669, %665 : vector<1x32xf32>
    %c3_302 = arith.constant 3 : index
    %c0_303 = arith.constant 0 : index
    %671 = vector.load %arg10[%c3_302, %c0_303] : memref<4x32xf32, #tpu.memory_space<vmem>>, vector<1x32xf32>
    tpu.vector_store %arg10[%c3_302, %c0_303], %670 {strides = array<i32>} : memref<4x32xf32, #tpu.memory_space<vmem>>, vector<1x32xf32>,
    %c0_304 = arith.constant 0 : index
    %c0_305 = arith.constant 0 : index
    %672 = vector.load %arg9[%c0_304, %c0_305] : memref<4x32xf32, #tpu.memory_space<vmem>>, vector<4x32xf32>
    %c3_306 = arith.constant 3 : index
    %c0_307 = arith.constant 0 : index
    %c0_308 = arith.constant 0 : index
    %673 = vector.load %arg5[%c3_306, %c0_307, %c0_308] : memref<7x32x32xf32, #tpu.memory_space<vmem>>, vector<1x32x32xf32>
    %674 = vector.shape_cast %673 : vector<1x32x32xf32> to vector<32x32xf32>
    %cst_309 = arith.constant dense<0.000000e+00> : vector<4x32xf32>
    %675 = tpu.matmul %672, %674, %cst_309 {dimension_numbers = #tpu.dot_dimension_numbers<[1], [0], [0], [1], [0, 0, 1, 1], [], []>} : vector<4x32xf32>, vector<32x32xf32>, vector<4x32xf32> -> vector<4x32xf32>
    %c0_310 = arith.constant 0 : index
    %c0_311 = arith.constant 0 : index
    %676 = vector.load %arg10[%c0_310, %c0_311] : memref<4x32xf32, #tpu.memory_space<vmem>>, vector<4x32xf32>
    %c4 = arith.constant 4 : index
    %c0_312 = arith.constant 0 : index
    %c0_313 = arith.constant 0 : index
    %677 = vector.load %arg5[%c4, %c0_312, %c0_313] : memref<7x32x32xf32, #tpu.memory_space<vmem>>, vector<1x32x32xf32>
    %678 = vector.shape_cast %677 : vector<1x32x32xf32> to vector<32x32xf32>
    %cst_314 = arith.constant dense<0.000000e+00> : vector<4x32xf32>
    %679 = tpu.matmul %676, %678, %cst_314 {dimension_numbers = #tpu.dot_dimension_numbers<[1], [0], [0], [1], [0, 0, 1, 1], [], []>} : vector<4x32xf32>, vector<32x32xf32>, vector<4x32xf32> -> vector<4x32xf32>
    %680 = arith.addf %675, %679 : vector<4x32xf32>
    %c4_315 = arith.constant 4 : index
    %c0_316 = arith.constant 0 : index
    %681 = vector.load %arg7[%c4_315, %c0_316] : memref<8x32xf32, #tpu.memory_space<vmem>>, vector<1x32xf32>
    %682 = vector.broadcast %681 : vector<1x32xf32> to vector<4x32xf32>
    %683 = arith.addf %680, %682 : vector<4x32xf32>
    %cst_317 = arith.constant 0.000000e+00 : f32
    %684 = vector.broadcast %cst_317 : f32 to vector<4x32xf32>
    %685 = arith.maximumf %683, %684 : vector<4x32xf32>
    %c5 = arith.constant 5 : index
    %c0_318 = arith.constant 0 : index
    %c0_319 = arith.constant 0 : index
    %686 = vector.load %arg5[%c5, %c0_318, %c0_319] : memref<7x32x32xf32, #tpu.memory_space<vmem>>, vector<1x32x32xf32>
    %687 = vector.shape_cast %686 : vector<1x32x32xf32> to vector<32x32xf32>
    %cst_320 = arith.constant dense<0.000000e+00> : vector<4x32xf32>
    %688 = tpu.matmul %685, %687, %cst_320 {dimension_numbers = #tpu.dot_dimension_numbers<[1], [0], [0], [1], [0, 0, 1, 1], [], []>} : vector<4x32xf32>, vector<32x32xf32>, vector<4x32xf32> -> vector<4x32xf32>
    %c5_321 = arith.constant 5 : index
    %c0_322 = arith.constant 0 : index
    %689 = vector.load %arg7[%c5_321, %c0_322] : memref<8x32xf32, #tpu.memory_space<vmem>>, vector<1x32xf32>
    %690 = vector.broadcast %689 : vector<1x32xf32> to vector<4x32xf32>
    %691 = arith.addf %688, %690 : vector<4x32xf32>
    %cst_323 = arith.constant 0.000000e+00 : f32
    %692 = vector.broadcast %cst_323 : f32 to vector<4x32xf32>
    %693 = arith.maximumf %691, %692 : vector<4x32xf32>
    %c6 = arith.constant 6 : index
    %c0_324 = arith.constant 0 : index
    %c0_325 = arith.constant 0 : index
    %694 = vector.load %arg5[%c6, %c0_324, %c0_325] : memref<7x32x32xf32, #tpu.memory_space<vmem>>, vector<1x32x32xf32>
    %695 = vector.shape_cast %694 : vector<1x32x32xf32> to vector<32x32xf32>
    %cst_326 = arith.constant dense<0.000000e+00> : vector<4x32xf32>
    %696 = tpu.matmul %693, %695, %cst_326 {dimension_numbers = #tpu.dot_dimension_numbers<[1], [0], [0], [1], [0, 0, 1, 1], [], []>} : vector<4x32xf32>, vector<32x32xf32>, vector<4x32xf32> -> vector<4x32xf32>
    %c6_327 = arith.constant 6 : index
    %c0_328 = arith.constant 0 : index
    %697 = vector.load %arg7[%c6_327, %c0_328] : memref<8x32xf32, #tpu.memory_space<vmem>>, vector<1x32xf32>
    %698 = vector.broadcast %697 : vector<1x32xf32> to vector<4x32xf32>
    %699 = arith.addf %696, %698 : vector<4x32xf32>
    %700 = vector.extract_strided_slice %699 {offsets = [0, 0], sizes = [4, 4], strides = [1, 1]} : vector<4x32xf32> to vector<4x4xf32>
    %cst_329 = arith.constant dense<0xFF800000> : vector<4xf32>
    %701 = vector.multi_reduction <maximumf>, %700, %cst_329 [1] : vector<4x4xf32> to vector<4xf32>
    %702 = vector.shape_cast %701 : vector<4xf32> to vector<4x1xf32>
    %703 = vector.broadcast %702 : vector<4x1xf32> to vector<4x4xf32>
    %704 = arith.subf %700, %703 : vector<4x4xf32>
    %705 = math.exp %704 : vector<4x4xf32>
    %cst_330 = arith.constant dense<0.000000e+00> : vector<4xf32>
    %706 = vector.multi_reduction <add>, %705, %cst_330 [1] : vector<4x4xf32> to vector<4xf32>
    %707 = vector.shape_cast %706 : vector<4xf32> to vector<4x1xf32>
    %708 = math.log %707 : vector<4x1xf32>
    %709 = vector.broadcast %708 : vector<4x1xf32> to vector<4x4xf32>
    %710 = arith.subf %704, %709 : vector<4x4xf32>
    %cst_331 = arith.constant 0.000000e+00 : f32
    %711 = vector.broadcast %cst_331 : f32 to vector<8x128xf32>
    %c0_332 = arith.constant 0 : index
    %c0_333 = arith.constant 0 : index
    %712 = vector.load %arg8[%c0_332, %c0_333] : memref<8x128xf32, #tpu.memory_space<vmem>>, vector<8x128xf32>
    tpu.vector_store %arg8[%c0_332, %c0_333], %711 {strides = array<i32>} : memref<8x128xf32, #tpu.memory_space<vmem>>, vector<8x128xf32>,
    %c0_334 = arith.constant 0 : index
    %c0_335 = arith.constant 0 : index
    %713 = vector.load %arg8[%c0_334, %c0_335] : memref<8x128xf32, #tpu.memory_space<vmem>>, vector<4x4xf32>
    tpu.vector_store %arg8[%c0_334, %c0_335], %710 {strides = array<i32>} : memref<8x128xf32, #tpu.memory_space<vmem>>, vector<4x4xf32>,
    return
  }
  func.func @transform_0(%arg0: i32) -> (i32, i32) {
    %c0_i32 = arith.constant 0 : i32
    %c0_i32_0 = arith.constant 0 : i32
    %c0_i32_1 = arith.constant 0 : i32
    return %c0_i32, %c0_i32_0 : i32, i32
  }
  func.func @transform_1(%arg0: i32) -> (i32, i32) {
    %c0_i32 = arith.constant 0 : i32
    %c0_i32_0 = arith.constant 0 : i32
    %c0_i32_1 = arith.constant 0 : i32
    return %c0_i32, %c0_i32_0 : i32, i32
  }
  func.func @transform_2(%arg0: i32) -> (i32, i32) {
    %c0_i32 = arith.constant 0 : i32
    %c0_i32_0 = arith.constant 0 : i32
    %c0_i32_1 = arith.constant 0 : i32
    return %c0_i32, %c0_i32_0 : i32, i32
  }
  func.func @transform_3(%arg0: i32) -> (i32, i32) {
    %c0_i32 = arith.constant 0 : i32
    %c0_i32_0 = arith.constant 0 : i32
    %c0_i32_1 = arith.constant 0 : i32
    return %c0_i32, %c0_i32_0 : i32, i32
  }
  func.func @transform_4(%arg0: i32) -> (i32, i32, i32) {
    %c0_i32 = arith.constant 0 : i32
    %c0_i32_0 = arith.constant 0 : i32
    %c0_i32_1 = arith.constant 0 : i32
    %c0_i32_2 = arith.constant 0 : i32
    return %c0_i32, %c0_i32_0, %c0_i32_1 : i32, i32, i32
  }
  func.func @transform_5(%arg0: i32) -> (i32, i32) {
    %c0_i32 = arith.constant 0 : i32
    %c0_i32_0 = arith.constant 0 : i32
    %c0_i32_1 = arith.constant 0 : i32
    return %c0_i32, %c0_i32_0 : i32, i32
  }
  func.func @transform_6(%arg0: i32) -> (i32, i32) {
    %c0_i32 = arith.constant 0 : i32
    %c0_i32_0 = arith.constant 0 : i32
    %c0_i32_1 = arith.constant 0 : i32
    return %c0_i32, %c0_i32_0 : i32, i32
  }
  func.func @transform_7(%arg0: i32) -> (i32, i32) {
    %c0_i32 = arith.constant 0 : i32
    %c0_i32_0 = arith.constant 0 : i32
    %c0_i32_1 = arith.constant 0 : i32
    return %c0_i32, %c0_i32_0 : i32, i32
  }
}

</mosaic_0001>

<bundles_post_ra>
// kernel: sag_learner_forward.1
= control target key start
LH: loop header
LB: loop body
LE: loop exit
PB: predicated region body
PF: predicated region fallthrough
CT: control target
= control target key end

     0   :  { %vm8452_vm0 = vcmask 523264   ;;  %v8465_v0 = vmov 1.0|1.0   ;;  %vm8450_vm1 = vcmask 261120   ;;  %v5789_v23 = vmov 0   ;;  %s5791_s26 = smov 127   ;;  %s8427_s0 = inlined_call_operand.vmem [shape: f32[64,64], index: 0, kind: input, shape index: {}]   ;;  %s8428_s4 = inlined_call_operand.vmem [shape: f32[7,32,32], index: 4, kind: input, shape index: {}]   ;;  %s8429_s1 = inlined_call_operand.vmem [shape: f32[64,32], index: 1, kind: input, shape index: {}]   ;;  %s8430_s5 = inlined_call_operand.vmem [shape: f32[32,4], index: 5, kind: input, shape index: {}]   ;;  %s8431_s6 = inlined_call_operand.vmem [shape: f32[8,32], index: 6, kind: input, shape index: {}]   ;;  %s8432_s2 = inlined_call_operand.vmem [shape: f32[64,1], index: 2, kind: input, shape index: {}]   ;;  %s8433_s3 = inlined_call_operand.vmem [shape: f32[1,64], index: 3, kind: input, shape index: {}]   ;;  %s8434_s7 = inlined_call_operand.vmem [shape: f32[8,128], index: 7, kind: output, shape index: {}]  }
   0x1   :  { %5419 = vmatprep.subr.bf16.mxu0 %v8465_v0  ;;  %v5839_v1 = vld [vmem:[%s8427_s0] sm:$0xff]  ;;  %v236_v3 = vld [vmem:[%s8428_s4 + $0x8] sm:$0xff]  ;;  %v237_v4 = vld [vmem:[%s8428_s4 + $0x10] sm:$0xff]  ;;  %5634 = vset.pattern.permute.xlu0 %v5789_v23  ;;  %s5792_s21 = smov 126  }
   0x2   :  { %5420 = vmatpush3.bf16.msra.mxu0 %v8465_v0  ;;  %5019 = vmatprep.mubr.msk.f32.mxu0 %vm8452_vm0, %v5839_v1  ;;  %v235_v2 = vld [vmem:[%s8428_s4] sm:$0xff]  ;;  %v238_v5 = vld [vmem:[%s8428_s4 + $0x18] sm:$0xff]  ;;  %v35_v9 = vld [vmem:[%s8429_s1 + $0x8] sm:$0xff] }
   0x3   :  { %5421 = vmatprep.subr.bf16.mxu0 %v8465_v0  ;;  %v5427_v6 = vpack.c.bf16 %v236_v3, %v235_v2  ;;  %v5431_v7 = vpack.c.bf16 %v238_v5, %v237_v4  ;;  %v34_v8 = vld [vmem:[%s8429_s1] sm:$0xff]  ;;  %v36_v10 = vld [vmem:[%s8429_s1 + $0x10] sm:$0xff]  ;;  %v5875_v11 = vld [vmem:[%s8427_s0 + $0x8] sm:$0xff]  ;;  %5635 = vset.pattern.permute.xlu1 %v5789_v23 }
   0x4   :  { %5039 = vmatprep.mubr.msk.f32.mxu1 %vm8450_vm1, %v34_v8  ;;  %v5880_v12 = vld [vmem:[%s8427_s0 + $0x10] sm:$0xff]  ;;  %v37_v13 = vld [vmem:[%s8429_s1 + $0x18] sm:$0xff]  ;;  %v38_v14 = vld [vmem:[%s8429_s1 + $0x20] sm:$0xff] }
   0x5   :  { %5428 = vmatprep.subr.bf16.mxu1 %v5427_v6  ;;  %v5897_v15 = vld [vmem:[%s8427_s0 + $0x18] sm:$0xff]  ;;  %v5902_v16 = vld [vmem:[%s8427_s0 + $0x20] sm:$0xff]  ;;  %v39_v17 = vld [vmem:[%s8429_s1 + $0x28] sm:$0xff] }
   0x6   :  { %5422 = vmatpush3.bf16.msra.mxu0 %v8465_v0  ;;  %5430 = vmatpush3.bf16.msra.mxu1 %v5427_v6  ;;  %v40_v18 = vld [vmem:[%s8429_s1 + $0x30] sm:$0xff]  ;;  %v5919_v19 = vld [vmem:[%s8427_s0 + $0x28] sm:$0xff]  ;;  %v41_v21 = vld [vmem:[%s8429_s1 + $0x38] sm:$0xff] }
   0x7   :  { %5423 = vmatprep.subr.bf16.mxu0 %v8465_v0  ;;  %5432 = vmatprep.subr.bf16.mxu1 %v5431_v7  ;;  %v5924_v20 = vld [vmem:[%s8427_s0 + $0x30] sm:$0xff]  ;;  %v5938_v22 = vld [vmem:[%s8427_s0 + $0x38] sm:$0xff] }
   0xa   :  { %5424 = vmatpush3.bf16.msra.mxu0 %v8465_v0  ;;  %5434 = vmatpush3.bf16.msra.mxu1 %v5431_v7 }
   0xb   :  { %5425 = vmatprep.subr.bf16.mxu0 %v8465_v0 }
   0xd   :  { %5040 = vmatmul.mubr.msk.f32.vlgmr.msra.gmra.mrb[0].mxu1 %vm8450_vm1, %v35_v9 }
   0xe   :  { %5426 = vmatpush3.bf16.msra.mxu0 %v8465_v0  ;;  %5042 = vmatprep.mubr.msk.f32.mxu1 %vm8450_vm1, %v36_v10 }
  0x11   :  { %5020 = vmatmul.mubr.msk.f32.vlgmr.msra.gmra.mrb[0].mxu0 %vm8452_vm0, %v5875_v11  ;;  %5043 = vmatmul.mubr.msk.f32.gmra.mrb[2].mxu1 %vm8450_vm1, %v37_v13 }
  0x12   :  { %5022 = vmatprep.mubr.msk.f32.mxu0 %vm8452_vm0, %v5880_v12  ;;  %5045 = vmatprep.mubr.msk.f32.mxu1 %vm8450_vm1, %v38_v14 }
  0x15   :  { %5023 = vmatmul.mubr.msk.f32.gmra.mrb[2].mxu0 %vm8452_vm0, %v5897_v15  ;;  %5046 = vmatmul.mubr.msk.f32.gmra.mrb[4].mxu1 %vm8450_vm1, %v39_v17 }
  0x16   :  { %5025 = vmatprep.mubr.msk.f32.mxu0 %vm8452_vm0, %v5902_v16  ;;  %5048 = vmatprep.mubr.msk.f32.mxu1 %vm8450_vm1, %v40_v18 }
  0x19   :  { %5026 = vmatmul.mubr.msk.f32.gmra.mrb[4].mxu0 %vm8452_vm0, %v5919_v19  ;;  %5049 = vmatmul.mubr.msk.f32.gmra.mrb[6].mxu1 %vm8450_vm1, %v41_v21 }
  0x1a   :  { %5028 = vmatprep.mubr.msk.f32.mxu0 %vm8452_vm0, %v5924_v20  ;;  %5067 = vmatprep.mubr.msk.f32.mxu1 %vm8452_vm0, %v5839_v1 }
  0x1d   :  { %5029 = vmatmul.mubr.msk.f32.gmra.mrb[6].mxu0 %vm8452_vm0, %v5938_v22 }
  0xe0   :  { %v5945_v24 = vpop.f32.mrb[0].mxu1 }
  0xe1   :  { %v5947_v25 = vpop.f32.mrb[1].mxu1 }
  0xe4   :  { %v5021_v26 = vpop.f32.mrb[0].mxu0  ;;  %v5952_v53 = vpop.f32.mrb[2].mxu1 }
  0xe5   :  { %v162_v27 = vadd.f32 1.0, %v5021_v26  ;;  %v156_v28 = vpop.f32.mrb[1].mxu0  ;;  %v5960_v58 = vpop.f32.mrb[3].mxu1 }
  0xe6   :  { %v157_v29 = vadd.f32 1.0, %v156_v28  ;;  %v608_v28 = vld [vmem:[%s8430_s5 + $0x8] sm:$0xff] }
  0xe7   :  { %v204_v30 = vmax.f32 %v162_v27, 1e-12  ;;  %vm196_vm4 = vcmp.gt.f32.partialorder %v162_v27, 0.0  ;;  %v607_v27 = vld [vmem:[%s8430_s5] sm:$0xff] }
  0xe8   :  { %v203_v31 = vmax.f32 %v157_v29, 1e-12  ;;  %v5024_v32 = vpop.f32.mrb[2].mxu0  ;;  %vm195_vm2 = vcmp.gt.f32.partialorder %v157_v29, 0.0  ;;  %v5962_v59 = vpop.f32.mrb[4].mxu1  ;;  %v5451_v29 = vpack.c.bf16 %v608_v28, %v607_v27 }
  0xe9   :  { %v172_v33 = vadd.f32 1.0, %v5024_v32  ;;  %v166_v34 = vpop.f32.mrb[3].mxu0  ;;  %v5969_v2 = vpop.f32.mrb[5].mxu1 }
  0xea   :  { %5656 = vrsqrt.f32 %v203_v31  ;;  %v167_v35 = vadd.f32 1.0, %v166_v34  ;;  %5452 = vmatprep.subr.bf16.mxu0 %v5451_v29 }
  0xeb   :  { %v206_v36 = vmax.f32 %v172_v33, 1e-12  ;;  %5658 = vrsqrt.f32 %v204_v30  ;;  %vm198_vm3 = vcmp.gt.f32.partialorder %v172_v33, 0.0  ;;  %5454 = vmatpush3.bf16.msra.mxu0 %v5451_v29 }
  0xec   :  { %v205_v37 = vmax.f32 %v167_v35, 1e-12  ;;  %v5027_v38 = vpop.f32.mrb[4].mxu0  ;;  %vm197_vm5 = vcmp.gt.f32.partialorder %v167_v35, 0.0  ;;  %v5972_v3 = vpop.f32.mrb[6].mxu1 }
  0xed   :  { %5660 = vrsqrt.f32 %v206_v36  ;;  %v182_v39 = vadd.f32 1.0, %v5027_v38  ;;  %v176_v40 = vpop.f32.mrb[5].mxu0  ;;  %v5979_v8 = vpop.f32.mrb[7].mxu1 }
  0xee   :  { %v177_v41 = vadd.f32 1.0, %v176_v40  ;;  %5662 = vrsqrt.f32 %v205_v37 }
  0xef   :  { %v208_v42 = vmax.f32 %v182_v39, 1e-12  ;;  %vm200_vm7 = vcmp.gt.f32.partialorder %v182_v39, 0.0 }
  0xf0   :  { %v207_v43 = vmax.f32 %v177_v41, 1e-12  ;;  %v5030_v44 = vpop.f32.mrb[6].mxu0  ;;  %vm199_vm6 = vcmp.gt.f32.partialorder %v177_v41, 0.0 }
  0xf1   :  { %v192_v45 = vadd.f32 1.0, %v5030_v44  ;;  %v186_v46 = vpop.f32.mrb[7].mxu0 }
  0xf2   :  { %5664 = vrsqrt.f32 %v207_v43  ;;  %v187_v47 = vadd.f32 1.0, %v186_v46 }
  0xf3   :  { %5666 = vrsqrt.f32 %v208_v42  ;;  %v210_v48 = vmax.f32 %v192_v45, 1e-12  ;;  %vm202_vm9 = vcmp.gt.f32.partialorder %v192_v45, 0.0 }
  0xf4   :  { %v5657_v49 = vpop.eup %5656  ;;  %v209_v50 = vmax.f32 %v187_v47, 1e-12  ;;  %vm201_vm8 = vcmp.gt.f32.partialorder %v187_v47, 0.0 }
  0xf5   :  { %v5949_v51 = vsel %vm195_vm2, %v5657_v49, 0.0  ;;  %v5659_v52 = vpop.eup %5658 }
  0xf6   :  { %5668 = vrsqrt.f32 %v209_v50  ;;  %371 = vperm.xlu0 %5634, %v5949_v51   ;;  %v5957_v57 = vsel %vm196_vm4, %v5659_v52, 0.0  ;;  %v5986_v10 = vmul.f32 %v5949_v51, %v5949_v51  ;;  %v609_v50 = vld [vmem:[%s8430_s5 + $0x10] sm:$0xff]  ;;  %v610_v52 = vld [vmem:[%s8430_s5 + $0x18] sm:$0xff] }
  0xf7   :  { %v5661_v54 = vpop.eup %5660  ;;  %5670 = vrsqrt.f32 %v210_v48  ;;  %v5992_v13 = vmul.f32 %v5957_v57, %v5957_v57 }
  0xf8   :  { %v5954_v55 = vsel %vm198_vm3, %v5661_v54, 0.0  ;;  %v5663_v56 = vpop.eup %5662  ;;  %v5455_v54 = vpack.c.bf16 %v610_v52, %v609_v50 }
  0xf9   :  { %386 = vperm.xlu1 %5635, %v5954_v55   ;;  %v5964_v61 = vsel %vm197_vm5, %v5663_v56, 0.0  ;;  %v6002_v17 = vmul.f32 %v5954_v55, %v5954_v55 }
  0xfa   :  { %376 = vperm.xlu0 %5634, %v5957_v57   ;;  %v5996_v14 = vmul.f32 %v5964_v61, %v5964_v61  ;;  %5456 = vmatprep.subr.bf16.mxu0 %v5455_v54 }
  0xfb   :  { %5458 = vmatpush3.bf16.msra.mxu0 %v5455_v54 }
  0xfc   :  { %v5665_v60 = vpop.eup %5664 }
  0xfd   :  { %v5667_v62 = vpop.eup %5666  ;;  %381 = vperm.xlu1 %5635, %v5964_v61   ;;  %v5967_v63 = vsel %vm199_vm6, %v5665_v60, 0.0 }
  0xfe   :  { %391 = vperm.xlu0 %5634, %v5967_v63   ;;  %v5974_v5 = vsel %vm200_vm7, %v5667_v62, 0.0  ;;  %v6006_v18 = vmul.f32 %v5967_v63, %v5967_v63 }
  0xff   :  { %v6012_v21 = vmul.f32 %v5974_v5, %v5974_v5 }
 0x100   :  { %v5669_v4 = vpop.eup %5668 }
 0x101   :  { %v5671_v6 = vpop.eup %5670  ;;  %396 = vperm.xlu1 %5635, %v5974_v5   ;;  %v5977_v7 = vsel %vm201_vm8, %v5669_v4, 0.0 }
 0x102   :  { %401 = vperm.xlu0 %5634, %v5977_v7   ;;  %v5982_v9 = vsel %vm202_vm9, %v5671_v6, 0.0  ;;  %v6016_v23 = vmul.f32 %v5977_v7, %v5977_v7 }
 0x103   :  { %v6022_v26 = vmul.f32 %v5982_v9, %v5982_v9 }
 0x105   :  { %406 = vperm.xlu1 %5635, %v5982_v9  }
 0x106   :  { %532 = vperm.xlu0 %5634, %v5986_v10  }
 0x109   :  { %537 = vperm.xlu1 %5635, %v5992_v13  }
 0x10a   :  { %542 = vperm.xlu0 %5634, %v5996_v14  }
 0x10d   :  { %547 = vperm.xlu1 %5635, %v6002_v17  }
 0x10e   :  { %552 = vperm.xlu0 %5634, %v6006_v18  }
 0x111   :  { %557 = vperm.xlu1 %5635, %v6012_v21  }
 0x112   :  { %562 = vperm.xlu0 %5634, %v6016_v23  }
 0x115   :  { %567 = vperm.xlu1 %5635, %v6022_v26  }
 0x175   :  { %v372_v30 = vpop.permute.xlu0 %371 }
 0x176   :  { %v409_v33 = vmul.f32 %v372_v30, %v5947_v25 }
 0x178   :  { %v387_v31 = vpop.permute.xlu1 %386 }
 0x179   :  { %v377_v32 = vpop.permute.xlu0 %376  ;;  %v412_v37 = vmul.f32 %v5952_v53, %v387_v31 }
 0x17a   :  { %v410_v34 = vmul.f32 %v5945_v24, %v377_v32 }
 0x17c   :  { %v382_v35 = vpop.permute.xlu1 %381  ;;  %v5435_v36 = vpack.c.bf16 %v410_v34, %v409_v33  ;;  %v4617_v33 = vld [vmem:[%s8431_s6] ss:$0 sm:$0xff] }
 0x17d   :  { %v411_v38 = vmul.f32 %v382_v35, %v5960_v58  ;;  %v6035_v39 = vpop.permute.xlu0 %391 }
 0x17e   :  { %5436 = vmatprep.subr.bf16.mxu1 %v5435_v36  ;;  %v413_v42 = vmul.f32 %v6035_v39, %v5969_v2 }
 0x17f   :  { %5438 = vmatpush3.bf16.msra.mxu1 %v5435_v36  ;;  %v5439_v40 = vpack.c.bf16 %v412_v37, %v411_v38 }
 0x180   :  { %v397_v41 = vpop.permute.xlu1 %396 }
 0x181   :  { %v414_v43 = vmul.f32 %v5962_v59, %v397_v41  ;;  %5440 = vmatprep.subr.bf16.mxu1 %v5439_v40  ;;  %v6040_v44 = vpop.permute.xlu0 %401 }
 0x182   :  { %v415_v47 = vmul.f32 %v6040_v44, %v5979_v8 }
 0x183   :  { %5442 = vmatpush3.bf16.msra.mxu1 %v5439_v40  ;;  %v5443_v45 = vpack.c.bf16 %v414_v43, %v413_v42 }
 0x184   :  { %v6042_v46 = vpop.permute.xlu1 %406 }
 0x185   :  { %v416_v48 = vmul.f32 %v5972_v3, %v6042_v46  ;;  %5444 = vmatprep.subr.bf16.mxu1 %v5443_v45  ;;  %v533_v60 = vpop.permute.xlu0 %532 }
 0x186   :  { %v570_v29 = vmul.f32 %v533_v60, %v5947_v25 }
 0x187   :  { %5446 = vmatpush3.bf16.msra.mxu1 %v5443_v45  ;;  %v5447_v49 = vpack.c.bf16 %v416_v48, %v415_v47 }
 0x188   :  { %v538_v56 = vpop.permute.xlu1 %537 }
 0x189   :  { %5448 = vmatprep.subr.bf16.mxu1 %v5447_v49  ;;  %v543_v4 = vpop.permute.xlu0 %542  ;;  %v571_v27 = vmul.f32 %v5945_v24, %v538_v56 }
 0x18b   :  { %5450 = vmatpush3.bf16.msra.mxu1 %v5447_v49 }
 0x18c   :  { %v548_v62 = vpop.permute.xlu1 %547 }
 0x18d   :  { %v573_v42 = vmul.f32 %v5952_v53, %v548_v62  ;;  %v553_v43 = vpop.permute.xlu0 %552 }
 0x18e   :  { %5068 = vmatmul.mubr.msk.f32.vlgmr.msra.gmra.mrb[8].mxu1 %vm8452_vm0, %v5875_v11 }
 0x18f   :  { %5070 = vmatprep.mubr.msk.f32.mxu1 %vm8452_vm0, %v5880_v12 }
 0x190   :  { %v558_v37 = vpop.permute.xlu1 %557 }
 0x191   :  { %v575_v54 = vmul.f32 %v5962_v59, %v558_v37 }
 0x192   :  { %5071 = vmatmul.mubr.msk.f32.gmra.mrb[10].mxu1 %vm8452_vm0, %v5897_v15 }
 0x193   :  { %5073 = vmatprep.mubr.msk.f32.mxu1 %vm8452_vm0, %v5902_v16 }
 0x196   :  { %5074 = vmatmul.mubr.msk.f32.gmra.mrb[12].mxu1 %vm8452_vm0, %v5919_v19 }
 0x197   :  { %5076 = vmatprep.mubr.msk.f32.mxu1 %vm8452_vm0, %v5924_v20 }
 0x19a   :  { %5077 = vmatmul.mubr.msk.f32.gmra.mrb[14].mxu1 %vm8452_vm0, %v5938_v22 }
 0x19b   :  { %5115 = vmatprep.mubr.msk.f32.mxu1 %vm8452_vm0, %v5839_v1 }
 0x261   :  { %v5069_v6 = vpop.f32.mrb[8].mxu1 }
 0x262   :  { %v523_v28 = vmul.f32 %v5069_v6, %v377_v32  ;;  %v483_v1 = vpop.f32.mrb[9].mxu1  ;;  %v572_v32 = vmul.f32 %v543_v4, %v5960_v58  ;;  %v568_v6 = vpop.permute.xlu1 %567 }
 0x263   :  { %v522_v34 = vmul.f32 %v483_v1, %v372_v30  ;;  %v563_v4 = vpop.permute.xlu0 %562 }
 0x264   :  { %v579_v36 = vadd.f32 %v571_v27, %v523_v28 }
 0x265   :  { %v578_v38 = vadd.f32 %v570_v29, %v522_v34  ;;  %v5072_v40 = vpop.f32.mrb[10].mxu1 }
 0x266   :  { %v6076_v45 = vadd.f32 %v4617_v33, %v579_v36  ;;  %v525_v47 = vmul.f32 %v5072_v40, %v387_v31  ;;  %v493_v24 = vpop.f32.mrb[11].mxu1  ;;  %v574_v31 = vmul.f32 %v553_v43, %v5969_v2  ;;  %v577_v2 = vmul.f32 %v5972_v3, %v568_v6 }
 0x267   :  { %v6079_v48 = vadd.f32 %v4617_v33, %v578_v38  ;;  %v524_v25 = vmul.f32 %v493_v24, %v382_v35  ;;  %v576_v36 = vmul.f32 %v563_v4, %v5979_v8 }
 0x268   :  { %v581_v49 = vadd.f32 %v573_v42, %v525_v47  ;;  %v600_v56 = vmax.f32 %v6076_v45, 0.0 }
 0x269   :  { %v599_v50 = vmax.f32 %v6079_v48, 0.0  ;;  %v580_v30 = vadd.f32 %v572_v32, %v524_v25  ;;  %v5075_v52 = vpop.f32.mrb[12].mxu1 }
 0x26a   :  { %v6084_v53 = vadd.f32 %v4617_v33, %v581_v49  ;;  %v527_v60 = vmul.f32 %v5075_v52, %v397_v41  ;;  %v503_v62 = vpop.f32.mrb[13].mxu1 }
 0x26b   :  { %v6087_v58 = vadd.f32 %v4617_v33, %v580_v30  ;;  %v526_v35 = vmul.f32 %v503_v62, %v6035_v39  ;;  %5087 = vmatprep.mubr.msk.f32.mxu0 %vm8450_vm1, %v599_v50 }
 0x26c   :  { %v583_v27 = vadd.f32 %v575_v54, %v527_v60  ;;  %5088 = vmatmul.mubr.msk.f32.vlgmr.msra.gmra.mrb[8].mxu0 %vm8450_vm1, %v600_v56  ;;  %v602_v1 = vmax.f32 %v6084_v53, 0.0 }
 0x26d   :  { %v601_v59 = vmax.f32 %v6087_v58, 0.0  ;;  %v582_v41 = vadd.f32 %v574_v31, %v526_v35  ;;  %v5078_v28 = vpop.f32.mrb[14].mxu1 }
 0x26e   :  { %v6099_v29 = vadd.f32 %v4617_v33, %v583_v27  ;;  %v529_v39 = vmul.f32 %v5078_v28, %v6042_v46  ;;  %v513_v34 = vpop.f32.mrb[15].mxu1 }
 0x26f   :  { %v6103_v37 = vadd.f32 %v4617_v33, %v582_v41  ;;  %v528_v38 = vmul.f32 %v513_v34, %v6040_v44  ;;  %5090 = vmatprep.mubr.msk.f32.mxu0 %vm8450_vm1, %v601_v59 }
 0x270   :  { %v585_v40 = vadd.f32 %v577_v2, %v529_v39  ;;  %5091 = vmatmul.mubr.msk.f32.gmra.mrb[10].mxu0 %vm8450_vm1, %v602_v1  ;;  %v604_v46 = vmax.f32 %v6099_v29, 0.0 }
 0x271   :  { %v8470_v3 = vmax.f32 %v6103_v37, 0.0  ;;  %v584_v42 = vadd.f32 %v576_v36, %v528_v38 }
 0x272   :  { %v6114_v43 = vadd.f32 %v4617_v33, %v585_v40 }
 0x273   :  { %v6116_v8 = vadd.f32 %v4617_v33, %v584_v42  ;;  %5093 = vmatprep.mubr.msk.f32.mxu0 %vm8450_vm1, %v8470_v3 }
 0x274   :  { %5094 = vmatmul.mubr.msk.f32.gmra.mrb[12].mxu0 %vm8450_vm1, %v604_v46  ;;  %v8471_v47 = vmax.f32 %v6114_v43, 0.0  ;;  %v8658_v45 = vmax.f32 %v6114_v43, 0.0 }
 0x275   :  { %v8469_v44 = vmax.f32 %v6116_v8, 0.0 }
 0x277   :  { %5096 = vmatprep.mubr.msk.f32.mxu0 %vm8450_vm1, %v8469_v44 }
 0x278   :  { %5097 = vmatmul.mubr.msk.f32.gmra.mrb[14].mxu0 %vm8450_vm1, %v8471_v47 }
 0x33f   :  { %v5089_v33 = vpop.f32.mrb[8].mxu0 }
 0x340   :  { %v741_v24 = vmul.f32 %v5089_v33, %v5957_v57  ;;  %v701_v32 = vpop.f32.mrb[9].mxu0 }
 0x341   :  { %v740_v25 = vmul.f32 %v701_v32, %v5949_v51 }
 0x343   :  { %v5459_v49 = vpack.c.bf16 %v741_v24, %v740_v25  ;;  %v5092_v30 = vpop.f32.mrb[10].mxu0 }
 0x344   :  { %v743_v52 = vmul.f32 %v5092_v30, %v5954_v55  ;;  %v711_v54 = vpop.f32.mrb[11].mxu0  ;;  %v864_v24 = vmul.f32 %v5092_v30, %v6002_v17 }
 0x345   :  { %v742_v60 = vmul.f32 %v711_v54, %v5964_v61  ;;  %5460 = vmatprep.subr.bf16.mxu1 %v5459_v49 }
 0x346   :  { %5462 = vmatpush3.bf16.msra.mxu1 %v5459_v49 }
 0x347   :  { %v5463_v62 = vpack.c.bf16 %v743_v52, %v742_v60  ;;  %v5095_v31 = vpop.f32.mrb[12].mxu0 }
 0x348   :  { %v745_v6 = vmul.f32 %v5095_v31, %v5974_v5  ;;  %v721_v35 = vpop.f32.mrb[13].mxu0  ;;  %v866_v17 = vmul.f32 %v5095_v31, %v6012_v21 }
 0x349   :  { %v744_v4 = vmul.f32 %v721_v35, %v5967_v63  ;;  %5464 = vmatprep.subr.bf16.mxu1 %v5463_v62 }
 0x34a   :  { %5466 = vmatpush3.bf16.msra.mxu1 %v5463_v62 }
 0x34b   :  { %v5467_v27 = vpack.c.bf16 %v745_v6, %v744_v4  ;;  %v5098_v41 = vpop.f32.mrb[14].mxu0 }
 0x34c   :  { %v747_v28 = vmul.f32 %v5098_v41, %v5982_v9  ;;  %v731_v2 = vpop.f32.mrb[15].mxu0  ;;  %v868_v21 = vmul.f32 %v5098_v41, %v6022_v26  ;;  %v44_v41 = vld [vmem:[%s8432_s2 + $0x10] sm:$0xff] }
 0x34d   :  { %v746_v39 = vmul.f32 %v731_v2, %v5977_v7  ;;  %5468 = vmatprep.subr.bf16.mxu1 %v5467_v27 }
 0x34e   :  { %5470 = vmatpush3.bf16.msra.mxu1 %v5467_v27 }
 0x34f   :  { %v5471_v34 = vpack.c.bf16 %v747_v28, %v746_v39 }
 0x351   :  { %5472 = vmatprep.subr.bf16.mxu1 %v5471_v34 }
 0x352   :  { %5474 = vmatpush3.bf16.msra.mxu1 %v5471_v34  ;;  %v46_v34 = vld [vmem:[%s8432_s2 + $0x20] sm:$0xff] }
 0x355   :  { %5116 = vmatmul.mubr.msk.f32.vlgmr.msra.gmra.mrb[16].mxu1 %vm8452_vm0, %v5875_v11  ;;  %v862_v11 = vmul.f32 %v5089_v33, %v5992_v13 }
 0x356   :  { %5118 = vmatprep.mubr.msk.f32.mxu1 %vm8452_vm0, %v5880_v12 }
 0x359   :  { %5119 = vmatmul.mubr.msk.f32.gmra.mrb[18].mxu1 %vm8452_vm0, %v5897_v15  ;;  %v861_v15 = vmul.f32 %v701_v32, %v5986_v10 }
 0x35a   :  { %5121 = vmatprep.mubr.msk.f32.mxu1 %vm8452_vm0, %v5902_v16  ;;  %v4634_v16 = vld [vmem:[%s8431_s6 + $0x3] ss:$0 sm:$0xff] }
 0x35d   :  { %5122 = vmatmul.mubr.msk.f32.gmra.mrb[20].mxu1 %vm8452_vm0, %v5919_v19 }
 0x35e   :  { %5124 = vmatprep.mubr.msk.f32.mxu1 %vm8452_vm0, %v5924_v20 }
 0x361   :  { %5125 = vmatmul.mubr.msk.f32.gmra.mrb[22].mxu1 %vm8452_vm0, %v5938_v22 }
 0x428   :  { %v5117_v36 = vpop.f32.mrb[16].mxu1 }
 0x429   :  { %v854_v12 = vmul.f32 %v5117_v36, %v5957_v57  ;;  %v814_v38 = vpop.f32.mrb[17].mxu1  ;;  %v863_v57 = vmul.f32 %v711_v54, %v5996_v14  ;;  %v865_v14 = vmul.f32 %v721_v35, %v6006_v18  ;;  %v867_v18 = vmul.f32 %v731_v2, %v6016_v23  ;;  %v45_v23 = vld [vmem:[%s8432_s2 + $0x18] sm:$0xff]  ;;  %v47_v2 = vld [vmem:[%s8432_s2 + $0x28] sm:$0xff] }
 0x42a   :  { %v853_v40 = vmul.f32 %v814_v38, %v5949_v51  ;;  %v49_v36 = vld [vmem:[%s8432_s2 + $0x38] sm:$0xff] }
 0x42b   :  { %v870_v19 = vadd.f32 %v862_v11, %v854_v12  ;;  %v48_v11 = vld [vmem:[%s8432_s2 + $0x30] sm:$0xff]  ;;  %v51_v12 = vlaneseq }
 0x42c   :  { %v869_v42 = vadd.f32 %v861_v15, %v853_v40  ;;  %v5120_v20 = vpop.f32.mrb[18].mxu1 }
 0x42d   :  { %v856_v22 = vmul.f32 %v5120_v20, %v5954_v55  ;;  %v824_v25 = vpop.f32.mrb[19].mxu1  ;;  %v6163_v13 = vadd.f32 %v4634_v16, %v870_v19  ;;  %v6229_v38 = vshrl.u32 %v51_v12, 7  ;;  %v6234_v40 = vand.u32 127, %v51_v12 }
 0x42e   :  { %v855_v10 = vmul.f32 %v824_v25, %v5964_v61  ;;  %v6167_v33 = vadd.f32 %v4634_v16, %v869_v42 }
 0x42f   :  { %v872_v51 = vadd.f32 %v864_v24, %v856_v22  ;;  %914 = vperm.xlu1 %5635, %v6163_v13   ;;  %8570 = vst [vmem:[#allocation4_spill] sm:$0xff] %v6229_v38  ;;  %v6232_v15 = vadd.s32 8, %v6229_v38  ;;  %8572 = vst [vmem:[#allocation6_spill] sm:$0xff] %v6234_v40  ;;  %vm8448_vm11 = vcmp.eq.s32.totalorder %v6229_v38, %v6234_v40  ;;  %v6244_v19 = vadd.s32 16, %v6229_v38 }
 0x430   :  { %v871_v32 = vadd.f32 %v863_v57, %v855_v10  ;;  %909 = vperm.xlu0 %5634, %v6167_v33   ;;  %v5123_v49 = vpop.f32.mrb[20].mxu1  ;;  %v6255_v25 = vadd.s32 40, %v6229_v38  ;;  %vm8439_vm4 = vcmp.lt.s32.totalorder %v6234_v40, %v6229_v38  ;;  %5672 = vtanh.f32 %v6167_v33 }
 0x431   :  { %v858_v55 = vmul.f32 %v5123_v49, %v5974_v5  ;;  %v834_v30 = vpop.f32.mrb[21].mxu1  ;;  %v6173_v52 = vadd.f32 %v4634_v16, %v872_v51  ;;  %8571 = vst [vmem:[#allocation5_spill] sm:$0xff] %v6232_v15  ;;  %vm8449_vm10 = vcmp.eq.s32.totalorder %v6232_v15, %v6234_v40  ;;  %8574 = vst [vmem:[#allocation8_spill] sm:$0xff] %v6244_v19  ;;  %v6262_v51 = vadd.s32 32, %v6229_v38 }
 0x432   :  { %v857_v61 = vmul.f32 %v834_v30, %v5967_v63  ;;  %v6177_v54 = vadd.f32 %v4634_v16, %v871_v32  ;;  %8575 = vst [vmem:[#allocation9_spill] sm:$0xff] %v6255_v25  ;;  %vm8444_vm13 = vcmp.eq.s32.totalorder %v6244_v19, %v6234_v40  ;;  %vm8441_vm14 = vcmp.eq.s32.totalorder %v6255_v25, %v6234_v40 }
 0x433   :  { %v874_v60 = vadd.f32 %v866_v17, %v858_v55  ;;  %924 = vperm.xlu1 %5635, %v6173_v52   ;;  %8576 = vst [vmem:[#allocation10_spill] sm:$0xff] %v6262_v51  ;;  %vm8437_vm15 = vcmp.eq.s32.totalorder %v6262_v51, %v6234_v40 }
 0x434   :  { %v873_v62 = vadd.f32 %v865_v14, %v857_v61  ;;  %919 = vperm.xlu0 %5634, %v6177_v54   ;;  %v5126_v6 = vpop.f32.mrb[22].mxu1  ;;  %v6276_v61 = vadd.s32 56, %v6229_v38  ;;  %5674 = vtanh.f32 %v6177_v54 }
 0x435   :  { %v860_v5 = vmul.f32 %v5126_v6, %v5982_v9  ;;  %v844_v31 = vpop.f32.mrb[23].mxu1  ;;  %v6183_v4 = vadd.f32 %v4634_v16, %v874_v60  ;;  %v42_v9 = vld [vmem:[%s8432_s2] sm:$0xff]  ;;  %v6279_v60 = vadd.s32 48, %v6229_v38  ;;  %5676 = vtanh.f32 %v6173_v52 }
 0x436   :  { %v859_v63 = vmul.f32 %v844_v31, %v5977_v7  ;;  %v6187_v35 = vadd.f32 %v4634_v16, %v873_v62  ;;  %v43_v7 = vld [vmem:[%s8432_s2 + $0x8] sm:$0xff]  ;;  %8577 = vst [vmem:[#allocation11_spill] sm:$0xff] %v6276_v61  ;;  %vm8436_vm2 = vcmp.eq.s32.totalorder %v6276_v61, %v6234_v40 }
 0x437   :  { %v876_v27 = vadd.f32 %v868_v21, %v860_v5  ;;  %934 = vperm.xlu1 %5635, %v6183_v4   ;;  %8578 = vst [vmem:[#allocation12_spill] sm:$0xff] %v6279_v60  ;;  %vm8435_vm3 = vcmp.eq.s32.totalorder %v6279_v60, %v6234_v40  ;;  %5678 = vtanh.f32 %v6183_v4 }
 0x438   :  { %v875_v28 = vadd.f32 %v867_v18, %v859_v63  ;;  %929 = vperm.xlu0 %5634, %v6187_v35   ;;  %5680 = vtanh.f32 %v6163_v13 }
 0x439   :  { %v6191_v39 = vadd.f32 %v4634_v16, %v876_v27 }
 0x43a   :  { %v6193_v26 = vadd.f32 %v4634_v16, %v875_v28  ;;  %v6239_v16 = vadd.s32 24, %v6229_v38 }
 0x43b   :  { %944 = vperm.xlu1 %5635, %v6191_v39   ;;  %5682 = vtanh.f32 %v6191_v39 }
 0x43c   :  { %939 = vperm.xlu0 %5634, %v6193_v26   ;;  %8573 = vst [vmem:[#allocation7_spill] sm:$0xff] %v6239_v16  ;;  %vm8445_vm12 = vcmp.eq.s32.totalorder %v6239_v16, %v6234_v40  ;;  %5684 = vtanh.f32 %v6187_v35 }
 0x43d   :  { %5686 = vtanh.f32 %v6193_v26 }
 0x43f   :  { %989 = vperm.xlu1 %5635, %v43_v7  }
 0x440   :  { %984 = vperm.xlu0 %5634, %v42_v9  }
 0x443   :  { %1048 = vperm.xlu1 %5635, %v6163_v13   ;;  %v4652_v13 = vld [vmem:[%s8428_s4 + $0x20] sm:$0xff] }
 0x444   :  { %1043 = vperm.xlu0 %5634, %v6167_v33  }
 0x447   :  { %999 = vperm.xlu1 %5635, %v45_v23  }
 0x448   :  { %994 = vperm.xlu0 %5634, %v44_v41  }
 0x44b   :  { %1058 = vperm.xlu1 %5635, %v6173_v52  }
 0x44c   :  { %1053 = vperm.xlu0 %5634, %v6177_v54  }
 0x44f   :  { %1009 = vperm.xlu1 %5635, %v47_v2  }
 0x450   :  { %1004 = vperm.xlu0 %5634, %v46_v34  }
 0x453   :  { %1068 = vperm.xlu1 %5635, %v6183_v4  }
 0x454   :  { %1063 = vperm.xlu0 %5634, %v6187_v35   ;;  %v4653_v35 = vld [vmem:[%s8428_s4 + $0x28] sm:$0xff] }
 0x457   :  { %1019 = vperm.xlu1 %5635, %v49_v36  }
 0x458   :  { %1014 = vperm.xlu0 %5634, %v48_v11  }
 0x45b   :  { %1078 = vperm.xlu1 %5635, %v6191_v39   ;;  %v5491_v39 = vpack.c.bf16 %v4653_v35, %v4652_v13 }
 0x45c   :  { %1073 = vperm.xlu0 %5634, %v6193_v26   ;;  %v4654_v26 = vld [vmem:[%s8428_s4 + $0x30] sm:$0xff] }
 0x45d   :  { %5492 = vmatprep.subr.bf16.mxu1 %v5491_v39 }
 0x45e   :  { %5494 = vmatpush3.bf16.msra.mxu1 %v5491_v39 }
 0x4ae   :  { %v915_v42 = vpop.permute.xlu1 %914 }
 0x4af   :  { %v948_v20 = vsel %vm8449_vm10, %v915_v42, 0.0  ;;  %v910_v24 = vpop.permute.xlu0 %909 }
 0x4b0   :  { %v947_v22 = vsel %vm8448_vm11, %v910_v24, 0.0  ;;  %v956_v57 = vsel %vm8452_vm0, %v948_v20, 0.0 }
 0x4b1   :  { %v955_v10 = vsel %vm8452_vm0, %v947_v22, 0.0 }
 0x4b2   :  { %v925_v32 = vpop.permute.xlu1 %924  ;;  %v957_v17 = vadd.f32 %v956_v57, %v955_v10 }
 0x4b3   :  { %v920_v49 = vpop.permute.xlu0 %919  ;;  %v950_v55 = vsel %vm8445_vm12, %v925_v32, 0.0 }
 0x4b4   :  { %v949_v30 = vsel %vm8444_vm13, %v920_v49, 0.0  ;;  %v960_v21 = vsel %vm8452_vm0, %v950_v55, 0.0 }
 0x4b5   :  { %v958_v14 = vsel %vm8452_vm0, %v949_v30, 0.0 }
 0x4b6   :  { %v959_v62 = vadd.f32 %v958_v14, %v957_v17  ;;  %v935_v6 = vpop.permute.xlu1 %934 }
 0x4b7   :  { %v930_v5 = vpop.permute.xlu0 %929  ;;  %v952_v31 = vsel %vm8441_vm14, %v935_v6, 0.0 }
 0x4b8   :  { %v961_v18 = vadd.f32 %v960_v21, %v959_v62  ;;  %v951_v63 = vsel %vm8437_vm15, %v930_v5, 0.0  ;;  %v964_v9 = vsel %vm8452_vm0, %v952_v31, 0.0  ;;  %v6321_v5 = vld [vmem:[%s8433_s3] ss:$0 sm:$0xff] }
 0x4b9   :  { %v962_v27 = vsel %vm8452_vm0, %v951_v63, 0.0  ;;  %8583 = vst [vmem:[#allocation17_spill] sm:$0xff] %v6321_v5 }
 0x4ba   :  { %v963_v28 = vadd.f32 %v962_v27, %v961_v18  ;;  %v945_v7 = vpop.permute.xlu1 %944  ;;  %v8588_v27 = vmov 0 }
 0x4bb   :  { %v940_v23 = vpop.permute.xlu0 %939  ;;  %v954_v41 = vsel %vm8436_vm2, %v945_v7, 0.0  ;;  %v8467_v7 = vmov 0.0  }
 0x4bc   :  { %v965_v2 = vadd.f32 %v964_v9, %v963_v28  ;;  %v953_v34 = vsel %vm8435_vm3, %v940_v23, 0.0  ;;  %v968_v42 = vsel %vm8452_vm0, %v954_v41, 0.0 }
 0x4bd   :  { %v966_v36 = vsel %vm8452_vm0, %v953_v34, 0.0 }
 0x4be   :  { %v967_v11 = vadd.f32 %v966_v36, %v965_v2  ;;  %v6301_v12 = vpop.permute.xlu1 %989  ;;  %v8592_v36 = vmov 0 }
 0x4bf   :  { %8579 = vst [vmem:[#allocation13_spill] sm:$0xff] %v6301_v12  ;;  %v6304_v20 = vpop.permute.xlu0 %984  ;;  %vm8438_vm8 = vcmp.eq.f32.partialorder %v6321_v5, %v6301_v12 }
 0x4c0   :  { %8580 = vst [vmem:[#allocation14_spill] sm:$0xff] %v6304_v20  ;;  %v969_v24 = vadd.f32 %v968_v42, %v967_v11  ;;  %vm8440_vm2 = vcmp.eq.f32.partialorder %v6321_v5, %v6304_v20 }
 0x4c2   :  { %v970_v22 = vrot.slane %v969_v24, 4  ;;  %v6306_v57 = vpop.permute.xlu1 %1048 }
 0x4c3   :  { %v1044_v10 = vpop.permute.xlu0 %1043 }
 0x4c4   :  { %v971_v32 = vadd.f32 %v970_v22, %v969_v24 }
 0x4c6   :  { %v972_v49 = vrot.slane %v971_v32, 2  ;;  %v6308_v17 = vpop.permute.xlu1 %999 }
 0x4c7   :  { %8581 = vst [vmem:[#allocation15_spill] sm:$0xff] %v6308_v17  ;;  %v6310_v55 = vpop.permute.xlu0 %994 }
 0x4c8   :  { %8582 = vst [vmem:[#allocation16_spill] sm:$0xff] %v6310_v55  ;;  %v973_v30 = vadd.f32 %v972_v49, %v971_v32  ;;  %v8599_v49 = vmov 0 }
 0x4ca   :  { %v974_v14 = vrot.slane %v973_v30, 1  ;;  %v6312_v62 = vpop.permute.xlu1 %1058 }
 0x4cb   :  { %v1054_v6 = vpop.permute.xlu0 %1053 }
 0x4cc   :  { %v6314_v21 = vadd.f32 %v974_v14, %v973_v30 }
 0x4ce   :  { %vm1081_vm5 = vcmp.gt.f32.partialorder %v6314_v21, %v1044_v10  ;;  %vm1089_vm6 = vcmp.eq.f32.partialorder %v6314_v21, %v1044_v10  ;;  %v6325_v31 = vpop.permute.xlu1 %1009  ;;  %vm1030_vm9 = vcmp.gt.f32.partialorder %v6314_v21, -5e+29  ;;  %v8596_v10 = vmov 0 }
 0x4cf   :  { %8584 = vst [vmem:[#allocation18_spill] sm:$0xff] %v6325_v31  ;;  %v6327_v18 = vpop.permute.xlu0 %1004  ;;  %vm1105_vm7 = vmand %vm1089_vm6, %vm8439_vm4  ;;  %vm8442_vm6 = vcmp.eq.f32.partialorder %v6321_v5, %v6308_v17  ;;  %vm1091_vm13 = vcmp.eq.f32.partialorder %v6314_v21, %v1054_v6  ;;  %vm1083_vm11 = vcmp.gt.f32.partialorder %v6314_v21, %v1054_v6 }
 0x4d0   :  { %8585 = vst [vmem:[#allocation19_spill] sm:$0xff] %v6327_v18  ;;  %vm6335_vm3 = vmor %vm1081_vm5, %vm1105_vm7  ;;  %vm8446_vm5 = vcmp.eq.f32.partialorder %v6321_v5, %v6325_v31  ;;  %vm8447_vm4 = vcmp.eq.f32.partialorder %v6321_v5, %v6327_v18 }
 0x4d1   :  { %vm6346_vm15 = vmand %vm8438_vm8, %vm1030_vm9  ;;  %vm8443_vm8 = vcmp.eq.f32.partialorder %v6321_v5, %v6310_v55 }
 0x4d2   :  { %v8589_v27 = vsel %vm6346_vm15, 4294967295, %v8588_v27  ;;  %v6354_v28 = vpop.permute.xlu1 %1068  ;;  %v1162_v9 = vsel %vm6346_vm15, 1.0, %v8467_v7  ;;  %vm6364_vm7 = vmand %vm8440_vm2, %vm1030_vm9 }
 0x4d3   :  { %v1172_v41 = vsel %vm8452_vm0, %v1162_v9, 0.0  ;;  %v1161_v2 = vsel %vm6364_vm7, 1.0, %v8467_v7  ;;  %v1064_v34 = vpop.permute.xlu0 %1063  ;;  %vm6381_vm2 = vmand %vm8442_vm6, %vm1030_vm9 }
 0x4d4   :  { %v8593_v36 = vsel %vm6381_vm2, 4294967295, %v8592_v36  ;;  %1173 = vadd.xlane.f32.xlu1 %v1172_v41  ;;  %v1169_v11 = vsel %vm8452_vm0, %v1161_v2, 0.0  ;;  %vm6391_vm14 = vmand %vm8443_vm8, %vm1030_vm9  ;;  %v1164_v24 = vsel %vm6381_vm2, 1.0, %v8467_v7  ;;  %v8602_v2 = vmov 0 }
 0x4d5   :  { %1170 = vadd.xlane.f32.xlu0 %v1169_v11  ;;  %v1163_v22 = vsel %vm6391_vm14, 1.0, %v8467_v7  ;;  %vm6406_vm6 = vmand %vm8446_vm5, %vm1030_vm9  ;;  %v1178_v9 = vsel %vm8452_vm0, %v1164_v24, 0.0  ;;  %v8604_v24 = vmov 0  ;;  %vm1082_vm2 = vcmp.gt.f32.partialorder %v6314_v21, %v6306_v57 }
 0x4d6   :  { %v8597_v10 = vsel %vm6406_vm6, 4294967295, %v8596_v10  ;;  %v6410_v32 = vpop.permute.xlu1 %1019  ;;  %vm6417_vm8 = vmand %vm8447_vm4, %vm1030_vm9  ;;  %v1175_v30 = vsel %vm8452_vm0, %v1163_v22, 0.0  ;;  %vm8457_vm4 = vcmp.lt.s32.totalorder %v6234_v40, %v6244_v19  ;;  %v1166_v11 = vsel %vm6406_vm6, 1.0, %v8467_v7 }
 0x4d7   :  { %8598 = vst [vmem:[#allocation20_spill] sm:$0xff] %v6410_v32  ;;  %v8600_v49 = vsel %vm6417_vm8, 4294967295, %v8599_v49  ;;  %vm8451_vm12 = vcmp.eq.f32.partialorder %v6321_v5, %v6410_v32  ;;  %v6425_v14 = vpop.permute.xlu0 %1014  ;;  %v1165_v41 = vsel %vm6417_vm8, 1.0, %v8467_v7  ;;  %vm1107_vm0 = vmand %vm1091_vm13, %vm8457_vm4  ;;  %vm8459_vm6 = vcmp.lt.s32.totalorder %v6234_v40, %v6232_v15 }
 0x4d8   :  { %8601 = vst [vmem:[#allocation21_spill] sm:$0xff] %v6425_v14  ;;  %1176 = vadd.xlane.f32.xlu1 %v1175_v30  ;;  %vm8456_vm10 = vcmp.eq.f32.partialorder %v6321_v5, %v6425_v14  ;;  %vm6445_vm1 = vmand %vm8451_vm12, %vm1030_vm9  ;;  %vm1090_vm12 = vcmp.eq.f32.partialorder %v6314_v21, %v6306_v57  ;;  %vm8606_vm8 = vcmask 523264   ;;  %vm1093_vm4 = vcmp.eq.f32.partialorder %v6314_v21, %v1064_v34 }
 0x4d9   :  { %v8603_v2 = vsel %vm6445_vm1, 4294967295, %v8602_v2  ;;  %1179 = vadd.xlane.f32.xlu0 %v1178_v9  ;;  %vm6457_vm5 = vmand %vm8456_vm10, %vm1030_vm9  ;;  %v1181_v22 = vsel %vm8606_vm8, %v1165_v41, 0.0  ;;  %v1168_v57 = vsel %vm6445_vm1, 1.0, %v8467_v7  ;;  %v8610_v41 = vmov 0 }
 0x4da   :  { %v8605_v24 = vsel %vm6457_vm5, 4294967295, %v8604_v24  ;;  %vm6473_vm9 = vmor %vm1083_vm11, %vm1107_vm0  ;;  %v1167_v6 = vsel %vm6457_vm5, 1.0, %v8467_v7  ;;  %vm1085_vm11 = vcmp.gt.f32.partialorder %v6314_v21, %v1064_v34  ;;  %vm1092_vm1 = vcmp.eq.f32.partialorder %v6314_v21, %v6312_v62 }
 0x4db   :  { %vm8609_vm10 = vmmov %vm8606_vm8 }
 0x4dc   :  { %v1184_v9 = vsel %vm8609_vm10, %v1166_v11, 0.0  ;;  %1182 = vadd.xlane.f32.xlu1 %v1181_v22  ;;  %vm1123_vm13 = vmand %vm6391_vm14, %vm6473_vm9  ;;  %vm8460_vm10 = vcmp.lt.s32.totalorder %v6234_v40, %v6262_v51  ;;  %vm8612_vm14 = vcmask 523264   ;;  %v1074_v11 = vpop.permute.xlu0 %1073 }
 0x4dd   :  { %1185 = vadd.xlane.f32.xlu0 %v1184_v9  ;;  %vm1106_vm0 = vmand %vm1090_vm12, %vm8459_vm6  ;;  %v1187_v42 = vsel %vm8612_vm14, %v1167_v6, 0.0  ;;  %v1131_v34 = vsel %vm1123_vm13, 1.0, %v8467_v7  ;;  %vm8615_vm13 = vnez %v8600_v49  ;;  %vm1087_vm15 = vcmp.gt.f32.partialorder %v6314_v21, %v1074_v11  ;;  %v1079_v6 = vpop.permute.xlu1 %1078 }
 0x4de   :  { %vm6495_vm8 = vmor %vm1082_vm2, %vm1106_vm0  ;;  %vm8525_vm0 = vcmp.lt.s32.totalorder %v6234_v40, %v6239_v16 }
 0x4df   :  { %v8611_v41 = vsel %vm6495_vm8, 4294967295, %v8610_v41  ;;  %vm8613_vm12 = vmmov %vm8612_vm14  ;;  %vm1084_vm14 = vcmp.gt.f32.partialorder %v6314_v21, %v6312_v62  ;;  %vm8464_vm8 = vcmp.lt.s32.totalorder %v6234_v40, %v6279_v60 }
 0x4e0   :  { %v1190_v22 = vsel %vm8613_vm12, %v1168_v57, 0.0  ;;  %1188 = vadd.xlane.f32.xlu1 %v1187_v42  ;;  %vm1109_vm2 = vmand %vm1093_vm4, %vm8460_vm10  ;;  %vm1095_vm4 = vcmp.eq.f32.partialorder %v6314_v21, %v1074_v11  ;;  %vm8616_vm10 = vcmask 523264  }
 0x4e1   :  { %1191 = vadd.xlane.f32.xlu0 %v1190_v22  ;;  %vm8614_vm12 = vmand %vm6364_vm7, %vm6335_vm3  ;;  %v1143_v9 = vsel %vm8616_vm10, %v1131_v34, 0.0  ;;  %v5673_v22 = vpop.eup %5672 }
 0x4e2   :  { %v1129_v30 = vsel %vm8614_vm12, 1.0, %v8467_v7  ;;  %vm1117_vm6 = vmor %vm1085_vm11, %vm1109_vm2  ;;  %vm8623_vm11 = vnez %v8593_v36  ;;  %vm1086_vm12 = vcmp.gt.f32.partialorder %v6314_v21, %v6354_v28 }
 0x4e3   :  { %vm1125_vm9 = vmand %vm8615_vm13, %vm1117_vm6  ;;  %vm8620_vm6 = vnez %v8589_v27 }
 0x4e4   :  { %vm1108_vm5 = vmand %vm1092_vm1, %vm8525_vm0  ;;  %1144 = vadd.xlane.f32.xlu1 %v1143_v9  ;;  %v1133_v63 = vsel %vm1125_vm9, 1.0, %v8467_v7  ;;  %vm8621_vm1 = vnez %v8611_v41  ;;  %vm1094_vm9 = vcmp.eq.f32.partialorder %v6314_v21, %v6354_v28  ;;  %v4655_v9 = vld [vmem:[%s8428_s4 + $0x38] sm:$0xff] }
 0x4e5   :  { %vm8617_vm3 = vmmov %vm8616_vm10 }
 0x4e6   :  { %v1137_v62 = vsel %vm8617_vm3, %v1129_v30, 0.0  ;;  %vm6533_vm7 = vmor %vm1084_vm14, %vm1108_vm5  ;;  %vm8517_vm14 = vcmp.lt.s32.totalorder %v6234_v40, %v6255_v25 }
 0x4e7   :  { %1138 = vadd.xlane.f32.xlu0 %v1137_v62  ;;  %vm8622_vm10 = vmand %vm8620_vm6, %vm8621_vm1  ;;  %v5495_v62 = vpack.c.bf16 %v4655_v9, %v4654_v26 }
 0x4e8   :  { %v1130_v49 = vsel %vm8622_vm10, 1.0, %v8467_v7  ;;  %vm1124_vm2 = vmand %vm8623_vm11, %vm6533_vm7  ;;  %vm8626_vm7 = vnez %v8605_v24  ;;  %vm1096_vm10 = vcmp.eq.f32.partialorder %v6314_v21, %v1079_v6  ;;  %vm1088_vm11 = vcmp.gt.f32.partialorder %v6314_v21, %v1079_v6 }
 0x4e9   :  { %vm1111_vm5 = vmand %vm1095_vm4, %vm8464_vm8  ;;  %v1132_v57 = vsel %vm1124_vm2, 1.0, %v8467_v7  ;;  %5496 = vmatprep.subr.bf16.mxu1 %v5495_v62 }
 0x4ea   :  { %vm8624_vm13 = vmmov %vm8617_vm3  ;;  %5498 = vmatpush3.bf16.msra.mxu1 %v5495_v62 }
 0x4eb   :  { %v1149_v27 = vsel %vm8624_vm13, %v1133_v63, 0.0  ;;  %vm1119_vm3 = vmor %vm1087_vm15, %vm1111_vm5  ;;  %vm8474_vm15 = vcmp.lt.s32.totalorder %v6234_v40, %v6276_v61 }
 0x4ec   :  { %vm8625_vm6 = vmmov %vm8624_vm13  ;;  %1150 = vadd.xlane.f32.xlu1 %v1149_v27 }
 0x4ed   :  { %v1140_v36 = vsel %vm8625_vm6, %v1130_v49, 0.0  ;;  %vm1127_vm1 = vmand %vm8626_vm7, %vm1119_vm3  ;;  %vm8628_vm3 = vnez %v8597_v10 }
 0x4ee   :  { %1141 = vadd.xlane.f32.xlu0 %v1140_v36  ;;  %v1135_v41 = vsel %vm1127_vm1, 1.0, %v8467_v7  ;;  %vm1110_vm4 = vmand %vm1094_vm9, %vm8517_vm14  ;;  %vm8630_vm1 = vnez %v8603_v2  ;;  %v5675_v2 = vpop.eup %5674 }
 0x4ef   :  { %vm1118_vm5 = vmor %vm1086_vm12, %vm1110_vm4  ;;  %v5677_v34 = vpop.eup %5676 }
 0x4f0   :  { %vm8627_vm13 = vmmov %vm8625_vm6  ;;  %v5679_v33 = vpop.eup %5678 }
 0x4f1   :  { %v1155_v28 = vsel %vm8627_vm13, %v1135_v41, 0.0  ;;  %vm1126_vm6 = vmand %vm8628_vm3, %vm1118_vm5  ;;  %v5681_v54 = vpop.eup %5680 }
 0x4f2   :  { %vm8629_vm7 = vmmov %vm8627_vm13  ;;  %1156 = vadd.xlane.f32.xlu1 %v1155_v28  ;;  %v1134_v42 = vsel %vm1126_vm6, 1.0, %v8467_v7  ;;  %v5683_v52 = vpop.eup %5682 }
 0x4f3   :  { %v1146_v24 = vsel %vm8629_vm7, %v1132_v57, 0.0  ;;  %vm1112_vm2 = vmand %vm1096_vm10, %vm8474_vm15  ;;  %v5685_v30 = vpop.eup %5684 }
 0x4f4   :  { %1147 = vadd.xlane.f32.xlu0 %v1146_v24  ;;  %vm1120_vm9 = vmor %vm1088_vm11, %vm1112_vm2  ;;  %v5687_v4 = vpop.eup %5686 }
 0x4f5   :  { %vm1128_vm8 = vmand %vm8630_vm1, %vm1120_vm9 }
 0x4f6   :  { %vm8631_vm12 = vmmov %vm8629_vm7  ;;  %v1136_v10 = vsel %vm1128_vm8, 1.0, %v8467_v7  ;;  %vm62_vm8 = vcmask 257024  }
 0x4f7   :  { %v1152_v21 = vsel %vm8631_vm12, %v1134_v42, 0.0  ;;  %vm8632_vm4 = vmmov %vm8629_vm7  ;;  %64 = vst.msk [vmem:[#allocation3] sm:$0xf] %vm62_vm8, %v8467_v7 }
 0x4f8   :  { %1153 = vadd.xlane.f32.xlu0 %v1152_v21  ;;  %v1158_v11 = vsel %vm8632_vm4, %v1136_v10, 0.0  ;;  %63 = vst.msk [vmem:[#allocation2] sm:$0xf] %vm62_vm8, %v8467_v7  ;;  %vm8636_vm5 = vmmov %vm8632_vm4  ;;  %vm8647_vm8 = vcmask 261120  }
 0x4fc   :  { %1159 = vadd.xlane.f32.xlu0 %v1158_v11 }
 0x4ff   :  { %v1392_v31 = vld [vmem:[#allocation2 + $0x1] sm:$0x1] }
 0x503   :  { %1243 = vperm.xlu1 %5635, %v5673_v22  }
 0x507   :  { %1253 = vperm.xlu1 %5635, %v5675_v2  }
 0x50b   :  { %1258 = vperm.xlu1 %5635, %v5677_v34  }
 0x50f   :  { %1268 = vperm.xlu1 %5635, %v5679_v33  }
 0x512   :  { %1248 = vperm.xlu0 %5634, %v5681_v54  }
 0x513   :  { %1278 = vperm.xlu1 %5635, %v5683_v52   ;;  %v5780_v52 = vld [vmem:[%s8427_s0] sm:$0xff] }
 0x516   :  { %1263 = vperm.xlu0 %5634, %v5685_v30  }
 0x51a   :  { %1273 = vperm.xlu0 %5634, %v5687_v4  }
 0x561   :  { %v1174_v63 = vpop.xlane.xlu1 %1173 }
 0x562   :  { %v1171_v23 = vpop.xlane.xlu0 %1170  ;;  %v1194_v24 = vmul.f32 0.5, %v1174_v63 }
 0x563   :  { %v1193_v57 = vmul.f32 0.5, %v1171_v23 }
 0x564   :  { %v1202_v34 = vceil.f32 %v1194_v24 }
 0x565   :  { %v1177_v49 = vpop.xlane.xlu1 %1176  ;;  %v1201_v42 = vceil.f32 %v1193_v57 }
 0x566   :  { %v1180_v6 = vpop.xlane.xlu0 %1179  ;;  %v1195_v11 = vmul.f32 0.5, %v1177_v49 }
 0x567   :  { %v1196_v33 = vmul.f32 0.5, %v1180_v6 }
 0x568   :  { %v1203_v35 = vceil.f32 %v1195_v11 }
 0x569   :  { %v1183_v27 = vpop.xlane.xlu1 %1182  ;;  %v1204_v9 = vceil.f32 %v1196_v33 }
 0x56a   :  { %v1186_v36 = vpop.xlane.xlu0 %1185  ;;  %v1197_v4 = vmul.f32 0.5, %v1183_v27 }
 0x56b   :  { %v1198_v62 = vmul.f32 0.5, %v1186_v36 }
 0x56c   :  { %v1205_v6 = vceil.f32 %v1197_v4 }
 0x56d   :  { %v1189_v41 = vpop.xlane.xlu1 %1188 }
 0x56e   :  { %v1192_v28 = vpop.xlane.xlu0 %1191  ;;  %v1199_v39 = vmul.f32 0.5, %v1189_v41 }
 0x56f   :  { %v1200_v27 = vmul.f32 0.5, %v1192_v28  ;;  %v1206_v28 = vceil.f32 %v1198_v62 }
 0x570   :  { %v1207_v24 = vceil.f32 %v1199_v39 }
 0x571   :  { %v1145_v21 = vpop.xlane.xlu1 %1144 }
 0x572   :  { %vm6626_vm3 = vcmp.lt.f32.partialorder %v1145_v21, %v1203_v35 }
 0x573   :  { %v6637_v36 = vsel %vm6626_vm3, 1.0, %v8467_v7 }
 0x574   :  { %v1139_v10 = vpop.xlane.xlu0 %1138  ;;  %vm8530_vm4 = vcmp.gt.f32.partialorder %v6637_v36, 0.5 }
 0x575   :  { %vm6604_vm10 = vcmp.lt.f32.partialorder %v1139_v10, %v1201_v42 }
 0x576   :  { %v6611_v2 = vsel %vm6604_vm10, 1.0, %v8467_v7 }
 0x577   :  { %v6617_v30 = vmul.f32 %v5780_v52, %v6611_v2 }
 0x579   :  { %v1151_v54 = vpop.xlane.xlu1 %1150  ;;  %8635 = vst [vmem:[#allocation22_spill] sm:$0xff] %v6617_v30  ;;  %5143 = vmatprep.mubr.msk.f32.mxu0 %vm8636_vm5, %v6617_v30 }
 0x57a   :  { %vm6639_vm7 = vcmp.lt.f32.partialorder %v1151_v54, %v1205_v6 }
 0x57b   :  { %v1142_v13 = vpop.xlane.xlu0 %1141  ;;  %v6661_v4 = vsel %vm6639_vm7, 1.0, %v8467_v7 }
 0x57c   :  { %vm1210_vm11 = vcmp.lt.f32.partialorder %v1142_v13, %v1202_v34  ;;  %v1208_v34 = vceil.f32 %v1200_v27  ;;  %8643 = vst [vmem:[#allocation23_spill] sm:$0xff] %v6661_v4 }
 0x57d   :  { %v6622_v26 = vsel %vm1210_vm11, 1.0, %v8467_v7  ;;  %vm5475_vm13 = vmpackc.low %vm1210_vm11, %vm6604_vm10  ;;  %vm8533_vm10 = vcmp.gt.f32.partialorder %v6611_v2, 0.5 }
 0x57e   :  { %v1305_v23 = vadd.f32 %v6622_v26, %v6611_v2  ;;  %5476 = vmatprep.subr.msk.bf16.mxu0 %vm5475_vm13, %v8465_v0 }
 0x57f   :  { %v1157_v49 = vpop.xlane.xlu1 %1156  ;;  %5478 = vmatpush3.bf16.msk.msra.mxu0 %vm5475_vm13, %v8465_v0 }
 0x580   :  { %v1306_v41 = vrot.slane %v1305_v23, 4  ;;  %vm6651_vm9 = vcmp.lt.f32.partialorder %v1157_v49, %v1207_v24 }
 0x581   :  { %v1148_v57 = vpop.xlane.xlu0 %1147 }
 0x582   :  { %vm1212_vm6 = vcmp.lt.f32.partialorder %v1148_v57, %v1204_v9  ;;  %v1307_v10 = vadd.f32 %v1306_v41, %v1305_v23  ;;  %v6687_v23 = vsel %vm6651_vm9, 1.0, %v8467_v7  ;;  %v5782_v57 = vld [vmem:[%s8427_s0 + $0x8] sm:$0xff] }
 0x583   :  { %v6644_v21 = vsel %vm1212_vm6, 1.0, %v8467_v7  ;;  %vm5479_vm2 = vmpackc.low %vm1212_vm6, %vm6626_vm3  ;;  %v1244_v22 = vpop.permute.xlu1 %1243  ;;  %8646 = vst [vmem:[#allocation24_spill] sm:$0xff] %v6687_v23  ;;  %v6696_v41 = vmul.f32 %v5782_v57, %v6622_v26  ;;  %vm8531_vm6 = vcmp.gt.f32.partialorder %v6622_v26, 0.5 }
 0x584   :  { %v1352_v11 = vadd.f32 %v6644_v21, %v6637_v36  ;;  %5480 = vmatprep.subr.msk.bf16.mxu0 %vm5479_vm2, %v8465_v0  ;;  %v1281_v54 = vmul.f32 %v1244_v22, %v599_v50  ;;  %v1308_v13 = vrot.slane %v1307_v10, 2  ;;  %v5781_v50 = vld [vmem:[%s8427_s0 + $0x10] sm:$0xff]  ;;  %vm8524_vm13 = vcmp.gt.f32.partialorder %v6644_v21, 0.5  ;;  %vm8649_vm3 = vmmov %vm8647_vm8 }
 0x585   :  { %5482 = vmatpush3.bf16.msk.msra.mxu0 %vm5479_vm2, %v8465_v0  ;;  %v1154_v52 = vpop.xlane.xlu0 %1153  ;;  %v6681_v62 = vmul.f32 %v5781_v50, %v6637_v36  ;;  %vm8651_vm2 = vmmov %vm8649_vm3 }
 0x586   :  { %v1353_v35 = vrot.slane %v1352_v11, 4  ;;  %vm6663_vm1 = vcmp.lt.f32.partialorder %v1154_v52, %v1206_v28  ;;  %v1289_v9 = vmul.f32 %v1281_v54, %v6611_v2  ;;  %v1309_v63 = vadd.f32 %v1308_v13, %v1307_v10  ;;  %v5783_v28 = vld [vmem:[%s8427_s0 + $0x20] sm:$0xff]  ;;  %v5784_v52 = vld [vmem:[%s8427_s0 + $0x30] sm:$0xff] }
 0x587   :  { %v6671_v48 = vsel %vm6663_vm1, 1.0, %v8467_v7  ;;  %vm5483_vm12 = vmpackc.low %vm6663_vm1, %vm6639_vm7  ;;  %v1254_v27 = vpop.permute.xlu1 %1253  ;;  %v6706_v10 = vmul.f32 %v5783_v28, %v6661_v4  ;;  %v6721_v13 = vmul.f32 %v5784_v52, %v6687_v23 }
 0x588   :  { %v1354_v49 = vadd.f32 %v1353_v35, %v1352_v11  ;;  %v1398_v6 = vadd.f32 %v6671_v48, %v6661_v4  ;;  %5484 = vmatprep.subr.msk.bf16.mxu0 %vm5483_vm12, %v8465_v0  ;;  %v1283_v24 = vmul.f32 %v1254_v27, %v601_v59  ;;  %5163 = vmatprep.mubr.msk.f32.mxu1 %vm8647_vm8, %v1289_v9  ;;  %v1310_v11 = vrot.slane %v1309_v63, 1  ;;  %vm8650_vm7 = vmmov %vm8649_vm3 }
 0x589   :  { %5486 = vmatpush3.bf16.msk.msra.mxu0 %vm5483_vm12, %v8465_v0  ;;  %v1160_v42 = vpop.xlane.xlu0 %1159  ;;  %v1318_v35 = vsel %vm8533_vm10, %v1289_v9, -3.4028235e+38  ;;  %vm8653_vm1 = vmmov %vm8651_vm2  ;;  %vm8522_vm8 = vcmp.gt.f32.partialorder %v6671_v48, 0.5 }
 0x58a   :  { %v1355_v22 = vrot.slane %v1354_v49, 2  ;;  %v1399_v54 = vrot.slane %v1398_v6, 4  ;;  %vm1216_vm11 = vcmp.lt.f32.partialorder %v1160_v42, %v1208_v34  ;;  %v6710_v58 = vmul.f32 %v1283_v24, %v6637_v36  ;;  %v5785_v24 = vld [vmem:[%s8427_s0 + $0x18] sm:$0xff] }
 0x58b   :  { %v6713_v59 = vsel %vm1216_vm11, 1.0, %v8467_v7  ;;  %vm5487_vm5 = vmpackc.low %vm1216_vm11, %vm6651_vm9  ;;  %v6725_v34 = vadd.f32 %v1310_v11, %v1309_v63  ;;  %v1259_v33 = vpop.permute.xlu1 %1258  ;;  %v6737_v63 = vmul.f32 %v5785_v24, %v6644_v21  ;;  %v6755_v52 = vsel %vm8651_vm2, %v1318_v35, -inf }
 0x58c   :  { %8648 = vst [vmem:[#allocation25_spill] sm:$0xff] %v6713_v59  ;;  %v1356_v39 = vadd.f32 %v1355_v22, %v1354_v49  ;;  %v1400_v50 = vadd.f32 %v1399_v54, %v1398_v6  ;;  %v1444_v27 = vadd.f32 %v6713_v59, %v6687_v23  ;;  %5488 = vmatprep.subr.msk.bf16.mxu0 %vm5487_vm5, %v8465_v0  ;;  %v5786_v49 = vld [vmem:[%s8427_s0 + $0x28] sm:$0xff]  ;;  %v1380_v22 = vsel %vm8650_vm7, %v6710_v58, 0.0  ;;  %vm8655_vm11 = vmmov %vm8653_vm1 }
 0x58d   :  { %v1284_v57 = vmul.f32 %v1259_v33, %v602_v1  ;;  %5490 = vmatpush3.bf16.msk.msra.mxu0 %vm5487_vm5, %v8465_v0  ;;  %v6743_v6 = vmul.f32 %v5786_v49, %v6671_v48  ;;  %v1333_v1 = vsel %vm8649_vm3, %v1289_v9, 0.0  ;;  %v1342_v11 = vmax.f32 %v6725_v34, 1.0  ;;  %vm8656_vm5 = vmmov %vm8653_vm1 }
 0x58e   :  { %v1357_v53 = vrot.slane %v1356_v39, 1  ;;  %v1401_v42 = vrot.slane %v1400_v50, 2  ;;  %v1445_v28 = vrot.slane %v1444_v27, 4  ;;  %vm8652_vm9 = vcmask 523264  }
 0x58f   :  { %v6752_v54 = vmul.f32 %v1284_v57, %v6644_v21  ;;  %v1269_v9 = vpop.permute.xlu1 %1268  ;;  %v1365_v0 = vsel %vm8530_vm4, %v6710_v58, -3.4028235e+38  ;;  %vm8654_vm12 = vmmov %vm8652_vm9  ;;  %5688 = vrcp.f32 %v1342_v11  ;;  %vm8523_vm2 = vcmp.gt.f32.partialorder %v6661_v4, 0.5 }
 0x590   :  { %v6757_v33 = vadd.f32 %v1357_v53, %v1356_v39  ;;  %v1402_v24 = vadd.f32 %v1401_v42, %v1400_v50  ;;  %v1446_v49 = vadd.f32 %v1445_v28, %v1444_v27  ;;  %5144 = vmatmul.mubr.msk.f32.vlgmr.msra.gmra.mrb[16].mxu0 %vm8652_vm9, %v6696_v41  ;;  %v1286_v57 = vmul.f32 %v1269_v9, %v604_v46  ;;  %v5787_v39 = vld [vmem:[%s8427_s0 + $0x38] sm:$0xff]  ;;  %vm8657_vm3 = vmmov %vm8652_vm9 }
 0x591   :  { %v1381_v7 = vsel %vm8653_vm1, %v6752_v54, 0.0  ;;  %5146 = vmatprep.mubr.msk.f32.mxu0 %vm8654_vm12, %v6681_v62  ;;  %v1249_v35 = vpop.permute.xlu0 %1248  ;;  %v6774_v50 = vmul.f32 %v5787_v39, %v6713_v59  ;;  %v1366_v27 = vsel %vm8524_vm13, %v6752_v54, -3.4028235e+38  ;;  %v1367_v39 = vsel %vm8656_vm5, %v1365_v0, -inf  ;;  %vm8659_vm7 = vmmov %vm8657_vm3 }
 0x592   :  { %v1389_v53 = vmax.f32 %v6757_v33, 1.0  ;;  %v1403_v42 = vrot.slane %v1402_v24, 1  ;;  %v1447_v29 = vrot.slane %v1446_v49, 2  ;;  %v1382_v46 = vadd.f32 %v1381_v7, %v1380_v22  ;;  %vm8661_vm9 = vmmov %vm8653_vm1 }
 0x593   :  { %v1282_v28 = vmul.f32 %v1249_v35, %v600_v56  ;;  %v1368_v9 = vsel %vm8655_vm11, %v1366_v27, -inf  ;;  %v6788_v32 = vmul.f32 %v1286_v57, %v6671_v48  ;;  %v1279_v7 = vpop.permute.xlu1 %1278  ;;  %v8660_v35 = vmax.f32 %v6103_v37, 0.0  ;;  %vm8662_vm12 = vmmov %vm8653_vm1 }
 0x594   :  { %v6785_v44 = vadd.f32 %v1403_v42, %v1402_v24  ;;  %v1448_v3 = vadd.f32 %v1447_v29, %v1446_v49  ;;  %v1383_v47 = vrot.slane %v1382_v46, 4  ;;  %5147 = vmatmul.mubr.msk.f32.gmra.mrb[18].mxu0 %vm8657_vm3, %v6737_v63  ;;  %5690 = vrcp.f32 %v1389_v53  ;;  %vm8663_vm11 = vmmov %vm8653_vm1 }
 0x595   :  { %v1290_v11 = vmul.f32 %v1282_v28, %v6622_v26  ;;  %v1288_v56 = vmul.f32 %v1279_v7, %v8658_v45  ;;  %5149 = vmatprep.mubr.msk.f32.mxu0 %vm8659_vm7, %v6706_v10  ;;  %v1264_v0 = vpop.permute.xlu0 %1263  ;;  %v1369_v22 = vmax.f32 %v1367_v39, %v1368_v9  ;;  %vm8664_vm5 = vmmov %vm8657_vm3  ;;  %vm8495_vm3 = vcmask 253952  }
 0x596   :  { %v1435_v24 = vmax.f32 %v6785_v44, 1.0  ;;  %v1449_v49 = vrot.slane %v1448_v3, 1  ;;  %v1384_v57 = vadd.f32 %v1383_v47, %v1382_v46  ;;  %v1285_v27 = vmul.f32 %v1264_v0, %v8660_v35  ;;  %vm8665_vm7 = vmmov %vm8664_vm5 }
 0x597   :  { %v1334_v53 = vsel %vm8661_vm9, %v1290_v11, 0.0  ;;  %v6803_v42 = vmul.f32 %v1288_v56, %v6713_v59  ;;  %5164 = vmatmul.mubr.msk.f32.vlgmr.msra.gmra.mrb[24].mxu1 %vm8653_vm1, %v1290_v11  ;;  %v1319_v43 = vsel %vm8531_vm6, %v1290_v11, -3.4028235e+38  ;;  %v1370_v29 = vrot.slane %v1369_v22, 4  ;;  %vm8666_vm9 = vmmov %vm8653_vm1 }
 0x598   :  { %v6808_v28 = vadd.f32 %v1449_v49, %v1448_v3  ;;  %v1385_v9 = vrot.slane %v1384_v57, 2  ;;  %v1427_v47 = vsel %vm8662_vm12, %v6788_v32, 0.0  ;;  %v1335_v46 = vadd.f32 %v1334_v53, %v1333_v1  ;;  %5166 = vmatprep.mubr.msk.f32.mxu1 %vm8663_vm11, %v6710_v58  ;;  %5150 = vmatmul.mubr.msk.f32.gmra.mrb[20].mxu0 %vm8664_vm5, %v6743_v6  ;;  %vm8668_vm5 = vmmov %vm8653_vm1 }
 0x599   :  { %5692 = vrcp.f32 %v1435_v24  ;;  %v1293_v37 = vmul.f32 %v1285_v27, %v6661_v4  ;;  %5152 = vmatprep.mubr.msk.f32.mxu0 %vm8665_vm7, %v6721_v13  ;;  %v1274_v3 = vpop.permute.xlu0 %1273  ;;  %v1321_v39 = vsel %vm8666_vm9, %v1319_v43, -inf  ;;  %v1371_v7 = vmax.f32 %v1369_v22, %v1370_v29  ;;  %vm8669_vm7 = vmmov %vm8653_vm1 }
 0x59a   :  { %v1386_v11 = vadd.f32 %v1385_v9, %v1384_v57  ;;  %v1336_v45 = vrot.slane %v1335_v46, 4  ;;  %v1473_v1 = vsel %vm8653_vm1, %v6803_v42, 0.0  ;;  %v8667_v58 = vmax.f32 %v6116_v8, 0.0  ;;  %vm8670_vm9 = vmmov %vm8653_vm1 }
 0x59b   :  { %vm1376_vm12 = vcmp.gt.f32.partialorder %v6757_v33, 0.5  ;;  %vm8520_vm11 = vcmp.gt.f32.partialorder %v6713_v59, 0.5  ;;  %v1426_v0 = vsel %vm8668_vm5, %v1293_v37, 0.0  ;;  %5167 = vmatmul.mubr.msk.f32.gmra.mrb[26].mxu1 %vm8669_vm7, %v6752_v54  ;;  %v1322_v24 = vmax.f32 %v6755_v52, %v1321_v39  ;;  %v5689_v54 = vpop.eup %5688  ;;  %vm8673_vm15 = vmmov %vm8670_vm9 }
 0x59c   :  { %v1287_v56 = vmul.f32 %v1274_v3, %v8667_v58  ;;  %v1372_v22 = vrot.slane %v1371_v7, 2  ;;  %v1412_v49 = vsel %vm8522_vm8, %v6788_v32, -3.4028235e+38  ;;  %v1481_v57 = vmax.f32 %v6808_v28, 1.0  ;;  %5169 = vmatprep.mubr.msk.f32.mxu1 %vm8670_vm9, %v1293_v37 }
 0x59d   :  { %v1387_v8 = vrot.slane %v1386_v11, 1  ;;  %v1337_v35 = vadd.f32 %v1336_v45, %v1335_v46  ;;  %v1428_v27 = vadd.f32 %v1427_v47, %v1426_v0  ;;  %vm8671_vm1 = vcmask 523264   ;;  %v1395_v45 = vld [vmem:[#allocation3 + $0x1] sm:$0x1] }
 0x59e   :  { %5153 = vmatmul.mubr.msk.f32.gmra.mrb[22].mxu0 %vm8671_vm1, %v6774_v50  ;;  %vm8521_vm5 = vcmp.gt.f32.partialorder %v6687_v23, 0.5  ;;  %v1295_v52 = vmul.f32 %v1287_v56, %v6687_v23  ;;  %vm8672_vm7 = vmmov %vm8671_vm1  ;;  %v1323_v53 = vrot.slane %v1322_v24, 4  ;;  %v1373_v43 = vmax.f32 %v1371_v7, %v1372_v22  ;;  %v5691_v39 = vpop.eup %5690 }
 0x59f   :  { %5191 = vmatprep.mubr.msk.f32.mxu0 %vm8672_vm7, %v6617_v30  ;;  %v1414_v29 = vsel %vm8673_vm15, %v1412_v49, -inf  ;;  %v1388_v9 = vadd.f32 %v1387_v8, %v1386_v11  ;;  %v1338_v46 = vrot.slane %v1337_v35, 2  ;;  %v1429_v47 = vrot.slane %v1428_v27, 4  ;;  %vm8674_vm1 = vmmov %vm8670_vm9 }
 0x5a0   :  { %v1411_v3 = vsel %vm8523_vm2, %v1293_v37, -3.4028235e+38  ;;  %v1472_v58 = vsel %vm8670_vm9, %v1295_v52, 0.0  ;;  %5170 = vmatmul.mubr.msk.f32.gmra.mrb[28].mxu1 %vm8674_vm1, %v6788_v32  ;;  %v1324_v56 = vmax.f32 %v1322_v24, %v1323_v53  ;;  %v1374_v0 = vrot.slane %v1373_v43, 1  ;;  %vm8675_vm7 = vmmov %vm8674_vm1 }
 0x5a1   :  { %v1413_v14 = vsel %vm8675_vm7, %v1411_v3, -inf  ;;  %v1391_v7 = vmul.f32 %v5691_v39, %v1388_v9  ;;  %v1339_v22 = vadd.f32 %v1338_v46, %v1337_v35  ;;  %v1430_v49 = vadd.f32 %v1429_v47, %v1428_v27  ;;  %vm8676_vm15 = vmmov %vm8674_vm1 }
 0x5a2   :  { %v1474_v11 = vadd.f32 %v1473_v1, %v1472_v58  ;;  %5172 = vmatprep.mubr.msk.f32.mxu1 %vm8676_vm15, %v1295_v52  ;;  %5694 = vrcp.f32 %v1481_v57  ;;  %v1325_v8 = vrot.slane %v1324_v56, 2  ;;  %v1375_v37 = vmax.f32 %v1373_v43, %v1374_v0  ;;  %vm8677_vm9 = vmmov %vm8674_vm1 }
 0x5a3   :  { %v1415_v18 = vmax.f32 %v1413_v14, %v1414_v29  ;;  %v1396_v17 = vadd.f32 %v1395_v45, %v1391_v7  ;;  %v1340_v55 = vrot.slane %v1339_v22, 1  ;;  %v1431_v20 = vrot.slane %v1430_v49, 2  ;;  %v5693_v32 = vpop.eup %5692  ;;  %v1349_v29 = vld [vmem:[#allocation3] sm:$0x1] }
 0x5a4   :  { %v1475_v12 = vrot.slane %v1474_v11, 4  ;;  %5173 = vmatmul.mubr.msk.f32.gmra.mrb[30].mxu1 %vm8677_vm9, %v6803_v42  ;;  %v1326_v24 = vmax.f32 %v1324_v56, %v1325_v8  ;;  %v1379_v35 = vsel %vm1376_vm12, %v1375_v37, 0.0  ;;  %v1458_v57 = vsel %vm8520_vm11, %v6803_v42, -3.4028235e+38  ;;  %vm8678_vm12 = vmmov %vm8674_vm1 }
 0x5a5   :  { %v1416_v1 = vrot.slane %v1415_v18, 4  ;;  %1397 = vst.msk [vmem:[#allocation3 + $0x1] sm:$0x1] %vm8495_vm3, %v1396_v17  ;;  %v1341_v14 = vadd.f32 %v1340_v55, %v1339_v22  ;;  %v1432_v27 = vadd.f32 %v1431_v20, %v1430_v49  ;;  %v1393_v43 = vadd.f32 %v1392_v31, %v1379_v35  ;;  %v1345_v55 = vld [vmem:[#allocation2] sm:$0x1] }
 0x5a6   :  { %v1476_v53 = vadd.f32 %v1475_v12, %v1474_v11  ;;  %v1327_v9 = vrot.slane %v1326_v24, 1  ;;  %v1460_v47 = vsel %vm8674_vm1, %v1458_v57, -inf  ;;  %v1457_v33 = vsel %vm8521_vm5, %v1295_v52, -3.4028235e+38 }
 0x5a7   :  { %v1417_v46 = vmax.f32 %v1415_v18, %v1416_v1  ;;  %v1344_v3 = vmul.f32 %v5689_v54, %v1341_v14  ;;  %v1433_v39 = vrot.slane %v1432_v27, 1  ;;  %1394 = vst.msk [vmem:[#allocation2 + $0x1] sm:$0x1] %vm8495_vm3, %v1393_v43  ;;  %v1459_v42 = vsel %vm8678_vm12, %v1457_v33, -inf  ;;  %v1441_v18 = vld [vmem:[#allocation3 + $0x2] sm:$0x1] }
 0x5a8   :  { %v1477_v45 = vrot.slane %v1476_v53, 2  ;;  %v1328_v17 = vmax.f32 %v1326_v24, %v1327_v9  ;;  %v1461_v12 = vmax.f32 %v1459_v42, %v1460_v47  ;;  %vm1329_vm7 = vcmp.gt.f32.partialorder %v6725_v34, 0.5  ;;  %v1487_v1 = vld [vmem:[#allocation3 + $0x3] sm:$0x1]  ;;  %v1438_v14 = vld [vmem:[#allocation2 + $0x2] sm:$0x1] }
 0x5a9   :  { %v1418_v20 = vrot.slane %v1417_v46, 2  ;;  %v1350_v31 = vadd.f32 %v1349_v29, %v1344_v3  ;;  %v1434_v58 = vadd.f32 %v1433_v39, %v1432_v27  ;;  %vm1422_vm15 = vcmp.gt.f32.partialorder %v6785_v44, 0.5  ;;  %v1484_v47 = vld [vmem:[#allocation2 + $0x3] sm:$0x1] }
 0x5aa   :  { %v1478_v56 = vadd.f32 %v1477_v45, %v1476_v53  ;;  %v1332_v0 = vsel %vm1329_vm7, %v1328_v17, 0.0  ;;  %v1462_v52 = vrot.slane %v1461_v12, 4  ;;  %vm1468_vm9 = vcmp.gt.f32.partialorder %v6808_v28, 0.5 }
 0x5ab   :  { %v1419_v7 = vmax.f32 %v1417_v46, %v1418_v20  ;;  %1351 = vst.msk [vmem:[#allocation3] sm:$0x1] %vm8495_vm3, %v1350_v31  ;;  %v1437_v54 = vmul.f32 %v5693_v32, %v1434_v58  ;;  %v1346_v49 = vadd.f32 %v1345_v55, %v1332_v0 }
 0x5ac   :  { %v1479_v22 = vrot.slane %v1478_v56, 1  ;;  %v5695_v11 = vpop.eup %5694  ;;  %v1463_v37 = vmax.f32 %v1461_v12, %v1462_v52 }
 0x5ad   :  { %v1420_v8 = vrot.slane %v1419_v7, 1  ;;  %v1442_v24 = vadd.f32 %v1441_v18, %v1437_v54  ;;  %1348 = vst.msk [vmem:[#allocation2] sm:$0x1] %vm8495_vm3, %v1346_v49 }
 0x5ae   :  { %v1480_v35 = vadd.f32 %v1479_v22, %v1478_v56  ;;  %v1464_v34 = vrot.slane %v1463_v37, 2 }
 0x5af   :  { %v1421_v57 = vmax.f32 %v1419_v7, %v1420_v8  ;;  %1443 = vst.msk [vmem:[#allocation3 + $0x2] sm:$0x1] %vm8495_vm3, %v1442_v24 }
 0x5b0   :  { %v1483_v27 = vmul.f32 %v5695_v11, %v1480_v35  ;;  %v1465_v32 = vmax.f32 %v1463_v37, %v1464_v34 }
 0x5b1   :  { %v1425_v53 = vsel %vm1422_vm15, %v1421_v57, 0.0 }
 0x5b2   :  { %v1488_v43 = vadd.f32 %v1487_v1, %v1483_v27  ;;  %v1439_v29 = vadd.f32 %v1438_v14, %v1425_v53  ;;  %v1466_v9 = vrot.slane %v1465_v32, 1 }
 0x5b4   :  { %1489 = vst.msk [vmem:[#allocation3 + $0x3] sm:$0x1] %vm8495_vm3, %v1488_v43  ;;  %1440 = vst.msk [vmem:[#allocation2 + $0x2] sm:$0x1] %vm8495_vm3, %v1439_v29  ;;  %v1467_v46 = vmax.f32 %v1465_v32, %v1466_v9 }
 0x5b6   :  { %v1471_v33 = vsel %vm1468_vm9, %v1467_v46, 0.0 }
 0x5b7   :  { %v1485_v3 = vadd.f32 %v1484_v47, %v1471_v33 }
 0x5b9   :  { %1486 = vst.msk [vmem:[#allocation2 + $0x3] sm:$0x1] %vm8495_vm3, %v1485_v3 }
 0x663   :  { %v5145_v39 = vpop.f32.mrb[16].mxu0 }
 0x664   :  { %v1586_v44 = vadd.f32 %v5145_v39, %v6622_v26  ;;  %v1580_v45 = vpop.f32.mrb[17].mxu0 }
 0x665   :  { %v1581_v42 = vadd.f32 %v1580_v45, %v6611_v2 }
 0x666   :  { %v1628_v17 = vmax.f32 %v1586_v44, 1e-12  ;;  %vm1620_vm1 = vcmp.gt.f32.partialorder %v1586_v44, 0.0 }
 0x667   :  { %v1627_v55 = vmax.f32 %v1581_v42, 1e-12  ;;  %v5148_v20 = vpop.f32.mrb[18].mxu0  ;;  %vm1619_vm12 = vcmp.gt.f32.partialorder %v1581_v42, 0.0 }
 0x668   :  { %5696 = vrsqrt.f32 %v1628_v17  ;;  %v1596_v12 = vadd.f32 %v5148_v20, %v6644_v21  ;;  %v1590_v31 = vpop.f32.mrb[19].mxu0 }
 0x669   :  { %5698 = vrsqrt.f32 %v1627_v55  ;;  %v1591_v28 = vadd.f32 %v1590_v31, %v6637_v36 }
 0x66a   :  { %v1630_v58 = vmax.f32 %v1596_v12, 1e-12  ;;  %v6875_v56 = vpop.f32.mrb[24].mxu1  ;;  %vm1622_vm7 = vcmp.gt.f32.partialorder %v1596_v12, 0.0 }
 0x66b   :  { %v1629_v18 = vmax.f32 %v1591_v28, 1e-12  ;;  %v6877_v0 = vpop.f32.mrb[25].mxu1  ;;  %v5151_v7 = vpop.f32.mrb[20].mxu0  ;;  %vm1621_vm15 = vcmp.gt.f32.partialorder %v1591_v28, 0.0 }
 0x66c   :  { %5700 = vrsqrt.f32 %v1630_v58  ;;  %v1606_v52 = vadd.f32 %v5151_v7, %v6671_v48  ;;  %v1600_v54 = vpop.f32.mrb[21].mxu0 }
 0x66d   :  { %5702 = vrsqrt.f32 %v1629_v18  ;;  %v1601_v22 = vadd.f32 %v1600_v54, %v6661_v4 }
 0x66e   :  { %v1632_v49 = vmax.f32 %v1606_v52, 1e-12  ;;  %v6881_v11 = vpop.f32.mrb[26].mxu1  ;;  %vm1624_vm9 = vcmp.gt.f32.partialorder %v1606_v52, 0.0 }
 0x66f   :  { %v1631_v8 = vmax.f32 %v1601_v22, 1e-12  ;;  %v6883_v37 = vpop.f32.mrb[27].mxu1 }
 0x670   :  { %5704 = vrsqrt.f32 %v1632_v49 }
 0x671   :  { %v5154_v24 = vpop.f32.mrb[22].mxu0  ;;  %5706 = vrsqrt.f32 %v1631_v8 }
 0x672   :  { %v1616_v35 = vadd.f32 %v5154_v24, %v6713_v59  ;;  %v1610_v1 = vpop.f32.mrb[23].mxu0  ;;  %v5697_v14 = vpop.eup %5696  ;;  %v2039_v24 = vld [vmem:[%s8430_s5] sm:$0xff] }
 0x673   :  { %v1611_v57 = vadd.f32 %v1610_v1, %v6687_v23  ;;  %v6887_v27 = vpop.f32.mrb[28].mxu1  ;;  %v5699_v53 = vpop.eup %5698  ;;  %v6889_v32 = vsel %vm1620_vm1, %v5697_v14, 0.0  ;;  %vm1623_vm1 = vcmp.gt.f32.partialorder %v1601_v22, 0.0  ;;  %v2041_v14 = vld [vmem:[%s8430_s5 + $0x10] sm:$0xff] }
 0x674   :  { %v1634_v34 = vmax.f32 %v1616_v35, 1e-12  ;;  %v6891_v29 = vpop.f32.mrb[29].mxu1  ;;  %v6893_v9 = vsel %vm1619_vm12, %v5699_v53, 0.0  ;;  %1808 = vperm.xlu1 %5635, %v6889_v32   ;;  %vm1626_vm12 = vcmp.gt.f32.partialorder %v1616_v35, 0.0  ;;  %v1652_v12 = vmul.f32 %v6889_v32, %v6622_v26  ;;  %v2040_v35 = vld [vmem:[%s8430_s5 + $0x8] sm:$0xff] }
 0x675   :  { %v1633_v43 = vmax.f32 %v1611_v57, 1e-12  ;;  %1803 = vperm.xlu0 %5634, %v6893_v9   ;;  %v1651_v58 = vmul.f32 %v6893_v9, %v6611_v2 }
 0x676   :  { %5708 = vrsqrt.f32 %v1634_v34  ;;  %v5701_v46 = vpop.eup %5700  ;;  %v6924_v7 = vmul.f32 %v1652_v12, %v6889_v32  ;;  %v2042_v34 = vld [vmem:[%s8430_s5 + $0x18] sm:$0xff] }
 0x677   :  { %5710 = vrsqrt.f32 %v1633_v43  ;;  %v6897_v47 = vpop.f32.mrb[30].mxu1  ;;  %v5703_v33 = vpop.eup %5702  ;;  %v6899_v3 = vsel %vm1622_vm7, %v5701_v46, 0.0  ;;  %vm1625_vm7 = vcmp.gt.f32.partialorder %v1611_v57, 0.0  ;;  %v6929_v54 = vmul.f32 %v1651_v58, %v6893_v9 }
 0x678   :  { %v6901_v39 = vpop.f32.mrb[31].mxu1  ;;  %v6903_v44 = vsel %vm1621_vm15, %v5703_v33, 0.0  ;;  %1818 = vperm.xlu1 %5635, %v6899_v3   ;;  %v1654_v52 = vmul.f32 %v6899_v3, %v6644_v21  ;;  %v5636_v57 = vpack.i.bf16 %v2040_v35, %v2039_v24  ;;  %v5641_v46 = vpack.i.bf16 %v2042_v34, %v2041_v14 }
 0x679   :  { %1813 = vperm.xlu0 %5634, %v6903_v44   ;;  %v1653_v22 = vmul.f32 %v6903_v44, %v6637_v36  ;;  %vm8679_vm15 = vcmask 523264  }
 0x67a   :  { %v5705_v45 = vpop.eup %5704  ;;  %v6936_v49 = vmul.f32 %v1654_v52, %v6899_v3 }
 0x67b   :  { %v5707_v42 = vpop.eup %5706  ;;  %v6907_v17 = vsel %vm1624_vm9, %v5705_v45, 0.0  ;;  %v6947_v1 = vmul.f32 %v1653_v22, %v6903_v44  ;;  %vm8680_vm9 = vmmov %vm8679_vm15 }
 0x67c   :  { %v6909_v55 = vsel %vm1623_vm1, %v5707_v42, 0.0  ;;  %1828 = vperm.xlu1 %5635, %v6907_v17   ;;  %v1656_v43 = vmul.f32 %v6907_v17, %v6671_v48  ;;  %vm8681_vm1 = vmmov %vm8680_vm9 }
 0x67d   :  { %1823 = vperm.xlu0 %5634, %v6909_v55   ;;  %v1655_v8 = vmul.f32 %v6909_v55, %v6661_v4  ;;  %vm8684_vm3 = vmmov %vm8681_vm1 }
 0x67e   :  { %v6967_v45 = vmul.f32 %v1656_v43, %v6907_v17 }
 0x67f   :  { %v6958_v53 = vmul.f32 %v1655_v8, %v6909_v55 }
 0x680   :  { %v5709_v20 = vpop.eup %5708 }
 0x681   :  { %v5711_v31 = vpop.eup %5710  ;;  %v6915_v28 = vsel %vm1626_vm12, %v5709_v20, 0.0  ;;  %vm8682_vm12 = vmmov %vm8681_vm1 }
 0x682   :  { %v6919_v18 = vsel %vm1625_vm7, %v5711_v31, 0.0  ;;  %1838 = vperm.xlu1 %5635, %v6915_v28   ;;  %v1658_v33 = vmul.f32 %v6915_v28, %v6713_v59  ;;  %vm8683_vm7 = vmmov %vm8681_vm1 }
 0x683   :  { %1833 = vperm.xlu0 %5634, %v6919_v18   ;;  %v1657_v42 = vmul.f32 %v6919_v18, %v6687_v23 }
 0x684   :  { %v6974_v20 = vmul.f32 %v1658_v33, %v6915_v28 }
 0x685   :  { %v6977_v12 = vmul.f32 %v1657_v42, %v6919_v18 }
 0x686   :  { %1969 = vperm.xlu1 %5635, %v6924_v7  }
 0x687   :  { %1964 = vperm.xlu0 %5634, %v6929_v54  }
 0x68a   :  { %1979 = vperm.xlu1 %5635, %v6936_v49  }
 0x68b   :  { %1974 = vperm.xlu0 %5634, %v6947_v1  }
 0x68e   :  { %1984 = vperm.xlu1 %5635, %v6958_v53  }
 0x68f   :  { %5637 = vrot.lane.b32.xlu0 %v5636_v57, %s5791_s26 }
 0x692   :  { %5642 = vrot.lane.b32.xlu1 %v5641_v46, %s5791_s26 }
 0x693   :  { %1989 = vperm.xlu0 %5634, %v6967_v45  }
 0x696   :  { %1999 = vperm.xlu1 %5635, %v6974_v20  }
 0x697   :  { %1994 = vperm.xlu0 %5634, %v6977_v12  }
 0x6f3   :  { %v1809_v31 = vpop.permute.xlu1 %1808 }
 0x6f4   :  { %v1842_v58 = vmul.f32 %v6875_v56, %v1809_v31  ;;  %v1804_v52 = vpop.permute.xlu0 %1803 }
 0x6f5   :  { %v1841_v22 = vmul.f32 %v1804_v52, %v6877_v0 }
 0x6f7   :  { %v1819_v8 = vpop.permute.xlu1 %1818  ;;  %v5499_v24 = vpack.c.bf16 %v1842_v58, %v1841_v22 }
 0x6f8   :  { %v1844_v35 = vmul.f32 %v6881_v11, %v1819_v8  ;;  %v6984_v57 = vpop.permute.xlu0 %1813 }
 0x6f9   :  { %v1843_v14 = vmul.f32 %v6984_v57, %v6883_v37  ;;  %5500 = vmatprep.subr.bf16.mxu0 %v5499_v24 }
 0x6fa   :  { %5502 = vmatpush3.bf16.msra.mxu0 %v5499_v24 }
 0x6fb   :  { %v6988_v34 = vpop.permute.xlu1 %1828  ;;  %v5503_v43 = vpack.c.bf16 %v1844_v35, %v1843_v14 }
 0x6fc   :  { %v1846_v46 = vmul.f32 %v6887_v27, %v6988_v34  ;;  %v6992_v33 = vpop.permute.xlu0 %1823 }
 0x6fd   :  { %v1845_v42 = vmul.f32 %v6992_v33, %v6891_v29  ;;  %5504 = vmatprep.subr.bf16.mxu0 %v5503_v43 }
 0x6fe   :  { %5506 = vmatpush3.bf16.msra.mxu0 %v5503_v43 }
 0x6ff   :  { %v5507_v22 = vpack.c.bf16 %v1846_v46, %v1845_v42 }
 0x701   :  { %v6996_v58 = vpop.permute.xlu1 %1838  ;;  %5508 = vmatprep.subr.bf16.mxu0 %v5507_v22 }
 0x702   :  { %v1848_v5 = vmul.f32 %v6897_v47, %v6996_v58  ;;  %v7000_v24 = vpop.permute.xlu0 %1833  ;;  %5510 = vmatpush3.bf16.msra.mxu0 %v5507_v22 }
 0x703   :  { %v1847_v35 = vmul.f32 %v7000_v24, %v6901_v39 }
 0x705   :  { %v5511_v14 = vpack.c.bf16 %v1848_v5, %v1847_v35  ;;  %v1970_v22 = vpop.permute.xlu1 %1969 }
 0x706   :  { %v1965_v60 = vpop.permute.xlu0 %1964  ;;  %v2003_v19 = vmul.f32 %v6875_v56, %v1970_v22 }
 0x707   :  { %5512 = vmatprep.subr.bf16.mxu0 %v5511_v14  ;;  %v2002_v38 = vmul.f32 %v1965_v60, %v6877_v0 }
 0x708   :  { %5514 = vmatpush3.bf16.msra.mxu0 %v5511_v14 }
 0x709   :  { %v1980_v35 = vpop.permute.xlu1 %1979 }
 0x70a   :  { %v1975_v61 = vpop.permute.xlu0 %1974 }
 0x70b   :  { %5192 = vmatmul.mubr.msk.f32.vlgmr.msra.gmra.mrb[24].mxu0 %vm8679_vm15, %v6696_v41  ;;  %vm8685_vm15 = vmmov %vm8681_vm1 }
 0x70c   :  { %5194 = vmatprep.mubr.msk.f32.mxu0 %vm8680_vm9, %v6681_v62  ;;  %vm8686_vm9 = vmmov %vm8681_vm1 }
 0x70d   :  { %v1985_v14 = vpop.permute.xlu1 %1984 }
 0x70e   :  { %v5638_v43 = vpop.permute.xlu0 %5637 }
 0x70f   :  { %v5640_v46 = vunpack.i.h.bf16 %v5638_v43  ;;  %v5639_v42 = vunpack.i.l.bf16 %v5638_v43  ;;  %5195 = vmatmul.mubr.msk.f32.gmra.mrb[26].mxu0 %vm8681_vm1, %v6737_v63 }
 0x710   :  { %5197 = vmatprep.mubr.msk.f32.mxu0 %vm8682_vm12, %v6706_v10 }
 0x711   :  { %v5515_v5 = vpack.c.bf16 %v5640_v46, %v5639_v42  ;;  %v5643_v43 = vpop.permute.xlu1 %5642 }
 0x712   :  { %v5645_v51 = vunpack.i.h.bf16 %v5643_v43  ;;  %v5644_v46 = vunpack.i.l.bf16 %v5643_v43  ;;  %v2005_v43 = vmul.f32 %v6881_v11, %v1980_v35 }
 0x713   :  { %5198 = vmatmul.mubr.msk.f32.gmra.mrb[28].mxu0 %vm8683_vm7, %v6743_v6  ;;  %5516 = vmatprep.subr.bf16.mxu1 %v5515_v5 }
 0x714   :  { %5200 = vmatprep.mubr.msk.f32.mxu0 %vm8684_vm3, %v6721_v13  ;;  %5518 = vmatpush3.bf16.msra.mxu1 %v5515_v5  ;;  %v5519_v42 = vpack.c.bf16 %v5645_v51, %v5644_v46  ;;  %v1990_v51 = vpop.permute.xlu0 %1989  ;;  %vm8687_vm3 = vcmask 261120  }
 0x715   :  { %vm8688_vm1 = vmmov %vm8687_vm3 }
 0x716   :  { %5520 = vmatprep.subr.bf16.mxu1 %v5519_v42  ;;  %vm8689_vm12 = vmmov %vm8688_vm1 }
 0x717   :  { %5201 = vmatmul.mubr.msk.f32.gmra.mrb[30].mxu0 %vm8685_vm15, %v6774_v50  ;;  %vm8690_vm7 = vmmov %vm8688_vm1 }
 0x718   :  { %5239 = vmatprep.mubr.msk.f32.mxu0 %vm8686_vm9, %v6617_v30  ;;  %5522 = vmatpush3.bf16.msra.mxu1 %v5519_v42  ;;  %v4672_v30 = vld [vmem:[%s8431_s6 + $0x1] ss:$0 sm:$0xff]  ;;  %vm8691_vm15 = vmmov %vm8688_vm1 }
 0x719   :  { %vm8692_vm9 = vmmov %vm8688_vm1 }
 0x7de   :  { %v5193_v25 = vpop.f32.mrb[24].mxu0 }
 0x7df   :  { %v1955_v16 = vmul.f32 %v5193_v25, %v1809_v31  ;;  %v1915_v5 = vpop.f32.mrb[25].mxu0  ;;  %v2004_v25 = vmul.f32 %v1975_v61, %v6883_v37  ;;  %v2006_v61 = vmul.f32 %v1985_v14, %v6891_v29  ;;  %v1995_v37 = vpop.permute.xlu0 %1994 }
 0x7e0   :  { %v1954_v40 = vmul.f32 %v1915_v5, %v1804_v52  ;;  %v2008_v5 = vmul.f32 %v1995_v37, %v6901_v39 }
 0x7e1   :  { %v2011_v15 = vadd.f32 %v2003_v19, %v1955_v16 }
 0x7e2   :  { %v2010_v23 = vadd.f32 %v2002_v38, %v1954_v40  ;;  %v5196_v59 = vpop.f32.mrb[26].mxu0  ;;  %v2007_v38 = vmul.f32 %v6887_v27, %v1990_v51 }
 0x7e3   :  { %v7026_v46 = vadd.f32 %v4672_v30, %v2011_v15  ;;  %v1957_v42 = vmul.f32 %v5196_v59, %v1819_v8  ;;  %v1925_v4 = vpop.f32.mrb[27].mxu0 }
 0x7e4   :  { %v7029_v56 = vadd.f32 %v4672_v30, %v2010_v23  ;;  %v1956_v60 = vmul.f32 %v1925_v4, %v6984_v57  ;;  %v2000_v23 = vpop.permute.xlu1 %1999 }
 0x7e5   :  { %v2013_v0 = vadd.f32 %v2005_v43, %v1957_v42  ;;  %v8535_v40 = vmax.f32 %v7026_v46, 0.0  ;;  %v2009_v29 = vmul.f32 %v6897_v47, %v2000_v23 }
 0x7e6   :  { %v8532_v31 = vmax.f32 %v7029_v56, 0.0  ;;  %v2012_v52 = vadd.f32 %v2004_v25, %v1956_v60  ;;  %v5199_v16 = vpop.f32.mrb[28].mxu0 }
 0x7e7   :  { %v7035_v19 = vadd.f32 %v4672_v30, %v2013_v0  ;;  %v1959_v15 = vmul.f32 %v5199_v16, %v6988_v34  ;;  %v1935_v59 = vpop.f32.mrb[29].mxu0 }
 0x7e8   :  { %v7039_v11 = vadd.f32 %v4672_v30, %v2012_v52  ;;  %v1958_v4 = vmul.f32 %v1935_v59, %v6992_v33  ;;  %5211 = vmatprep.mubr.msk.f32.mxu1 %vm8687_vm3, %v8532_v31  ;;  %vm8693_vm3 = vmmov %vm8688_vm1  ;;  %v8763_v31 = vld [vmem:[#allocation18_spill] sm:$0xff] }
 0x7e9   :  { %v2015_v27 = vadd.f32 %v2007_v38, %v1959_v15  ;;  %5212 = vmatmul.mubr.msk.f32.vlgmr.msra.gmra.mrb[32].mxu1 %vm8688_vm1, %v8535_v40  ;;  %v8528_v22 = vmax.f32 %v7035_v19, 0.0  ;;  %v8767_v40 = vmov 0 }
 0x7ea   :  { %v8529_v8 = vmax.f32 %v7039_v11, 0.0  ;;  %v2014_v57 = vadd.f32 %v2006_v61, %v1958_v4  ;;  %v5202_v34 = vpop.f32.mrb[30].mxu0 }
 0x7eb   :  { %v7051_v35 = vadd.f32 %v4672_v30, %v2015_v27  ;;  %v1961_v33 = vmul.f32 %v5202_v34, %v6996_v58  ;;  %v1945_v14 = vpop.f32.mrb[31].mxu0 }
 0x7ec   :  { %v7055_v43 = vadd.f32 %v4672_v30, %v2014_v57  ;;  %v1960_v51 = vmul.f32 %v1945_v14, %v7000_v24  ;;  %5214 = vmatprep.mubr.msk.f32.mxu1 %vm8689_vm12, %v8529_v8  ;;  %vm8694_vm12 = vcmask 523264   ;;  %v8757_v8 = vmov 0 }
 0x7ed   :  { %v2017_v42 = vadd.f32 %v2009_v29, %v1961_v33  ;;  %5215 = vmatmul.mubr.msk.f32.gmra.mrb[34].mxu1 %vm8690_vm7, %v8528_v22  ;;  %v8526_v58 = vmax.f32 %v7051_v35, 0.0  ;;  %vm8695_vm7 = vmmov %vm8694_vm12  ;;  %v8755_v22 = vld [vmem:[#allocation15_spill] sm:$0xff] }
 0x7ee   :  { %v8527_v47 = vmax.f32 %v7055_v43, 0.0  ;;  %v2016_v25 = vadd.f32 %v2008_v5, %v1960_v51 }
 0x7ef   :  { %v7066_v60 = vadd.f32 %v4672_v30, %v2017_v42 }
 0x7f0   :  { %v7068_v39 = vadd.f32 %v4672_v30, %v2016_v25  ;;  %5217 = vmatprep.mubr.msk.f32.mxu1 %vm8691_vm15, %v8527_v47  ;;  %v4689_v30 = vld [vmem:[%s8431_s6 + $0x3] ss:$0 sm:$0xff]  ;;  %vm8696_vm15 = vmmov %vm8695_vm7 }
 0x7f1   :  { %5218 = vmatmul.mubr.msk.f32.gmra.mrb[36].mxu1 %vm8692_vm9, %v8526_v58  ;;  %v8518_v0 = vmax.f32 %v7066_v60, 0.0  ;;  %2331 = vrot.lane.b32.xlu0 %v4689_v30, %s5791_s26  ;;  %vm8697_vm9 = vmmov %vm8695_vm7 }
 0x7f2   :  { %v8519_v24 = vmax.f32 %v7068_v39, 0.0 }
 0x7f4   :  { %5220 = vmatprep.mubr.msk.f32.mxu1 %vm8693_vm3, %v8519_v24  ;;  %vm8698_vm3 = vmmov %vm8695_vm7 }
 0x7f5   :  { %5221 = vmatmul.mubr.msk.f32.gmra.mrb[38].mxu1 %vm8688_vm1, %v8518_v0  ;;  %vm8699_vm1 = vmmov %vm8698_vm3 }
 0x7f6   :  { %vm8700_vm14 = vmmov %vm8699_vm1 }
 0x8bc   :  { %v5213_v52 = vpop.f32.mrb[32].mxu1 }
 0x8bd   :  { %v2189_v16 = vmul.f32 %v5213_v52, %v6889_v32  ;;  %v2149_v38 = vpop.f32.mrb[33].mxu1 }
 0x8be   :  { %v2188_v15 = vmul.f32 %v2149_v38, %v6893_v9 }
 0x8c0   :  { %v5523_v59 = vpack.c.bf16 %v2189_v16, %v2188_v15  ;;  %v5216_v61 = vpop.f32.mrb[34].mxu1  ;;  %v2310_v15 = vmul.f32 %v5213_v52, %v6924_v7 }
 0x8c1   :  { %v2191_v23 = vmul.f32 %v5216_v61, %v6899_v3  ;;  %v2159_v4 = vpop.f32.mrb[35].mxu1 }
 0x8c2   :  { %v2190_v37 = vmul.f32 %v2159_v4, %v6903_v44  ;;  %5524 = vmatprep.subr.bf16.mxu0 %v5523_v59  ;;  %v2311_v7 = vmul.f32 %v2159_v4, %v6947_v1 }
 0x8c3   :  { %5526 = vmatpush3.bf16.msra.mxu0 %v5523_v59 }
 0x8c4   :  { %v5527_v27 = vpack.c.bf16 %v2191_v23, %v2190_v37  ;;  %v5219_v57 = vpop.f32.mrb[36].mxu1  ;;  %v2309_v37 = vmul.f32 %v2149_v38, %v6929_v54 }
 0x8c5   :  { %v2193_v34 = vmul.f32 %v5219_v57, %v6907_v17  ;;  %v2169_v29 = vpop.f32.mrb[37].mxu1 }
 0x8c6   :  { %v2192_v33 = vmul.f32 %v2169_v29, %v6909_v55  ;;  %5528 = vmatprep.subr.bf16.mxu0 %v5527_v27 }
 0x8c7   :  { %5530 = vmatpush3.bf16.msra.mxu0 %v5527_v27 }
 0x8c8   :  { %v5531_v14 = vpack.c.bf16 %v2193_v34, %v2192_v33  ;;  %v5222_v5 = vpop.f32.mrb[38].mxu1  ;;  %v2332_v34 = vpop.permute.xlu0 %2331 }
 0x8c9   :  { %v2195_v51 = vmul.f32 %v5222_v5, %v6915_v28  ;;  %v2179_v42 = vpop.f32.mrb[39].mxu1 }
 0x8ca   :  { %v2194_v25 = vmul.f32 %v2179_v42, %v6919_v18  ;;  %5532 = vmatprep.subr.bf16.mxu0 %v5531_v14 }
 0x8cb   :  { %5534 = vmatpush3.bf16.msra.mxu0 %v5531_v14 }
 0x8cc   :  { %v5535_v30 = vpack.c.bf16 %v2195_v51, %v2194_v25  ;;  %v2312_v25 = vmul.f32 %v5216_v61, %v6936_v49  ;;  %v2314_v49 = vmul.f32 %v5219_v57, %v6967_v45  ;;  %v2316_v57 = vmul.f32 %v5222_v5, %v6974_v20  ;;  %v8701_v20 = vld [vmem:[#allocation23_spill] sm:$0xff] }
 0x8ce   :  { %5536 = vmatprep.subr.bf16.mxu0 %v5535_v30 }
 0x8cf   :  { %5538 = vmatpush3.bf16.msra.mxu0 %v5535_v30 }
 0x8d2   :  { %5240 = vmatmul.mubr.msk.f32.vlgmr.msra.gmra.mrb[32].mxu0 %vm8694_vm12, %v6696_v41 }
 0x8d3   :  { %5242 = vmatprep.mubr.msk.f32.mxu0 %vm8695_vm7, %v6681_v62  ;;  %vm8709_vm7 = vmmov %vm8699_vm1 }
 0x8d6   :  { %5243 = vmatmul.mubr.msk.f32.gmra.mrb[34].mxu0 %vm8696_vm15, %v6737_v63  ;;  %vm8710_vm15 = vmmov %vm8699_vm1 }
 0x8d7   :  { %5245 = vmatprep.mubr.msk.f32.mxu0 %vm8697_vm9, %v6706_v10 }
 0x8da   :  { %5246 = vmatmul.mubr.msk.f32.gmra.mrb[36].mxu0 %vm8698_vm3, %v6743_v6 }
 0x8db   :  { %5248 = vmatprep.mubr.msk.f32.mxu0 %vm8699_vm1, %v6721_v13 }
 0x8de   :  { %5249 = vmatmul.mubr.msk.f32.gmra.mrb[38].mxu0 %vm8700_vm14, %v6774_v50 }
 0x9a5   :  { %v5241_v16 = vpop.f32.mrb[32].mxu0 }
 0x9a6   :  { %v2302_v59 = vmul.f32 %v5241_v16, %v6889_v32  ;;  %v2262_v23 = vpop.f32.mrb[33].mxu0 }
 0x9a7   :  { %v2301_v27 = vmul.f32 %v2262_v23, %v6893_v9 }
 0x9a8   :  { %v2318_v33 = vadd.f32 %v2310_v15, %v2302_v59 }
 0x9a9   :  { %v2317_v14 = vadd.f32 %v2309_v37, %v2301_v27  ;;  %v5244_v51 = vpop.f32.mrb[34].mxu0 }
 0x9aa   :  { %v2304_v30 = vmul.f32 %v5244_v51, %v6899_v3  ;;  %v2272_v0 = vpop.f32.mrb[35].mxu0  ;;  %v7116_v24 = vadd.f32 %v2332_v34, %v2318_v33 }
 0x9ab   :  { %v2303_v32 = vmul.f32 %v2272_v0, %v6903_v44  ;;  %v7120_v52 = vadd.f32 %v2332_v34, %v2317_v14  ;;  %v2313_v0 = vmul.f32 %v2169_v29, %v6958_v53  ;;  %v2315_v29 = vmul.f32 %v2179_v42, %v6977_v12  ;;  %v8702_v12 = vld [vmem:[#allocation25_spill] sm:$0xff]  ;;  %v8703_v42 = vld [vmem:[#allocation24_spill] sm:$0xff] }
 0x9ac   :  { %v2320_v54 = vadd.f32 %v2312_v25, %v2304_v30  ;;  %v2343_v9 = vsel %vm8531_vm6, %v7116_v24, -1e+30  ;;  %5712 = vtanh.f32 %v7116_v24 }
 0x9ad   :  { %v2319_v38 = vadd.f32 %v2311_v7, %v2303_v32  ;;  %2357 = vperm.xlu0 %5634, %v2343_v9   ;;  %v5247_v16 = vpop.f32.mrb[36].mxu0  ;;  %v2342_v3 = vsel %vm8533_vm10, %v7120_v52, -1e+30  ;;  %v8705_v9 = vld [vmem:[#allocation6_spill] sm:$0xff]  ;;  %5714 = vtanh.f32 %v7120_v52 }
 0x9ae   :  { %v7129_v61 = vadd.f32 %v2332_v34, %v2320_v54  ;;  %v2306_v44 = vmul.f32 %v5247_v16, %v6907_v17  ;;  %2352 = vperm.xlu1 %5635, %v2342_v3   ;;  %v2282_v1 = vpop.f32.mrb[37].mxu0  ;;  %v8704_v54 = vld [vmem:[#allocation5_spill] sm:$0xff]  ;;  %v8707_v3 = vld [vmem:[#allocation4_spill] sm:$0xff] }
 0x9af   :  { %v7133_v4 = vadd.f32 %v2332_v34, %v2319_v38  ;;  %v2305_v15 = vmul.f32 %v2282_v1, %v6909_v55  ;;  %vm8706_vm14 = vcmp.eq.s32.totalorder %v8704_v54, %v8705_v9  ;;  %vm8708_vm12 = vcmp.eq.s32.totalorder %v8707_v3, %v8705_v9 }
 0x9b0   :  { %v2322_v59 = vadd.f32 %v2314_v49, %v2306_v44  ;;  %v2345_v23 = vsel %vm8524_vm13, %v7129_v61, -1e+30 }
 0x9b1   :  { %v2321_v37 = vadd.f32 %v2313_v0, %v2305_v15  ;;  %2367 = vperm.xlu0 %5634, %v2345_v23   ;;  %v5250_v45 = vpop.f32.mrb[38].mxu0  ;;  %v2344_v17 = vsel %vm8530_vm4, %v7133_v4, -1e+30  ;;  %v8711_v23 = vld [vmem:[#allocation7_spill] sm:$0xff]  ;;  %5716 = vtanh.f32 %v7133_v4 }
 0x9b2   :  { %v7143_v27 = vadd.f32 %v2332_v34, %v2322_v59  ;;  %v2308_v53 = vmul.f32 %v5250_v45, %v6915_v28  ;;  %2362 = vperm.xlu1 %5635, %v2344_v17   ;;  %v2292_v55 = vpop.f32.mrb[39].mxu0  ;;  %vm8712_vm9 = vcmp.eq.s32.totalorder %v8711_v23, %v8705_v9  ;;  %v8713_v45 = vld [vmem:[#allocation8_spill] sm:$0xff]  ;;  %5718 = vtanh.f32 %v7129_v61 }
 0x9b3   :  { %v7147_v33 = vadd.f32 %v2332_v34, %v2321_v37  ;;  %v2307_v14 = vmul.f32 %v2292_v55, %v6919_v18  ;;  %vm8714_vm3 = vcmp.eq.s32.totalorder %v8713_v45, %v8705_v9 }
 0x9b4   :  { %v2324_v51 = vadd.f32 %v2316_v57, %v2308_v53  ;;  %v2347_v25 = vsel %vm8522_vm8, %v7143_v27, -1e+30 }
 0x9b5   :  { %v2323_v30 = vadd.f32 %v2315_v29, %v2307_v14  ;;  %2377 = vperm.xlu0 %5634, %v2347_v25   ;;  %v2346_v5 = vsel %vm8523_vm2, %v7147_v33, -1e+30  ;;  %5720 = vtanh.f32 %v7147_v33 }
 0x9b6   :  { %v7156_v28 = vadd.f32 %v2332_v34, %v2324_v51  ;;  %2372 = vperm.xlu1 %5635, %v2346_v5   ;;  %v8716_v51 = vld [vmem:[#allocation9_spill] sm:$0xff]  ;;  %v8718_v5 = vld [vmem:[#allocation10_spill] sm:$0xff]  ;;  %5722 = vtanh.f32 %v7143_v27 }
 0x9b7   :  { %v7158_v7 = vadd.f32 %v2332_v34, %v2323_v30 }
 0x9b8   :  { %v2349_v18 = vsel %vm8520_vm11, %v7156_v28, -1e+30 }
 0x9b9   :  { %2387 = vperm.xlu0 %5634, %v2349_v18   ;;  %v2348_v32 = vsel %vm8521_vm5, %v7158_v7, -1e+30  ;;  %5724 = vtanh.f32 %v7158_v7 }
 0x9ba   :  { %2382 = vperm.xlu1 %5635, %v2348_v32   ;;  %5726 = vtanh.f32 %v7156_v28 }
 0x9bd   :  { %2437 = vperm.xlu0 %5634, %v7116_v24  }
 0x9be   :  { %2432 = vperm.xlu1 %5635, %v7120_v52  }
 0x9c1   :  { %2447 = vperm.xlu0 %5634, %v7129_v61  }
 0x9c2   :  { %2442 = vperm.xlu1 %5635, %v7133_v4  }
 0x9c5   :  { %2457 = vperm.xlu0 %5634, %v7143_v27   ;;  %v4707_v27 = vld [vmem:[%s8428_s4 + $0x48] sm:$0xff] }
 0x9c6   :  { %2452 = vperm.xlu1 %5635, %v7147_v33   ;;  %v4706_v33 = vld [vmem:[%s8428_s4 + $0x40] sm:$0xff] }
 0x9c9   :  { %2467 = vperm.xlu0 %5634, %v7156_v28   ;;  %v4708_v28 = vld [vmem:[%s8428_s4 + $0x50] sm:$0xff] }
 0x9ca   :  { %2462 = vperm.xlu1 %5635, %v7158_v7   ;;  %v5555_v7 = vpack.c.bf16 %v4707_v27, %v4706_v33  ;;  %v8818_v27 = vld [vmem:[#allocation22_spill] sm:$0xff] }
 0x9cc   :  { %5556 = vmatprep.subr.bf16.mxu0 %v5555_v7 }
 0x9cd   :  { %5558 = vmatpush3.bf16.msra.mxu0 %v5555_v7 }
 0xa2c   :  { %v2358_v34 = vpop.permute.xlu0 %2357 }
 0xa2d   :  { %v2391_v38 = vsel %vm8706_vm14, %v2358_v34, 0.0  ;;  %v2353_v16 = vpop.permute.xlu1 %2352  ;;  %vm8715_vm14 = vmmov %vm8699_vm1 }
 0xa2e   :  { %v2390_v49 = vsel %vm8708_vm12, %v2353_v16, 0.0  ;;  %v2399_v44 = vsel %vm8709_vm7, %v2391_v38, 0.0  ;;  %vm8717_vm12 = vcmp.eq.s32.totalorder %v8716_v51, %v8705_v9  ;;  %vm8719_vm7 = vcmp.eq.s32.totalorder %v8718_v5, %v8705_v9 }
 0xa2f   :  { %v2398_v1 = vsel %vm8710_vm15, %v2390_v49, 0.0  ;;  %vm8720_vm15 = vmmov %vm8699_vm1 }
 0xa30   :  { %v2368_v0 = vpop.permute.xlu0 %2367  ;;  %v2400_v59 = vadd.f32 %v2399_v44, %v2398_v1  ;;  %v8722_v44 = vld [vmem:[#allocation11_spill] sm:$0xff] }
 0xa31   :  { %v2363_v15 = vpop.permute.xlu1 %2362  ;;  %v2393_v37 = vsel %vm8712_vm9, %v2368_v0, 0.0  ;;  %vm8721_vm9 = vmmov %vm8699_vm1 }
 0xa32   :  { %v2392_v17 = vsel %vm8714_vm3, %v2363_v15, 0.0  ;;  %v2403_v29 = vsel %vm8715_vm14, %v2393_v37, 0.0  ;;  %vm8723_vm3 = vcmp.eq.s32.totalorder %v8722_v44, %v8705_v9  ;;  %v8724_v15 = vld [vmem:[#allocation12_spill] sm:$0xff]  ;;  %vm8726_vm14 = vmmov %vm8721_vm9 }
 0xa33   :  { %v2401_v57 = vsel %vm8699_vm1, %v2392_v17, 0.0  ;;  %vm8725_vm1 = vcmp.eq.s32.totalorder %v8724_v15, %v8705_v9 }
 0xa34   :  { %v2402_v53 = vadd.f32 %v2401_v57, %v2400_v59  ;;  %v2378_v55 = vpop.permute.xlu0 %2377 }
 0xa35   :  { %v2373_v14 = vpop.permute.xlu1 %2372  ;;  %v2395_v25 = vsel %vm8717_vm12, %v2378_v55, 0.0  ;;  %vm8727_vm12 = vmmov %vm8721_vm9 }
 0xa36   :  { %v2404_v30 = vadd.f32 %v2403_v29, %v2402_v53  ;;  %v2394_v18 = vsel %vm8719_vm7, %v2373_v14, 0.0  ;;  %v2407_v16 = vsel %vm8721_vm9, %v2395_v25, 0.0 }
 0xa37   :  { %v2405_v32 = vsel %vm8720_vm15, %v2394_v18, 0.0 }
 0xa38   :  { %v2406_v34 = vadd.f32 %v2405_v32, %v2404_v30  ;;  %v2388_v38 = vpop.permute.xlu0 %2387 }
 0xa39   :  { %v2383_v49 = vpop.permute.xlu1 %2382  ;;  %v2397_v1 = vsel %vm8723_vm3, %v2388_v38, 0.0  ;;  %vm8728_vm3 = vcmp.lt.s32.totalorder %v8705_v9, %v8704_v54 }
 0xa3a   :  { %v2408_v0 = vadd.f32 %v2407_v16, %v2406_v34  ;;  %v2396_v59 = vsel %vm8725_vm1, %v2383_v49, 0.0  ;;  %v2411_v57 = vsel %vm8727_vm12, %v2397_v1, 0.0  ;;  %vm8729_vm12 = vcmp.lt.s32.totalorder %v8705_v9, %v8707_v3 }
 0xa3b   :  { %v2409_v37 = vsel %vm8726_vm14, %v2396_v59, 0.0  ;;  %v8736_v59 = vld [vmem:[#allocation13_spill] sm:$0xff]  ;;  %v8777_v1 = vmov 0 }
 0xa3c   :  { %v2410_v17 = vadd.f32 %v2409_v37, %v2408_v0  ;;  %v2438_v18 = vpop.permute.xlu0 %2437  ;;  %v8735_v0 = vld [vmem:[#allocation17_spill] sm:$0xff]  ;;  %v8738_v37 = vmov 0 }
 0xa3d   :  { %v2433_v38 = vpop.permute.xlu1 %2432 }
 0xa3e   :  { %v2412_v53 = vadd.f32 %v2411_v57, %v2410_v17  ;;  %v8742_v57 = vmov 0.0  }
 0xa40   :  { %v2413_v55 = vrot.slane %v2412_v53, 4  ;;  %v2448_v34 = vpop.permute.xlu0 %2447 }
 0xa41   :  { %v2443_v16 = vpop.permute.xlu1 %2442 }
 0xa42   :  { %v2414_v29 = vadd.f32 %v2413_v55, %v2412_v53  ;;  %v8743_v55 = vld [vmem:[#allocation14_spill] sm:$0xff] }
 0xa44   :  { %v2415_v14 = vrot.slane %v2414_v29, 2  ;;  %v2458_v58 = vpop.permute.xlu0 %2457 }
 0xa46   :  { %v2416_v25 = vadd.f32 %v2415_v14, %v2414_v29  ;;  %v8747_v14 = vmov 0 }
 0xa48   :  { %v2417_v30 = vrot.slane %v2416_v25, 1 }
 0xa4a   :  { %v7206_v32 = vadd.f32 %v2417_v30, %v2416_v25 }
 0xa4c   :  { %vm2479_vm7 = vcmp.eq.f32.partialorder %v7206_v32, %v2438_v18  ;;  %vm2478_vm15 = vcmp.eq.f32.partialorder %v7206_v32, %v2433_v38  ;;  %vm2481_vm9 = vcmp.eq.f32.partialorder %v7206_v32, %v2448_v34  ;;  %vm2480_vm14 = vcmp.eq.f32.partialorder %v7206_v32, %v2443_v16 }
 0xa4d   :  { %vm2487_vm1 = vmand %vm2479_vm7, %vm8728_vm3  ;;  %vm8538_vm5 = vcmp.gt.f32.partialorder %v7206_v32, -5e+29  ;;  %vm2470_vm8 = vcmp.gt.f32.partialorder %v7206_v32, %v2433_v38  ;;  %vm2471_vm13 = vcmp.gt.f32.partialorder %v7206_v32, %v2438_v18  ;;  %vm8732_vm7 = vcmp.lt.s32.totalorder %v8705_v9, %v8713_v45  ;;  %v8750_v18 = vld [vmem:[#allocation16_spill] sm:$0xff] }
 0xa4e   :  { %vm2486_vm11 = vmand %vm2478_vm15, %vm8729_vm12  ;;  %vm8737_vm15 = vcmp.eq.f32.partialorder %v8735_v0, %v8736_v59  ;;  %v8752_v38 = vmov 0  ;;  %vm2483_vm4 = vcmp.eq.f32.partialorder %v7206_v32, %v2458_v58 }
 0xa4f   :  { %vm7223_vm2 = vmand %vm2481_vm9, %vm8525_vm0 }
 0xa50   :  { %vm7231_vm3 = vmand %vm2480_vm14, %vm8732_vm7  ;;  %vm8744_vm14 = vcmp.eq.f32.partialorder %v8735_v0, %v8743_v55 }
 0xa51   :  { %vm7240_vm12 = vmand %vm8737_vm15, %vm8538_vm5 }
 0xa52   :  { %v8739_v37 = vsel %vm7240_vm12, 4294967295, %v8738_v37  ;;  %vm7244_vm9 = vmor %vm2470_vm8, %vm2486_vm11  ;;  %v2543_v53 = vsel %vm7240_vm12, 1.0, %v8742_v57  ;;  %vm8749_vm8 = vcmask 523264   ;;  %vm8751_vm11 = vcmp.eq.f32.partialorder %v8735_v0, %v8750_v18 }
 0xa53   :  { %vm7256_vm7 = vmand %vm8744_vm14, %vm8538_vm5  ;;  %v2553_v25 = vsel %vm8749_vm8, %v2543_v53, 0.0  ;;  %vm2475_vm12 = vcmp.gt.f32.partialorder %v7206_v32, %v2458_v58  ;;  %v8775_v58 = vld [vmem:[#allocation21_spill] sm:$0xff] }
 0xa54   :  { %vm7260_vm15 = vmor %vm2471_vm13, %vm2487_vm1  ;;  %v2542_v30 = vsel %vm7256_vm7, 1.0, %v8742_v57  ;;  %vm2473_vm13 = vcmp.gt.f32.partialorder %v7206_v32, %v2448_v34  ;;  %vm2472_vm1 = vcmp.gt.f32.partialorder %v7206_v32, %v2443_v16  ;;  %2554 = vadd.xlane.f32.xlu0 %v2553_v25  ;;  %v8759_v16 = vld [vmem:[#allocation19_spill] sm:$0xff]  ;;  %v8761_v25 = vmov 0 }
 0xa55   :  { %v8748_v14 = vsel %vm7260_vm15, 4294967295, %v8747_v14  ;;  %vm7273_vm0 = vmand %vm8751_vm11, %vm8538_vm5 }
 0xa56   :  { %v8753_v38 = vsel %vm7273_vm0, 4294967295, %v8752_v38  ;;  %vm8754_vm14 = vmmov %vm8749_vm8  ;;  %v2544_v47 = vsel %vm7273_vm0, 1.0, %v8742_v57  ;;  %vm8756_vm8 = vcmp.eq.f32.partialorder %v8735_v0, %v8755_v22  ;;  %vm8771_vm0 = vcmask 523264  }
 0xa57   :  { %v2550_v53 = vsel %vm8754_vm14, %v2542_v30, 0.0  ;;  %vm7288_vm11 = vmand %vm8756_vm8, %vm8538_vm5  ;;  %vm8760_vm14 = vcmp.eq.f32.partialorder %v8735_v0, %v8759_v16  ;;  %v2453_v30 = vpop.permute.xlu1 %2452  ;;  %vm8764_vm8 = vcmp.eq.f32.partialorder %v8735_v0, %v8763_v31  ;;  %v2556_v18 = vsel %vm8771_vm0, %v2544_v47, 0.0 }
 0xa58   :  { %v8758_v8 = vsel %vm7288_vm11, 4294967295, %v8757_v8  ;;  %2551 = vadd.xlane.f32.xlu1 %v2550_v53  ;;  %v2545_v34 = vsel %vm7288_vm11, 1.0, %v8742_v57  ;;  %vm7301_vm6 = vmand %vm8760_vm14, %vm8538_vm5  ;;  %v8765_v53 = vmov 0  ;;  %2557 = vadd.xlane.f32.xlu0 %v2556_v18  ;;  %v8780_v18 = vld [vmem:[#allocation20_spill] sm:$0xff] }
 0xa59   :  { %v8762_v25 = vsel %vm7301_vm6, 4294967295, %v8761_v25  ;;  %vm7310_vm10 = vmand %vm8764_vm8, %vm8538_vm5  ;;  %vm8772_vm8 = vcmp.lt.s32.totalorder %v8705_v9, %v8716_v51  ;;  %v2546_v31 = vsel %vm7301_vm6, 1.0, %v8742_v57 }
 0xa5a   :  { %v8766_v53 = vsel %vm7310_vm10, 4294967295, %v8765_v53  ;;  %vm7316_vm11 = vmor %vm2473_vm13, %vm7223_vm2  ;;  %vm2482_vm2 = vcmp.eq.f32.partialorder %v7206_v32, %v2453_v30  ;;  %v2547_v47 = vsel %vm7310_vm10, 1.0, %v8742_v57  ;;  %vm8781_vm13 = vcmp.eq.f32.partialorder %v8735_v0, %v8780_v18 }
 0xa5b   :  { %v8768_v40 = vsel %vm7316_vm11, 4294967295, %v8767_v40  ;;  %vm7322_vm14 = vmor %vm2472_vm1, %vm7231_vm3  ;;  %vm8776_vm3 = vcmp.eq.f32.partialorder %v8735_v0, %v8775_v58  ;;  %vm8786_vm10 = vcmask 523264   ;;  %v2463_v58 = vpop.permute.xlu1 %2462 }
 0xa5c   :  { %vm2491_vm5 = vmand %vm2483_vm4, %vm8772_vm8  ;;  %v2562_v16 = vsel %vm8786_vm10, %v2546_v31, 0.0 }
 0xa5d   :  { %vm8773_vm15 = vmmov %vm8771_vm0  ;;  %vm8774_vm0 = vcmp.gt.f32.partialorder %v7206_v32, -5e+29  ;;  %2563 = vadd.xlane.f32.xlu0 %v2562_v16 }
 0xa5e   :  { %v2559_v49 = vsel %vm8773_vm15, %v2545_v34, 0.0  ;;  %vm7344_vm4 = vmand %vm8776_vm3, %vm8774_vm0  ;;  %v8782_v34 = vmov 0  ;;  %vm8787_vm3 = vcmp.lt.s32.totalorder %v8705_v9, %v8718_v5 }
 0xa5f   :  { %2560 = vadd.xlane.f32.xlu1 %v2559_v49  ;;  %v8778_v1 = vsel %vm7344_vm4, 4294967295, %v8777_v1  ;;  %vm8779_vm15 = vmmov %vm8774_vm0  ;;  %v8784_v49 = vmov 0  ;;  %vm2474_vm0 = vcmp.gt.f32.partialorder %v7206_v32, %v2453_v30  ;;  %v2548_v55 = vsel %vm7344_vm4, 1.0, %v8742_v57  ;;  %v2468_v30 = vpop.permute.xlu0 %2467 }
 0xa60   :  { %vm7353_vm1 = vmand %vm8781_vm13, %vm8779_vm15  ;;  %vm8793_vm13 = vcmask 523264  }
 0xa61   :  { %v8783_v34 = vsel %vm7353_vm1, 4294967295, %v8782_v34  ;;  %vm7357_vm8 = vmor %vm2475_vm12, %vm2491_vm5  ;;  %vm2484_vm5 = vcmp.eq.f32.partialorder %v7206_v32, %v2463_v58  ;;  %v2549_v31 = vsel %vm7353_vm1, 1.0, %v8742_v57  ;;  %vm8789_vm12 = vnez %v8748_v14 }
 0xa62   :  { %v8785_v49 = vsel %vm7357_vm8, 4294967295, %v8784_v49  ;;  %vm2490_vm6 = vmand %vm2482_vm2, %vm8787_vm3  ;;  %vm2485_vm3 = vcmp.eq.f32.partialorder %v7206_v32, %v2468_v30  ;;  %vm8794_vm1 = vcmp.lt.s32.totalorder %v8705_v9, %v8724_v15 }
 0xa63   :  { %vm8788_vm11 = vmmov %vm8786_vm10 }
 0xa64   :  { %v2565_v18 = vsel %vm8788_vm11, %v2547_v47, 0.0  ;;  %vm2502_vm10 = vmand %vm7256_vm7, %vm7244_vm9  ;;  %vm8790_vm11 = vnez %v8739_v37  ;;  %v2568_v47 = vsel %vm8793_vm13, %v2548_v55, 0.0  ;;  %vm2476_vm7 = vcmp.gt.f32.partialorder %v7206_v32, %v2463_v58 }
 0xa65   :  { %2566 = vadd.xlane.f32.xlu1 %v2565_v18  ;;  %vm2503_vm2 = vmand %vm8790_vm11, %vm8789_vm12  ;;  %2569 = vadd.xlane.f32.xlu0 %v2568_v47  ;;  %v2510_v29 = vsel %vm2502_vm10, 1.0, %v8742_v57  ;;  %vm8797_vm12 = vnez %v8768_v40  ;;  %vm8798_vm11 = vnez %v8758_v8 }
 0xa66   :  { %vm7382_vm15 = vmor %vm2474_vm0, %vm2490_vm6  ;;  %v2511_v37 = vsel %vm2503_vm2, 1.0, %v8742_v57  ;;  %vm8796_vm6 = vnez %v8753_v38 }
 0xa67   :  { %vm2492_vm4 = vmand %vm2484_vm5, %vm8794_vm1  ;;  %vm8799_vm5 = vcmp.lt.s32.totalorder %v8705_v9, %v8722_v44 }
 0xa68   :  { %vm8795_vm9 = vmmov %vm8793_vm13 }
 0xa69   :  { %v2571_v17 = vsel %vm8795_vm9, %v2549_v31, 0.0  ;;  %vm2504_vm0 = vmand %vm8796_vm6, %vm7322_vm14  ;;  %vm8804_vm14 = vnez %v8762_v25  ;;  %vm8805_vm6 = vnez %v8785_v49 }
 0xa6a   :  { %2572 = vadd.xlane.f32.xlu1 %v2571_v17  ;;  %vm2505_vm1 = vmand %vm8798_vm11, %vm8797_vm12  ;;  %v2512_v40 = vsel %vm2504_vm0, 1.0, %v8742_v57 }
 0xa6b   :  { %vm2493_vm13 = vmand %vm2485_vm3, %vm8799_vm5  ;;  %v2513_v8 = vsel %vm2505_vm1, 1.0, %v8742_v57  ;;  %vm8810_vm1 = vnez %v8783_v34 }
 0xa6c   :  { %vm8800_vm10 = vmmov %vm8795_vm9  ;;  %vm2477_vm9 = vcmp.gt.f32.partialorder %v7206_v32, %v2468_v30 }
 0xa6d   :  { %v2518_v55 = vsel %vm8800_vm10, %v2510_v29, 0.0  ;;  %vm7408_vm8 = vmor %vm2476_vm7, %vm2492_vm4  ;;  %vm8806_vm4 = vnez %v8766_v53  ;;  %v4709_v29 = vld [vmem:[%s8428_s4 + $0x58] sm:$0xff] }
 0xa6e   :  { %vm8803_vm2 = vmmov %vm8800_vm10  ;;  %2519 = vadd.xlane.f32.xlu0 %v2518_v55 }
 0xa6f   :  { %v2521_v22 = vsel %vm8803_vm2, %v2511_v37, 0.0  ;;  %vm2506_vm3 = vmand %vm8804_vm14, %vm7382_vm15  ;;  %vm8809_vm15 = vnez %v8778_v1  ;;  %v5713_v1 = vpop.eup %5712  ;;  %v5559_v37 = vpack.c.bf16 %v4709_v29, %v4708_v28  ;;  %v8819_v28 = vmov 1.0|1.0  }
 0xa70   :  { %2522 = vadd.xlane.f32.xlu1 %v2521_v22  ;;  %vm2507_vm7 = vmand %vm8806_vm4, %vm8805_vm6  ;;  %v2514_v58 = vsel %vm2506_vm3, 1.0, %v8742_v57  ;;  %v5715_v34 = vpop.eup %5714  ;;  %vm8814_vm3 = vcmp.gt.f32.partialorder %v6611_v2, 0.5 }
 0xa71   :  { %vm2501_vm12 = vmor %vm2477_vm9, %vm2493_vm13  ;;  %v2515_v18 = vsel %vm2507_vm7, 1.0, %v8742_v57  ;;  %v2530_v25 = vsel %vm8803_vm2, %v2514_v58, 0.0  ;;  %v5717_v47 = vpop.eup %5716  ;;  %5560 = vmatprep.subr.bf16.mxu0 %v5559_v37  ;;  %vm8817_vm7 = vcmp.gt.f32.partialorder %v6622_v26, 0.5 }
 0xa72   :  { %vm8807_vm11 = vmmov %vm8803_vm2  ;;  %v5719_v24 = vpop.eup %5718  ;;  %5562 = vmatpush3.bf16.msra.mxu0 %v5559_v37 }
 0xa73   :  { %v2524_v32 = vsel %vm8807_vm11, %v2512_v40, 0.0  ;;  %vm8808_vm5 = vmmov %vm8803_vm2  ;;  %v5721_v52 = vpop.eup %5720 }
 0xa74   :  { %v2527_v38 = vsel %vm8808_vm5, %v2513_v8, 0.0  ;;  %2525 = vadd.xlane.f32.xlu0 %v2524_v32  ;;  %vm2508_vm0 = vmand %vm8809_vm15, %vm7408_vm8  ;;  %v5723_v4 = vpop.eup %5722  ;;  %vm8820_vm15 = vcmp.gt.f32.partialorder %v6637_v36, 0.5 }
 0xa75   :  { %2528 = vadd.xlane.f32.xlu1 %v2527_v38  ;;  %vm2509_vm10 = vmand %vm8810_vm1, %vm2501_vm12  ;;  %v2516_v49 = vsel %vm2508_vm0, 1.0, %v8742_v57  ;;  %v5725_v61 = vpop.eup %5724 }
 0xa76   :  { %vm8811_vm13 = vmmov %vm8803_vm2  ;;  %v2517_v31 = vsel %vm2509_vm10, 1.0, %v8742_v57  ;;  %v5727_v17 = vpop.eup %5726 }
 0xa77   :  { %v2533_v53 = vsel %vm8811_vm13, %v2515_v18, 0.0  ;;  %vm8812_vm9 = vmmov %vm8803_vm2 }
 0xa78   :  { %2531 = vadd.xlane.f32.xlu0 %v2530_v25  ;;  %v2536_v16 = vsel %vm8812_vm9, %v2516_v49, 0.0  ;;  %vm8813_vm14 = vmmov %vm8803_vm2 }
 0xa79   :  { %2534 = vadd.xlane.f32.xlu1 %v2533_v53  ;;  %v2539_v30 = vsel %vm8813_vm14, %v2517_v31, 0.0  ;;  %vm8823_vm10 = vmmov %vm8803_vm2  ;;  %vm8824_vm2 = vcmp.gt.f32.partialorder %v6644_v21, 0.5 }
 0xa7c   :  { %2537 = vadd.xlane.f32.xlu0 %v2536_v16 }
 0xa7d   :  { %2540 = vadd.xlane.f32.xlu1 %v2539_v30 }
 0xa8e   :  { %2629 = vperm.xlu1 %5635, %v5713_v1  }
 0xa92   :  { %2634 = vperm.xlu1 %5635, %v5717_v47   ;;  %2624 = vperm.xlu0 %5634, %v5715_v34  }
 0xa96   :  { %2644 = vperm.xlu1 %5635, %v5721_v52   ;;  %2639 = vperm.xlu0 %5634, %v5719_v24  }
 0xa9a   :  { %2654 = vperm.xlu1 %5635, %v5725_v61   ;;  %2649 = vperm.xlu0 %5634, %v5723_v4  }
 0xa9e   :  { %2659 = vperm.xlu0 %5634, %v5727_v17  }
 0xae1   :  { %v2555_v55 = vpop.xlane.xlu0 %2554 }
 0xae2   :  { %v2575_v58 = vmul.f32 0.5, %v2555_v55 }
 0xae4   :  { %v2583_v31 = vceil.f32 %v2575_v58 }
 0xae5   :  { %v2552_v14 = vpop.xlane.xlu1 %2551  ;;  %v2558_v22 = vpop.xlane.xlu0 %2557 }
 0xae6   :  { %v2574_v38 = vmul.f32 0.5, %v2552_v14  ;;  %v2576_v49 = vmul.f32 0.5, %v2558_v22 }
 0xae8   :  { %v2582_v53 = vceil.f32 %v2574_v38  ;;  %v2584_v47 = vceil.f32 %v2576_v49 }
 0xaea   :  { %v2564_v8 = vpop.xlane.xlu0 %2563 }
 0xaeb   :  { %v2578_v24 = vmul.f32 0.5, %v2564_v8 }
 0xaec   :  { %v2561_v40 = vpop.xlane.xlu1 %2560 }
 0xaed   :  { %v2577_v16 = vmul.f32 0.5, %v2561_v40  ;;  %v2586_v37 = vceil.f32 %v2578_v24 }
 0xaef   :  { %v2585_v4 = vceil.f32 %v2577_v16 }
 0xaf2   :  { %v2567_v32 = vpop.xlane.xlu1 %2566  ;;  %v2570_v18 = vpop.xlane.xlu0 %2569 }
 0xaf3   :  { %v2579_v61 = vmul.f32 0.5, %v2567_v32  ;;  %v2580_v55 = vmul.f32 0.5, %v2570_v18 }
 0xaf5   :  { %v2587_v36 = vceil.f32 %v2579_v61 }
 0xaf7   :  { %v2573_v25 = vpop.xlane.xlu1 %2572 }
 0xaf8   :  { %v2581_v40 = vmul.f32 0.5, %v2573_v25  ;;  %v2588_v25 = vceil.f32 %v2580_v55 }
 0xafa   :  { %v2589_v16 = vceil.f32 %v2581_v40 }
 0xafb   :  { %v2520_v30 = vpop.xlane.xlu0 %2519 }
 0xafc   :  { %vm2590_vm8 = vcmp.lt.f32.partialorder %v2520_v30, %v2582_v53 }
 0xafd   :  { %v2523_v1 = vpop.xlane.xlu1 %2522  ;;  %vm7461_vm6 = vmand %vm2590_vm8, %vm8814_vm3  ;;  %vm8825_vm8 = vcmp.gt.f32.partialorder %v8701_v20, 0.5 }
 0xafe   :  { %vm2591_vm4 = vcmp.lt.f32.partialorder %v2523_v1, %v2583_v31  ;;  %v7468_v52 = vsel %vm7461_vm6, 1.0, %v8742_v57 }
 0xaff   :  { %vm2599_vm12 = vmand %vm2591_vm4, %vm8817_vm7  ;;  %v7479_v7 = vmul.f32 %v7468_v52, %v8818_v27  ;;  %vm8828_vm4 = vcmp.gt.f32.partialorder %v6671_v48, 0.5 }
 0xb00   :  { %v7473_v33 = vsel %vm2599_vm12, 1.0, %v8742_v57  ;;  %vm5539_vm11 = vmpackc.low %vm2599_vm12, %vm7461_vm6 }
 0xb01   :  { %v2526_v2 = vpop.xlane.xlu0 %2525  ;;  %v2686_v17 = vadd.f32 %v7473_v33, %v7468_v52  ;;  %5540 = vmatprep.subr.msk.bf16.mxu1 %vm5539_vm11, %v8819_v28  ;;  %5267 = vmatprep.mubr.msk.f32.mxu1 %vm8823_vm10, %v7479_v7 }
 0xb02   :  { %vm2592_vm5 = vcmp.lt.f32.partialorder %v2526_v2, %v2584_v47  ;;  %v2529_v26 = vpop.xlane.xlu1 %2528  ;;  %5542 = vmatpush3.bf16.msk.msra.mxu1 %vm5539_vm11, %v8819_v28 }
 0xb03   :  { %vm7486_vm0 = vmand %vm2592_vm5, %vm8820_vm15  ;;  %vm2593_vm1 = vcmp.lt.f32.partialorder %v2529_v26, %v2585_v4  ;;  %v2687_v14 = vrot.slane %v2686_v17, 4  ;;  %vm8829_vm5 = vcmp.gt.f32.partialorder %v8703_v42, 0.5 }
 0xb04   :  { %v7496_v22 = vsel %vm7486_vm0, 1.0, %v8742_v57  ;;  %vm2601_vm13 = vmand %vm2593_vm1, %vm8824_vm2  ;;  %vm8832_vm1 = vcmp.gt.f32.partialorder %v8702_v12, 0.5  ;;  %v7557_v12 = vmul.f32 %v7473_v33, %v6696_v41 }
 0xb05   :  { %v7501_v8 = vsel %vm2601_vm13, 1.0, %v8742_v57  ;;  %vm5543_vm9 = vmpackc.low %vm2601_vm13, %vm7486_vm0  ;;  %v2532_v32 = vpop.xlane.xlu0 %2531  ;;  %v2688_v38 = vadd.f32 %v2687_v14, %v2686_v17  ;;  %vm8562_vm13 = vcmp.gt.f32.partialorder %v7468_v52, 0.5  ;;  %v8833_v14 = vmax.f32 %v7026_v46, 0.0 }
 0xb06   :  { %v2732_v58 = vadd.f32 %v7501_v8, %v7496_v22  ;;  %vm2594_vm14 = vcmp.lt.f32.partialorder %v2532_v32, %v2586_v37  ;;  %5544 = vmatprep.subr.msk.bf16.mxu1 %vm5543_vm9, %v8819_v28  ;;  %v2535_v18 = vpop.xlane.xlu1 %2534  ;;  %v7564_v40 = vmul.f32 %v7496_v22, %v6681_v62  ;;  %v7572_v46 = vmul.f32 %v7501_v8, %v6737_v63 }
 0xb07   :  { %vm7510_vm3 = vmand %vm2594_vm14, %vm8825_vm8  ;;  %vm2595_vm6 = vcmp.lt.f32.partialorder %v2535_v18, %v2587_v36  ;;  %5546 = vmatpush3.bf16.msk.msra.mxu1 %vm5543_vm9, %v8819_v28  ;;  %v2689_v53 = vrot.slane %v2688_v38, 2  ;;  %vm8559_vm9 = vcmp.gt.f32.partialorder %v7473_v33, 0.5  ;;  %vm8561_vm14 = vcmp.gt.f32.partialorder %v7496_v22, 0.5 }
 0xb08   :  { %v2733_v49 = vrot.slane %v2732_v58, 4  ;;  %v7518_v31 = vsel %vm7510_vm3, 1.0, %v8742_v57  ;;  %vm2603_vm7 = vmand %vm2595_vm6, %vm8828_vm4  ;;  %vm8834_vm8 = vcmask 523264   ;;  %vm8558_vm6 = vcmp.gt.f32.partialorder %v7501_v8, 0.5 }
 0xb09   :  { %v7523_v20 = vsel %vm2603_vm7, 1.0, %v8742_v57  ;;  %vm5547_vm12 = vmpackc.low %vm2603_vm7, %vm7510_vm3  ;;  %v2538_v30 = vpop.xlane.xlu0 %2537  ;;  %v2690_v1 = vadd.f32 %v2689_v53, %v2688_v38  ;;  %v7576_v62 = vmul.f32 %v7518_v31, %v6706_v10  ;;  %vm8838_vm4 = vcmask 261120  }
 0xb0a   :  { %v2734_v34 = vadd.f32 %v2733_v49, %v2732_v58  ;;  %v2778_v47 = vadd.f32 %v7523_v20, %v7518_v31  ;;  %vm2596_vm11 = vcmp.lt.f32.partialorder %v2538_v30, %v2588_v25  ;;  %5548 = vmatprep.subr.msk.bf16.mxu1 %vm5547_vm12, %v8819_v28  ;;  %v2541_v24 = vpop.xlane.xlu1 %2540  ;;  %v8835_v30 = vmax.f32 %v7029_v56, 0.0  ;;  %vm8837_vm3 = vmmov %vm8834_vm8 }
 0xb0b   :  { %vm7532_vm15 = vmand %vm2596_vm11, %vm8829_vm5  ;;  %vm2597_vm0 = vcmp.lt.f32.partialorder %v2541_v24, %v2589_v16  ;;  %5550 = vmatpush3.bf16.msk.msra.mxu1 %vm5547_vm12, %v8819_v28  ;;  %v2691_v4 = vrot.slane %v2690_v1, 1  ;;  %v7584_v16 = vmul.f32 %v7523_v20, %v6743_v6 }
 0xb0c   :  { %v2735_v61 = vrot.slane %v2734_v34, 2  ;;  %v2779_v2 = vrot.slane %v2778_v47, 4  ;;  %v7540_v27 = vsel %vm7532_vm15, 1.0, %v8742_v57  ;;  %vm2605_vm10 = vmand %vm2597_vm0, %vm8832_vm1  ;;  %vm8557_vm1 = vcmp.gt.f32.partialorder %v7523_v20, 0.5 }
 0xb0d   :  { %v7545_v42 = vsel %vm2605_vm10, 1.0, %v8742_v57  ;;  %vm5551_vm2 = vmpackc.low %vm2605_vm10, %vm7532_vm15  ;;  %v7549_v17 = vadd.f32 %v2691_v4, %v2690_v1  ;;  %v8836_v1 = vmax.f32 %v7039_v11, 0.0  ;;  %v7594_v10 = vmul.f32 %v7540_v27, %v6721_v13 }
 0xb0e   :  { %v2736_v26 = vadd.f32 %v2735_v61, %v2734_v34  ;;  %v2780_v29 = vadd.f32 %v2779_v2, %v2778_v47  ;;  %v2824_v37 = vadd.f32 %v7545_v42, %v7540_v27  ;;  %5552 = vmatprep.subr.msk.bf16.mxu1 %vm5551_vm2, %v8819_v28  ;;  %v2630_v55 = vpop.permute.xlu1 %2629  ;;  %v7602_v11 = vmul.f32 %v7545_v42, %v6774_v50  ;;  %vm8840_vm7 = vmmov %vm8837_vm3 }
 0xb0f   :  { %v2663_v36 = vmul.f32 %v2630_v55, %v8833_v14  ;;  %5554 = vmatpush3.bf16.msk.msra.mxu1 %vm5551_vm2, %v8819_v28  ;;  %v2723_v18 = vmax.f32 %v7549_v17, 1.0  ;;  %vm8841_vm12 = vmmov %vm8838_vm4  ;;  %vm8560_vm10 = vcmp.gt.f32.partialorder %v7518_v31, 0.5 }
 0xb10   :  { %v2737_v32 = vrot.slane %v2736_v26, 1  ;;  %v2781_v38 = vrot.slane %v2780_v29, 2  ;;  %v2825_v58 = vrot.slane %v2824_v37, 4  ;;  %vm8842_vm11 = vmmov %vm8838_vm4 }
 0xb11   :  { %v2671_v41 = vmul.f32 %v2663_v36, %v7473_v33  ;;  %v2625_v21 = vpop.permute.xlu0 %2624  ;;  %5728 = vrcp.f32 %v2723_v18  ;;  %v8843_v36 = vmax.f32 %v7055_v43, 0.0  ;;  %vm8844_vm5 = vmmov %vm8837_vm3 }
 0xb12   :  { %v7578_v28 = vadd.f32 %v2737_v32, %v2736_v26  ;;  %v2782_v25 = vadd.f32 %v2781_v38, %v2780_v29  ;;  %v2826_v53 = vadd.f32 %v2825_v58, %v2824_v37  ;;  %5268 = vmatmul.mubr.msk.f32.vlgmr.msra.gmra.mrb[40].mxu1 %vm8834_vm8, %v7557_v12  ;;  %v2635_v49 = vpop.permute.xlu1 %2634  ;;  %v2662_v63 = vmul.f32 %v2625_v21, %v8835_v30  ;;  %vm8845_vm15 = vmmov %vm8838_vm4 }
 0xb13   :  { %v2664_v34 = vmul.f32 %v2635_v49, %v8836_v1  ;;  %5270 = vmatprep.mubr.msk.f32.mxu1 %vm8837_vm3, %v7564_v40  ;;  %v2700_v47 = vsel %vm8559_vm9, %v2671_v41, -3.4028235e+38  ;;  %v2715_v48 = vsel %vm8838_vm4, %v2671_v41, 0.0  ;;  %v8839_v29 = vmax.f32 %v7035_v19, 0.0  ;;  %vm8846_vm0 = vmmov %vm8838_vm4 }
 0xb14   :  { %v2769_v6 = vmax.f32 %v7578_v28, 1.0  ;;  %v2783_v24 = vrot.slane %v2782_v25, 1  ;;  %v2827_v56 = vrot.slane %v2826_v53, 2  ;;  %v2670_v4 = vmul.f32 %v2662_v63, %v7468_v52  ;;  %vm8847_vm2 = vmmov %vm8846_vm0 }
 0xb15   :  { %v2672_v13 = vmul.f32 %v2664_v34, %v7496_v22  ;;  %v2640_v61 = vpop.permute.xlu0 %2639  ;;  %v2702_v50 = vsel %vm8841_vm12, %v2700_v47, -inf  ;;  %vm8848_vm8 = vmmov %vm8846_vm0 }
 0xb16   :  { %v7607_v2 = vadd.f32 %v2783_v24, %v2782_v25  ;;  %v2828_v26 = vadd.f32 %v2827_v56, %v2826_v53  ;;  %v2665_v37 = vmul.f32 %v2640_v61, %v8839_v29  ;;  %5271 = vmatmul.mubr.msk.f32.gmra.mrb[42].mxu1 %vm8840_vm7, %v7572_v46  ;;  %v2645_v55 = vpop.permute.xlu1 %2644  ;;  %5730 = vrcp.f32 %v2769_v6  ;;  %5287 = vmatprep.mubr.msk.f32.mxu0 %vm8845_vm15, %v2670_v4  ;;  %vm8849_vm3 = vmmov %vm8846_vm0 }
 0xb17   :  { %v2714_v14 = vsel %vm8842_vm11, %v2670_v4, 0.0  ;;  %v2666_v32 = vmul.f32 %v2645_v55, %v8843_v36  ;;  %5273 = vmatprep.mubr.msk.f32.mxu1 %vm8844_vm5, %v7576_v62  ;;  %v2699_v19 = vsel %vm8562_vm13, %v2670_v4, -3.4028235e+38  ;;  %5288 = vmatmul.mubr.msk.f32.vlgmr.msra.gmra.mrb[40].mxu0 %vm8846_vm0, %v2671_v41  ;;  %v2760_v43 = vsel %vm8847_vm2, %v2672_v13, 0.0  ;;  %vm8850_vm4 = vmmov %vm8846_vm0 }
 0xb18   :  { %v2815_v38 = vmax.f32 %v7607_v2, 1.0  ;;  %v2829_v58 = vrot.slane %v2828_v26, 1  ;;  %v2716_v18 = vadd.f32 %v2715_v48, %v2714_v14  ;;  %v2673_v21 = vmul.f32 %v2665_v37, %v7501_v8  ;;  %5290 = vmatprep.mubr.msk.f32.mxu0 %vm8848_vm8, %v2672_v13  ;;  %vm8851_vm7 = vmmov %vm8844_vm5 }
 0xb19   :  { %v2674_v25 = vmul.f32 %v2666_v32, %v7518_v31  ;;  %v2650_v53 = vpop.permute.xlu0 %2649  ;;  %v2701_v49 = vsel %vm8849_vm3, %v2699_v19, -inf  ;;  %v2745_v30 = vsel %vm8561_vm14, %v2672_v13, -3.4028235e+38  ;;  %vm8852_vm12 = vmmov %vm8846_vm0  ;;  %v8853_v24 = vmax.f32 %v7051_v35, 0.0 }
 0xb1a   :  { %5732 = vrcp.f32 %v2815_v38  ;;  %v7633_v63 = vadd.f32 %v2829_v58, %v2828_v26  ;;  %v2717_v41 = vrot.slane %v2716_v18, 4  ;;  %v2761_v1 = vsel %vm8850_vm4, %v2673_v21, 0.0  ;;  %5274 = vmatmul.mubr.msk.f32.gmra.mrb[44].mxu1 %vm8851_vm7, %v7584_v16  ;;  %v2655_v34 = vpop.permute.xlu1 %2654  ;;  %vm8855_vm11 = vmmov %vm8844_vm5 }
 0xb1b   :  { %v2762_v47 = vadd.f32 %v2761_v1, %v2760_v43  ;;  %v2806_v6 = vsel %vm8852_vm12, %v2674_v25, 0.0  ;;  %v2667_v56 = vmul.f32 %v2650_v53, %v8853_v24  ;;  %v8854_v48 = vmax.f32 %v7068_v39, 0.0  ;;  %5276 = vmatprep.mubr.msk.f32.mxu1 %vm8855_vm11, %v7594_v10  ;;  %vm8856_vm5 = vmmov %vm8846_vm0  ;;  %v5729_v38 = vpop.eup %5728 }
 0xb1c   :  { %v2861_v13 = vmax.f32 %v7633_v63, 1.0  ;;  %v2718_v61 = vadd.f32 %v2717_v41, %v2716_v18  ;;  %5291 = vmatmul.mubr.msk.f32.gmra.mrb[42].mxu0 %vm8856_vm5, %v2673_v21  ;;  %v2703_v26 = vmax.f32 %v2701_v49, %v2702_v50  ;;  %v2746_v29 = vsel %vm8558_vm6, %v2673_v21, -3.4028235e+38  ;;  %vm8857_vm15 = vmmov %vm8846_vm0 }
 0xb1d   :  { %v2668_v4 = vmul.f32 %v2655_v34, %v8854_v48  ;;  %v2763_v37 = vrot.slane %v2762_v47, 4  ;;  %v2675_v55 = vmul.f32 %v2667_v56, %v7523_v20  ;;  %5293 = vmatprep.mubr.msk.f32.mxu0 %vm8857_vm15, %v2674_v25  ;;  %v2660_v39 = vpop.permute.xlu0 %2659  ;;  %v2748_v14 = vsel %vm8846_vm0, %v2746_v29, -inf  ;;  %vm8859_vm8 = vmmov %vm8851_vm7 }
 0xb1e   :  { %vm8555_vm2 = vcmp.gt.f32.partialorder %v7545_v42, 0.5  ;;  %5734 = vrcp.f32 %v2861_v13  ;;  %v2719_v36 = vrot.slane %v2718_v61, 2  ;;  %v8858_v50 = vmax.f32 %v7066_v60, 0.0  ;;  %5277 = vmatmul.mubr.msk.f32.gmra.mrb[46].mxu1 %vm8859_vm8, %v7602_v11  ;;  %vm8860_vm3 = vmmov %vm8846_vm0 }
 0xb1f   :  { %v7651_v35 = vmul.f32 %v2668_v4, %v7540_v27  ;;  %v2704_v19 = vrot.slane %v2703_v26, 4  ;;  %v2764_v58 = vadd.f32 %v2763_v37, %v2762_v47  ;;  %v2807_v18 = vsel %vm8860_vm3, %v2675_v55, 0.0  ;;  %vm8861_vm4 = vmmov %vm8846_vm0  ;;  %5315 = vmatprep.mubr.msk.f32.mxu1 %vm8851_vm7, %v7479_v7 }
 0xb20   :  { %v2669_v32 = vmul.f32 %v2660_v39, %v8858_v50  ;;  %vm8862_vm12 = vmmov %vm8846_vm0  ;;  %v2720_v53 = vadd.f32 %v2719_v36, %v2718_v61  ;;  %v2808_v49 = vadd.f32 %v2807_v18, %v2806_v6  ;;  %v5731_v1 = vpop.eup %5730  ;;  %v2792_v24 = vsel %vm8557_vm1, %v2675_v55, -3.4028235e+38 }
 0xb21   :  { %v2852_v21 = vsel %vm8861_vm4, %v7651_v35, 0.0  ;;  %v2747_v43 = vsel %vm8862_vm12, %v2745_v30, -inf  ;;  %vm8863_vm11 = vmmov %vm8846_vm0  ;;  %v2705_v41 = vmax.f32 %v2703_v26, %v2704_v19  ;;  %v2765_v34 = vrot.slane %v2764_v58, 2 }
 0xb22   :  { %v2677_v60 = vmul.f32 %v2669_v32, %v7545_v42  ;;  %5294 = vmatmul.mubr.msk.f32.gmra.mrb[44].mxu0 %vm8863_vm11, %v2675_v55  ;;  %vm8864_vm5 = vmmov %vm8846_vm0  ;;  %v2749_v47 = vmax.f32 %v2747_v43, %v2748_v14  ;;  %v2791_v56 = vsel %vm8560_vm10, %v2674_v25, -3.4028235e+38  ;;  %vm8556_vm15 = vcmp.gt.f32.partialorder %v7540_v27, 0.5 }
 0xb23   :  { %5296 = vmatprep.mubr.msk.f32.mxu0 %vm8864_vm5, %v7651_v35  ;;  %v2721_v30 = vrot.slane %v2720_v53, 1  ;;  %v2809_v6 = vrot.slane %v2808_v49, 4  ;;  %v2706_v4 = vrot.slane %v2705_v41, 2  ;;  %v2766_v13 = vadd.f32 %v2765_v34, %v2764_v58  ;;  %vm8865_vm8 = vmmov %vm8846_vm0 }
 0xb24   :  { %v2853_v48 = vsel %vm8846_vm0, %v2677_v60, 0.0  ;;  %v2750_v26 = vrot.slane %v2749_v47, 4  ;;  %v2794_v29 = vsel %vm8865_vm8, %v2792_v24, -inf  ;;  %v5733_v37 = vpop.eup %5732  ;;  %vm8866_vm3 = vmmov %vm8846_vm0  ;;  %v2838_v58 = vsel %vm8555_vm2, %v2677_v60, -3.4028235e+38 }
 0xb25   :  { %v2854_v61 = vadd.f32 %v2853_v48, %v2852_v21  ;;  %v2722_v39 = vadd.f32 %v2721_v30, %v2720_v53  ;;  %v2810_v14 = vadd.f32 %v2809_v6, %v2808_v49  ;;  %v2707_v55 = vmax.f32 %v2705_v41, %v2706_v4  ;;  %vm8867_vm4 = vmmov %vm8846_vm0  ;;  %v2729_v21 = vld [vmem:[#allocation3] sm:$0x1] }
 0xb26   :  { %5297 = vmatmul.mubr.msk.f32.gmra.mrb[46].mxu0 %vm8866_vm3, %v2677_v60  ;;  %v2793_v25 = vsel %vm8867_vm4, %v2791_v56, -inf  ;;  %v2767_v36 = vrot.slane %v2766_v13, 1  ;;  %v2751_v32 = vmax.f32 %v2749_v47, %v2750_v26  ;;  %vm2710_vm7 = vcmp.gt.f32.partialorder %v7549_v17, 0.5  ;;  %v2775_v56 = vld [vmem:[#allocation3 + $0x1] sm:$0x1]  ;;  %vm8869_vm11 = vmmov %vm8846_vm0 }
 0xb27   :  { %v2855_v50 = vrot.slane %v2854_v61, 4  ;;  %v2795_v19 = vmax.f32 %v2793_v25, %v2794_v29  ;;  %v2725_v18 = vmul.f32 %v5729_v38, %v2722_v39  ;;  %v2811_v43 = vrot.slane %v2810_v14, 2  ;;  %v2726_v38 = vld [vmem:[#allocation2] sm:$0x1]  ;;  %vm8870_vm5 = vmmov %vm8846_vm0 }
 0xb28   :  { %v2708_v57 = vrot.slane %v2707_v55, 1  ;;  %v2768_v34 = vadd.f32 %v2767_v36, %v2766_v13  ;;  %v2752_v53 = vrot.slane %v2751_v32, 2  ;;  %v5735_v30 = vpop.eup %5734  ;;  %vm8868_vm12 = vcmask 253952  }
 0xb29   :  { %v2856_v24 = vadd.f32 %v2855_v50, %v2854_v61  ;;  %v2796_v49 = vrot.slane %v2795_v19, 4  ;;  %v2730_v6 = vadd.f32 %v2729_v21, %v2725_v18  ;;  %v2812_v41 = vadd.f32 %v2811_v43, %v2810_v14  ;;  %vm8871_vm0 = vmmov %vm8868_vm12 }
 0xb2a   :  { %v2709_v48 = vmax.f32 %v2707_v55, %v2708_v57  ;;  %v2771_v47 = vmul.f32 %v5731_v1, %v2768_v34  ;;  %v2753_v26 = vmax.f32 %v2751_v32, %v2752_v53  ;;  %v2840_v13 = vsel %vm8869_vm11, %v2838_v58, -inf  ;;  %vm8872_vm8 = vmmov %vm8871_vm0  ;;  %v2772_v34 = vld [vmem:[#allocation2 + $0x1] sm:$0x1] }
 0xb2b   :  { %v2857_v4 = vrot.slane %v2856_v24, 2  ;;  %v2797_v29 = vmax.f32 %v2795_v19, %v2796_v49  ;;  %2731 = vst.msk [vmem:[#allocation3] sm:$0x1] %vm8868_vm12, %v2730_v6  ;;  %v2813_v60 = vrot.slane %v2812_v41, 1  ;;  %v2837_v61 = vsel %vm8556_vm15, %v7651_v35, -3.4028235e+38  ;;  %vm8873_vm4 = vmmov %vm8871_vm0 }
 0xb2c   :  { %v2713_v39 = vsel %vm2710_vm7, %v2709_v48, 0.0  ;;  %v2776_v14 = vadd.f32 %v2775_v56, %v2771_v47  ;;  %v2754_v17 = vrot.slane %v2753_v26, 1  ;;  %v2839_v36 = vsel %vm8870_vm5, %v2837_v61, -inf  ;;  %v2821_v35 = vld [vmem:[#allocation3 + $0x2] sm:$0x1]  ;;  %vm8874_vm7 = vmmov %vm8871_vm0 }
 0xb2d   :  { %v2858_v57 = vadd.f32 %v2857_v4, %v2856_v24  ;;  %v2727_v55 = vadd.f32 %v2726_v38, %v2713_v39  ;;  %v2814_v25 = vadd.f32 %v2813_v60, %v2812_v41  ;;  %v2798_v1 = vrot.slane %v2797_v29, 2  ;;  %v2867_v56 = vld [vmem:[#allocation3 + $0x3] sm:$0x1]  ;;  %v2818_v38 = vld [vmem:[#allocation2 + $0x2] sm:$0x1]  ;;  %vm8875_vm11 = vmmov %vm8871_vm0 }
 0xb2e   :  { %2777 = vst.msk [vmem:[#allocation3 + $0x1] sm:$0x1] %vm8871_vm0, %v2776_v14  ;;  %v2755_v32 = vmax.f32 %v2753_v26, %v2754_v17  ;;  %v2841_v19 = vmax.f32 %v2839_v36, %v2840_v13  ;;  %vm2756_vm3 = vcmp.gt.f32.partialorder %v7578_v28, 0.5  ;;  %vm2802_vm12 = vcmp.gt.f32.partialorder %v7607_v2, 0.5  ;;  %vm8876_vm5 = vmmov %vm8871_vm0  ;;  %v2864_v13 = vld [vmem:[#allocation2 + $0x3] sm:$0x1] }
 0xb2f   :  { %v2859_v50 = vrot.slane %v2858_v57, 1  ;;  %2728 = vst.msk [vmem:[#allocation2] sm:$0x1] %vm8872_vm8, %v2727_v55  ;;  %v2817_v18 = vmul.f32 %v5733_v37, %v2814_v25  ;;  %v2799_v43 = vmax.f32 %v2797_v29, %v2798_v1  ;;  %vm2848_vm0 = vcmp.gt.f32.partialorder %v7633_v63, 0.5  ;;  %vm8877_vm8 = vmmov %vm8873_vm4 }
 0xb30   :  { %v2759_v21 = vsel %vm2756_vm3, %v2755_v32, 0.0  ;;  %v2842_v24 = vrot.slane %v2841_v19, 4 }
 0xb31   :  { %v2860_v58 = vadd.f32 %v2859_v50, %v2858_v57  ;;  %v2822_v53 = vadd.f32 %v2821_v35, %v2817_v18  ;;  %v2773_v49 = vadd.f32 %v2772_v34, %v2759_v21  ;;  %v2800_v6 = vrot.slane %v2799_v43, 1 }
 0xb32   :  { %v2843_v48 = vmax.f32 %v2841_v19, %v2842_v24 }
 0xb33   :  { %v2863_v41 = vmul.f32 %v5735_v30, %v2860_v58  ;;  %2823 = vst.msk [vmem:[#allocation3 + $0x2] sm:$0x1] %vm8873_vm4, %v2822_v53  ;;  %v2801_v47 = vmax.f32 %v2799_v43, %v2800_v6 }
 0xb34   :  { %2774 = vst.msk [vmem:[#allocation2 + $0x1] sm:$0x1] %vm8874_vm7, %v2773_v49  ;;  %v2844_v28 = vrot.slane %v2843_v48, 2 }
 0xb35   :  { %v2868_v37 = vadd.f32 %v2867_v56, %v2863_v41  ;;  %v2805_v4 = vsel %vm2802_vm12, %v2801_v47, 0.0 }
 0xb36   :  { %v2819_v26 = vadd.f32 %v2818_v38, %v2805_v4  ;;  %v2845_v29 = vmax.f32 %v2843_v48, %v2844_v28 }
 0xb37   :  { %2869 = vst.msk [vmem:[#allocation3 + $0x3] sm:$0x1] %vm8875_vm11, %v2868_v37 }
 0xb38   :  { %2820 = vst.msk [vmem:[#allocation2 + $0x2] sm:$0x1] %vm8876_vm5, %v2819_v26  ;;  %v2846_v30 = vrot.slane %v2845_v29, 1 }
 0xb3a   :  { %v2847_v60 = vmax.f32 %v2845_v29, %v2846_v30 }
 0xb3c   :  { %v2851_v39 = vsel %vm2848_vm0, %v2847_v60, 0.0 }
 0xb3d   :  { %v2865_v61 = vadd.f32 %v2864_v13, %v2851_v39 }
 0xb3f   :  { %2866 = vst.msk [vmem:[#allocation2 + $0x3] sm:$0x1] %vm8877_vm8, %v2865_v61 }
 0xbe5   :  { %v5269_v14 = vpop.f32.mrb[40].mxu1 }
 0xbe6   :  { %v2966_v2 = vadd.f32 %v5269_v14, %v7473_v33  ;;  %v2960_v57 = vpop.f32.mrb[41].mxu1 }
 0xbe7   :  { %v2961_v55 = vadd.f32 %v2960_v57, %v7468_v52 }
 0xbe8   :  { %v3008_v17 = vmax.f32 %v2966_v2, 1e-12  ;;  %vm3000_vm3 = vcmp.gt.f32.partialorder %v2966_v2, 0.0 }
 0xbe9   :  { %v3007_v25 = vmax.f32 %v2961_v55, 1e-12  ;;  %v5272_v1 = vpop.f32.mrb[42].mxu1  ;;  %vm2999_vm4 = vcmp.gt.f32.partialorder %v2961_v55, 0.0 }
 0xbea   :  { %5736 = vrsqrt.f32 %v3008_v17  ;;  %v2976_v36 = vadd.f32 %v5272_v1, %v7501_v8  ;;  %v2970_v50 = vpop.f32.mrb[43].mxu1  ;;  %v7702_v32 = vpop.f32.mrb[40].mxu0 }
 0xbeb   :  { %5738 = vrsqrt.f32 %v3007_v25  ;;  %v2971_v63 = vadd.f32 %v2970_v50, %v7496_v22  ;;  %v7704_v18 = vpop.f32.mrb[41].mxu0 }
 0xbec   :  { %v3010_v19 = vmax.f32 %v2976_v36, 1e-12  ;;  %vm3002_vm7 = vcmp.gt.f32.partialorder %v2976_v36, 0.0 }
 0xbed   :  { %v3009_v43 = vmax.f32 %v2971_v63, 1e-12  ;;  %v5275_v35 = vpop.f32.mrb[44].mxu1  ;;  %vm3001_vm12 = vcmp.gt.f32.partialorder %v2971_v63, 0.0 }
 0xbee   :  { %5740 = vrsqrt.f32 %v3010_v19  ;;  %v2986_v58 = vadd.f32 %v5275_v35, %v7523_v20  ;;  %v2980_v21 = vpop.f32.mrb[45].mxu1 }
 0xbef   :  { %5742 = vrsqrt.f32 %v3009_v43  ;;  %v2981_v34 = vadd.f32 %v2980_v21, %v7518_v31  ;;  %v7708_v24 = vpop.f32.mrb[42].mxu0 }
 0xbf0   :  { %v3012_v53 = vmax.f32 %v2986_v58, 1e-12  ;;  %v7710_v49 = vpop.f32.mrb[43].mxu0  ;;  %vm3004_vm11 = vcmp.gt.f32.partialorder %v2986_v58, 0.0 }
 0xbf1   :  { %v3011_v6 = vmax.f32 %v2981_v34, 1e-12  ;;  %v5278_v41 = vpop.f32.mrb[46].mxu1  ;;  %vm3003_vm5 = vcmp.gt.f32.partialorder %v2981_v34, 0.0 }
 0xbf2   :  { %5744 = vrsqrt.f32 %v3012_v53  ;;  %v2996_v48 = vadd.f32 %v5278_v41, %v7545_v42  ;;  %v2990_v56 = vpop.f32.mrb[47].mxu1 }
 0xbf3   :  { %5746 = vrsqrt.f32 %v3011_v6  ;;  %v2991_v47 = vadd.f32 %v2990_v56, %v7540_v27  ;;  %v3420_v56 = vld [vmem:[%s8430_s5 + $0x8] sm:$0xff] }
 0xbf4   :  { %v5737_v28 = vpop.eup %5736  ;;  %v3014_v4 = vmax.f32 %v2996_v48, 1e-12  ;;  %vm3006_vm0 = vcmp.gt.f32.partialorder %v2996_v48, 0.0  ;;  %v3419_v48 = vld [vmem:[%s8430_s5] sm:$0xff] }
 0xbf5   :  { %v7714_v37 = vpop.f32.mrb[44].mxu0  ;;  %v5739_v26 = vpop.eup %5738  ;;  %v7718_v29 = vsel %vm3000_vm3, %v5737_v28, 0.0  ;;  %v3013_v30 = vmax.f32 %v2991_v47, 1e-12  ;;  %vm3005_vm8 = vcmp.gt.f32.partialorder %v2991_v47, 0.0  ;;  %v5646_v28 = vpack.i.bf16 %v3420_v56, %v3419_v48 }
 0xbf6   :  { %v7716_v38 = vpop.f32.mrb[45].mxu0  ;;  %v7720_v60 = vsel %vm2999_vm4, %v5739_v26, 0.0  ;;  %5748 = vrsqrt.f32 %v3014_v4  ;;  %3188 = vperm.xlu0 %5634, %v7718_v29   ;;  %v3032_v50 = vmul.f32 %v7718_v29, %v7473_v33  ;;  %v3421_v4 = vld [vmem:[%s8430_s5 + $0x10] sm:$0xff]  ;;  %v3422_v26 = vld [vmem:[%s8430_s5 + $0x18] sm:$0xff]  ;;  %vm8878_vm3 = vcmask 523264  }
 0xbf7   :  { %5750 = vrsqrt.f32 %v3013_v30  ;;  %3183 = vperm.xlu1 %5635, %v7720_v60   ;;  %v3031_v43 = vmul.f32 %v7720_v60, %v7468_v52  ;;  %vm8879_vm4 = vmmov %vm8878_vm3 }
 0xbf8   :  { %v5741_v13 = vpop.eup %5740  ;;  %v7751_v58 = vmul.f32 %v3032_v50, %v7718_v29 }
 0xbf9   :  { %v7724_v39 = vpop.f32.mrb[46].mxu0  ;;  %v5743_v14 = vpop.eup %5742  ;;  %v7728_v2 = vsel %vm3002_vm7, %v5741_v13, 0.0  ;;  %v7756_v34 = vmul.f32 %v3031_v43, %v7720_v60  ;;  %vm8880_vm7 = vmmov %vm8878_vm3 }
 0xbfa   :  { %v7726_v61 = vpop.f32.mrb[47].mxu0  ;;  %v7730_v57 = vsel %vm3001_vm12, %v5743_v14, 0.0  ;;  %3198 = vperm.xlu0 %5634, %v7728_v2   ;;  %v3034_v21 = vmul.f32 %v7728_v2, %v7501_v8  ;;  %v5651_v14 = vpack.i.bf16 %v3422_v26, %v3421_v4  ;;  %vm8881_vm12 = vmmov %vm8878_vm3 }
 0xbfb   :  { %3193 = vperm.xlu1 %5635, %v7730_v57   ;;  %v3033_v53 = vmul.f32 %v7730_v57, %v7496_v22 }
 0xbfc   :  { %v5745_v55 = vpop.eup %5744  ;;  %v7763_v6 = vmul.f32 %v3034_v21, %v7728_v2 }
 0xbfd   :  { %v5747_v17 = vpop.eup %5746  ;;  %v7734_v25 = vsel %vm3004_vm11, %v5745_v55, 0.0  ;;  %v7774_v47 = vmul.f32 %v3033_v53, %v7730_v57  ;;  %vm8882_vm11 = vmmov %vm8878_vm3 }
 0xbfe   :  { %v7736_v1 = vsel %vm3003_vm5, %v5747_v17, 0.0  ;;  %3208 = vperm.xlu0 %5634, %v7734_v25   ;;  %v3036_v13 = vmul.f32 %v7734_v25, %v7523_v20  ;;  %vm8883_vm5 = vmmov %vm8878_vm3 }
 0xbff   :  { %3203 = vperm.xlu1 %5635, %v7736_v1   ;;  %v3035_v41 = vmul.f32 %v7736_v1, %v7518_v31 }
 0xc00   :  { %v5749_v36 = vpop.eup %5748  ;;  %v7794_v17 = vmul.f32 %v3036_v13, %v7734_v25 }
 0xc01   :  { %v5751_v63 = vpop.eup %5750  ;;  %v7742_v19 = vsel %vm3006_vm0, %v5749_v36, 0.0  ;;  %v7785_v30 = vmul.f32 %v3035_v41, %v7736_v1  ;;  %vm8884_vm0 = vmmov %vm8878_vm3 }
 0xc02   :  { %v7746_v35 = vsel %vm3005_vm8, %v5751_v63, 0.0  ;;  %3218 = vperm.xlu0 %5634, %v7742_v19   ;;  %v3038_v55 = vmul.f32 %v7742_v19, %v7545_v42  ;;  %vm8885_vm8 = vmmov %vm8884_vm0 }
 0xc03   :  { %3213 = vperm.xlu1 %5635, %v7746_v35   ;;  %v3037_v36 = vmul.f32 %v7746_v35, %v7540_v27 }
 0xc04   :  { %v7801_v50 = vmul.f32 %v3038_v55, %v7742_v19 }
 0xc05   :  { %v7804_v63 = vmul.f32 %v3037_v36, %v7746_v35 }
 0xc06   :  { %3349 = vperm.xlu0 %5634, %v7751_v58  }
 0xc07   :  { %3344 = vperm.xlu1 %5635, %v7756_v34  }
 0xc0a   :  { %3359 = vperm.xlu0 %5634, %v7763_v6  }
 0xc0b   :  { %3354 = vperm.xlu1 %5635, %v7774_v47  }
 0xc0e   :  { %3364 = vperm.xlu0 %5634, %v7785_v30  }
 0xc0f   :  { %5647 = vrot.lane.b32.xlu1 %v5646_v28, %s5792_s21 }
 0xc12   :  { %5652 = vrot.lane.b32.xlu0 %v5651_v14, %s5792_s21 }
 0xc13   :  { %3369 = vperm.xlu1 %5635, %v7794_v17  }
 0xc16   :  { %3379 = vperm.xlu0 %5634, %v7801_v50  }
 0xc17   :  { %3374 = vperm.xlu1 %5635, %v7804_v63  }
 0xc75   :  { %v3189_v43 = vpop.permute.xlu0 %3188 }
 0xc76   :  { %v3222_v21 = vmul.f32 %v7702_v32, %v3189_v43  ;;  %v3184_v53 = vpop.permute.xlu1 %3183 }
 0xc77   :  { %v3221_v41 = vmul.f32 %v3184_v53, %v7704_v18 }
 0xc79   :  { %v5563_v48 = vpack.c.bf16 %v3222_v21, %v3221_v41  ;;  %v7810_v56 = vpop.permute.xlu0 %3198 }
 0xc7a   :  { %v3224_v28 = vmul.f32 %v7708_v24, %v7810_v56  ;;  %v7814_v4 = vpop.permute.xlu1 %3193 }
 0xc7b   :  { %v3223_v26 = vmul.f32 %v7814_v4, %v7710_v49  ;;  %5564 = vmatprep.subr.bf16.mxu1 %v5563_v48 }
 0xc7c   :  { %5566 = vmatpush3.bf16.msra.mxu1 %v5563_v48 }
 0xc7d   :  { %v5567_v13 = vpack.c.bf16 %v3224_v28, %v3223_v26  ;;  %v7818_v14 = vpop.permute.xlu0 %3208 }
 0xc7e   :  { %v3226_v55 = vmul.f32 %v7714_v37, %v7818_v14  ;;  %v7822_v36 = vpop.permute.xlu1 %3203 }
 0xc7f   :  { %v3225_v21 = vmul.f32 %v7822_v36, %v7716_v38  ;;  %5568 = vmatprep.subr.bf16.mxu1 %v5567_v13 }
 0xc80   :  { %5570 = vmatpush3.bf16.msra.mxu1 %v5567_v13 }
 0xc81   :  { %v5571_v41 = vpack.c.bf16 %v3226_v55, %v3225_v21  ;;  %v7826_v59 = vpop.permute.xlu0 %3218 }
 0xc82   :  { %v3228_v0 = vmul.f32 %v7724_v39, %v7826_v59  ;;  %v7830_v48 = vpop.permute.xlu1 %3213 }
 0xc83   :  { %v3227_v28 = vmul.f32 %v7830_v48, %v7726_v61  ;;  %5572 = vmatprep.subr.bf16.mxu1 %v5571_v41 }
 0xc84   :  { %5574 = vmatpush3.bf16.msra.mxu1 %v5571_v41 }
 0xc85   :  { %v5575_v26 = vpack.c.bf16 %v3228_v0, %v3227_v28  ;;  %v3350_v15 = vpop.permute.xlu0 %3349 }
 0xc86   :  { %v3383_v44 = vmul.f32 %v7702_v32, %v3350_v15  ;;  %v3345_v5 = vpop.permute.xlu1 %3344 }
 0xc87   :  { %v3382_v13 = vmul.f32 %v3345_v5, %v7704_v18  ;;  %5576 = vmatprep.subr.bf16.mxu1 %v5575_v26 }
 0xc88   :  { %5578 = vmatpush3.bf16.msra.mxu1 %v5575_v26 }
 0xc89   :  { %v3360_v55 = vpop.permute.xlu0 %3359 }
 0xc8a   :  { %v3385_v21 = vmul.f32 %v7708_v24, %v3360_v55  ;;  %v3355_v51 = vpop.permute.xlu1 %3354 }
 0xc8b   :  { %v3384_v45 = vmul.f32 %v3355_v51, %v7710_v49  ;;  %5316 = vmatmul.mubr.msk.f32.vlgmr.msra.gmra.mrb[48].mxu1 %vm8878_vm3, %v7557_v12  ;;  %vm8886_vm3 = vcmask 261120  }
 0xc8c   :  { %5318 = vmatprep.mubr.msk.f32.mxu1 %vm8879_vm4, %v7564_v40  ;;  %vm8887_vm4 = vmmov %vm8886_vm3 }
 0xc8d   :  { %v3365_v0 = vpop.permute.xlu0 %3364 }
 0xc8e   :  { %v3386_v15 = vmul.f32 %v3365_v0, %v7716_v38  ;;  %v5648_v32 = vpop.permute.xlu1 %5647  ;;  %v4726_v0 = vld [vmem:[%s8431_s6 + $0x2] ss:$0 sm:$0xff] }
 0xc8f   :  { %v5650_v41 = vunpack.i.h.bf16 %v5648_v32  ;;  %v5649_v5 = vunpack.i.l.bf16 %v5648_v32  ;;  %5319 = vmatmul.mubr.msk.f32.gmra.mrb[50].mxu1 %vm8880_vm7, %v7572_v46  ;;  %vm8888_vm7 = vmmov %vm8886_vm3 }
 0xc90   :  { %5321 = vmatprep.mubr.msk.f32.mxu1 %vm8881_vm12, %v7576_v62  ;;  %vm8889_vm12 = vmmov %vm8886_vm3 }
 0xc91   :  { %v5579_v18 = vpack.c.bf16 %v5650_v41, %v5649_v5  ;;  %v5653_v51 = vpop.permute.xlu0 %5652 }
 0xc92   :  { %v5655_v24 = vunpack.i.h.bf16 %v5653_v51  ;;  %v5654_v49 = vunpack.i.l.bf16 %v5653_v51 }
 0xc93   :  { %5322 = vmatmul.mubr.msk.f32.gmra.mrb[52].mxu1 %vm8882_vm11, %v7584_v16  ;;  %5580 = vmatprep.subr.bf16.mxu0 %v5579_v18  ;;  %vm8890_vm11 = vmmov %vm8886_vm3 }
 0xc94   :  { %v5583_v28 = vpack.c.bf16 %v5655_v24, %v5654_v49  ;;  %5324 = vmatprep.mubr.msk.f32.mxu1 %vm8883_vm5, %v7594_v10  ;;  %5582 = vmatpush3.bf16.msra.mxu0 %v5579_v18  ;;  %v3370_v18 = vpop.permute.xlu1 %3369  ;;  %vm8891_vm5 = vmmov %vm8886_vm3 }
 0xc96   :  { %5584 = vmatprep.subr.bf16.mxu0 %v5583_v28 }
 0xc97   :  { %5325 = vmatmul.mubr.msk.f32.gmra.mrb[54].mxu1 %vm8884_vm0, %v7602_v11  ;;  %vm8892_vm0 = vmmov %vm8886_vm3 }
 0xc98   :  { %5363 = vmatprep.mubr.msk.f32.mxu1 %vm8885_vm8, %v7479_v7  ;;  %5586 = vmatpush3.bf16.msra.mxu0 %v5583_v28  ;;  %vm8893_vm8 = vmmov %vm8892_vm0 }
 0xd5e   :  { %v5317_v38 = vpop.f32.mrb[48].mxu1 }
 0xd5f   :  { %v3335_v26 = vmul.f32 %v5317_v38, %v3189_v43  ;;  %v3295_v55 = vpop.f32.mrb[49].mxu1 }
 0xd60   :  { %v3334_v32 = vmul.f32 %v3295_v55, %v3184_v53  ;;  %v3387_v53 = vmul.f32 %v7714_v37, %v3370_v18 }
 0xd61   :  { %v3391_v41 = vadd.f32 %v3383_v44, %v3335_v26 }
 0xd62   :  { %v3390_v5 = vadd.f32 %v3382_v13, %v3334_v32  ;;  %v5320_v51 = vpop.f32.mrb[50].mxu1 }
 0xd63   :  { %v7858_v24 = vadd.f32 %v4726_v0, %v3391_v41  ;;  %v3337_v49 = vmul.f32 %v5320_v51, %v7810_v56  ;;  %v3305_v23 = vpop.f32.mrb[51].mxu1  ;;  %v3380_v56 = vpop.permute.xlu0 %3379 }
 0xd64   :  { %v7861_v3 = vadd.f32 %v4726_v0, %v3390_v5  ;;  %v3336_v7 = vmul.f32 %v3305_v23, %v7814_v4  ;;  %v3375_v23 = vpop.permute.xlu1 %3374 }
 0xd65   :  { %v3393_v43 = vadd.f32 %v3385_v21, %v3337_v49  ;;  %v3412_v44 = vmax.f32 %v7858_v24, 0.0  ;;  %v3388_v18 = vmul.f32 %v3375_v23, %v7726_v61 }
 0xd66   :  { %v3411_v28 = vmax.f32 %v7861_v3, 0.0  ;;  %v3392_v38 = vadd.f32 %v3384_v45, %v3336_v7  ;;  %v5323_v9 = vpop.f32.mrb[52].mxu1 }
 0xd67   :  { %v7867_v13 = vadd.f32 %v4726_v0, %v3393_v43  ;;  %v3339_v26 = vmul.f32 %v5323_v9, %v7818_v14  ;;  %v3315_v55 = vpop.f32.mrb[53].mxu1  ;;  %v3389_v14 = vmul.f32 %v7724_v39, %v3380_v56 }
 0xd68   :  { %v7870_v32 = vadd.f32 %v4726_v0, %v3392_v38  ;;  %v3338_v41 = vmul.f32 %v3315_v55, %v7822_v36  ;;  %5335 = vmatprep.mubr.msk.f32.mxu0 %vm8886_vm3, %v3411_v28  ;;  %vm8894_vm3 = vcmask 523264  }
 0xd69   :  { %v3395_v45 = vadd.f32 %v3387_v53, %v3339_v26  ;;  %5336 = vmatmul.mubr.msk.f32.vlgmr.msra.gmra.mrb[48].mxu0 %vm8887_vm4, %v3412_v44  ;;  %v3414_v21 = vmax.f32 %v7867_v13, 0.0  ;;  %vm8895_vm4 = vmmov %vm8894_vm3 }
 0xd6a   :  { %v3413_v37 = vmax.f32 %v7870_v32, 0.0  ;;  %v3394_v4 = vadd.f32 %v3386_v15, %v3338_v41  ;;  %v5326_v9 = vpop.f32.mrb[54].mxu1 }
 0xd6b   :  { %v7882_v5 = vadd.f32 %v4726_v0, %v3395_v45  ;;  %v3341_v36 = vmul.f32 %v5326_v9, %v7826_v59  ;;  %v3325_v51 = vpop.f32.mrb[55].mxu1 }
 0xd6c   :  { %v7886_v49 = vadd.f32 %v4726_v0, %v3394_v4  ;;  %v3340_v7 = vmul.f32 %v3325_v51, %v7830_v48  ;;  %5338 = vmatprep.mubr.msk.f32.mxu0 %vm8888_vm7, %v3413_v37  ;;  %vm8896_vm7 = vmmov %vm8894_vm3 }
 0xd6d   :  { %v3397_v15 = vadd.f32 %v3389_v14, %v3341_v36  ;;  %5339 = vmatmul.mubr.msk.f32.gmra.mrb[50].mxu0 %vm8889_vm12, %v3414_v21  ;;  %v3416_v59 = vmax.f32 %v7882_v5, 0.0  ;;  %vm8897_vm12 = vmmov %vm8894_vm3 }
 0xd6e   :  { %v3415_v39 = vmax.f32 %v7886_v49, 0.0  ;;  %v3396_v43 = vadd.f32 %v3388_v18, %v3340_v7 }
 0xd6f   :  { %v7897_v38 = vadd.f32 %v4726_v0, %v3397_v15 }
 0xd70   :  { %v7899_v61 = vadd.f32 %v4726_v0, %v3396_v43  ;;  %5341 = vmatprep.mubr.msk.f32.mxu0 %vm8890_vm11, %v3415_v39  ;;  %v4743_v0 = vld [vmem:[%s8431_s6 + $0x3] ss:$0 sm:$0xff]  ;;  %vm8898_vm11 = vmmov %vm8894_vm3 }
 0xd71   :  { %5342 = vmatmul.mubr.msk.f32.gmra.mrb[52].mxu0 %vm8891_vm5, %v3416_v59  ;;  %v8554_v53 = vmax.f32 %v7897_v38, 0.0  ;;  %3711 = vrot.lane.b32.xlu1 %v4743_v0, %s5792_s21  ;;  %vm8899_vm5 = vmmov %vm8894_vm3 }
 0xd72   :  { %v8553_v48 = vmax.f32 %v7899_v61, 0.0 }
 0xd74   :  { %5344 = vmatprep.mubr.msk.f32.mxu0 %vm8892_vm0, %v8553_v48  ;;  %vm8900_vm0 = vmmov %vm8894_vm3 }
 0xd75   :  { %5345 = vmatmul.mubr.msk.f32.gmra.mrb[54].mxu0 %vm8893_vm8, %v8554_v53 }
 0xe3c   :  { %v5337_v26 = vpop.f32.mrb[48].mxu0 }
 0xe3d   :  { %v3569_v55 = vmul.f32 %v5337_v26, %v7718_v29  ;;  %v3529_v56 = vpop.f32.mrb[49].mxu0 }
 0xe3e   :  { %v3568_v41 = vmul.f32 %v3529_v56, %v7720_v60 }
 0xe40   :  { %v5587_v23 = vpack.c.bf16 %v3569_v55, %v3568_v41  ;;  %v5340_v45 = vpop.f32.mrb[50].mxu0 }
 0xe41   :  { %v3571_v4 = vmul.f32 %v5340_v45, %v7728_v2  ;;  %v3539_v9 = vpop.f32.mrb[51].mxu0 }
 0xe42   :  { %v3570_v14 = vmul.f32 %v3539_v9, %v7730_v57  ;;  %5588 = vmatprep.subr.bf16.mxu1 %v5587_v23 }
 0xe43   :  { %5590 = vmatpush3.bf16.msra.mxu1 %v5587_v23 }
 0xe44   :  { %v5591_v36 = vpack.c.bf16 %v3571_v4, %v3570_v14  ;;  %v5343_v51 = vpop.f32.mrb[52].mxu0 }
 0xe45   :  { %v3573_v18 = vmul.f32 %v5343_v51, %v7734_v25  ;;  %v3549_v7 = vpop.f32.mrb[53].mxu0 }
 0xe46   :  { %v3572_v15 = vmul.f32 %v3549_v7, %v7736_v1  ;;  %5592 = vmatprep.subr.bf16.mxu1 %v5591_v36 }
 0xe47   :  { %5594 = vmatpush3.bf16.msra.mxu1 %v5591_v36  ;;  %v3692_v36 = vmul.f32 %v5340_v45, %v7763_v6  ;;  %v3694_v6 = vmul.f32 %v5343_v51, %v7794_v17 }
 0xe48   :  { %v5595_v43 = vpack.c.bf16 %v3573_v18, %v3572_v15  ;;  %v5346_v0 = vpop.f32.mrb[54].mxu0  ;;  %v3691_v15 = vmul.f32 %v3539_v9, %v7774_v47 }
 0xe49   :  { %v3575_v55 = vmul.f32 %v5346_v0, %v7742_v19  ;;  %v3559_v41 = vpop.f32.mrb[55].mxu0  ;;  %v3696_v51 = vmul.f32 %v5346_v0, %v7801_v50 }
 0xe4a   :  { %v3574_v48 = vmul.f32 %v3559_v41, %v7746_v35  ;;  %5596 = vmatprep.subr.bf16.mxu1 %v5595_v43 }
 0xe4b   :  { %5598 = vmatpush3.bf16.msra.mxu1 %v5595_v43 }
 0xe4c   :  { %v5599_v53 = vpack.c.bf16 %v3575_v55, %v3574_v48 }
 0xe4e   :  { %5600 = vmatprep.subr.bf16.mxu1 %v5599_v53 }
 0xe4f   :  { %5602 = vmatpush3.bf16.msra.mxu1 %v5599_v53 }
 0xe52   :  { %5364 = vmatmul.mubr.msk.f32.vlgmr.msra.gmra.mrb[56].mxu1 %vm8894_vm3, %v7557_v12  ;;  %v3690_v12 = vmul.f32 %v5337_v26, %v7751_v58 }
 0xe53   :  { %5366 = vmatprep.mubr.msk.f32.mxu1 %vm8895_vm4, %v7564_v40  ;;  %vm8905_vm4 = vmmov %vm8900_vm0 }
 0xe56   :  { %5367 = vmatmul.mubr.msk.f32.gmra.mrb[58].mxu1 %vm8896_vm7, %v7572_v46  ;;  %v3689_v46 = vmul.f32 %v3529_v56, %v7756_v34  ;;  %vm8906_vm7 = vmmov %vm8900_vm0 }
 0xe57   :  { %5369 = vmatprep.mubr.msk.f32.mxu1 %vm8897_vm12, %v7576_v62  ;;  %v3712_v62 = vpop.permute.xlu1 %3711 }
 0xe5a   :  { %5370 = vmatmul.mubr.msk.f32.gmra.mrb[60].mxu1 %vm8898_vm11, %v7584_v16 }
 0xe5b   :  { %5372 = vmatprep.mubr.msk.f32.mxu1 %vm8899_vm5, %v7594_v10  ;;  %vm8911_vm5 = vmmov %vm8900_vm0 }
 0xe5e   :  { %5373 = vmatmul.mubr.msk.f32.gmra.mrb[62].mxu1 %vm8900_vm0, %v7602_v11 }
 0xf25   :  { %v5365_v48 = vpop.f32.mrb[56].mxu1 }
 0xf26   :  { %v3682_v40 = vmul.f32 %v5365_v48, %v7718_v29  ;;  %v3642_v53 = vpop.f32.mrb[57].mxu1 }
 0xf27   :  { %v3681_v23 = vmul.f32 %v3642_v53, %v7720_v60 }
 0xf28   :  { %v3698_v4 = vadd.f32 %v3690_v12, %v3682_v40 }
 0xf29   :  { %v3697_v14 = vadd.f32 %v3689_v46, %v3681_v23  ;;  %v5368_v16 = vpop.f32.mrb[58].mxu1 }
 0xf2a   :  { %v3684_v10 = vmul.f32 %v5368_v16, %v7728_v2  ;;  %v3652_v18 = vpop.f32.mrb[59].mxu1  ;;  %v3715_v11 = vadd.f32 %v3712_v62, %v3698_v4 }
 0xf2b   :  { %v3683_v58 = vmul.f32 %v3652_v18, %v7730_v57  ;;  %v3714_v29 = vadd.f32 %v3712_v62, %v3697_v14  ;;  %v3693_v57 = vmul.f32 %v3549_v7, %v7785_v30  ;;  %v3695_v7 = vmul.f32 %v3559_v41, %v7804_v63 }
 0xf2c   :  { %v3700_v26 = vadd.f32 %v3692_v36, %v3684_v10  ;;  %v3723_v34 = vsel %vm8559_vm9, %v3715_v11, -1e+30 }
 0xf2d   :  { %v3699_v60 = vadd.f32 %v3691_v15, %v3683_v58  ;;  %3737 = vperm.xlu1 %5635, %v3723_v34   ;;  %v5371_v56 = vpop.f32.mrb[60].mxu1  ;;  %v3722_v43 = vsel %vm8562_vm13, %v3714_v29, -1e+30  ;;  %5752 = vtanh.f32 %v3714_v29  ;;  %v8901_v58 = vld [vmem:[#allocation6_spill] sm:$0xff]  ;;  %v8903_v34 = vld [vmem:[#allocation4_spill] sm:$0xff] }
 0xf2e   :  { %v3717_v2 = vadd.f32 %v3712_v62, %v3700_v26  ;;  %v3686_v45 = vmul.f32 %v5371_v56, %v7734_v25  ;;  %3732 = vperm.xlu0 %5634, %v3722_v43   ;;  %v3662_v47 = vpop.f32.mrb[61].mxu1  ;;  %5754 = vtanh.f32 %v3715_v11  ;;  %vm8902_vm8 = vcmp.eq.s32.totalorder %v8704_v54, %v8901_v58 }
 0xf2f   :  { %v3716_v9 = vadd.f32 %v3712_v62, %v3699_v60  ;;  %v3685_v55 = vmul.f32 %v3662_v47, %v7736_v1  ;;  %vm8904_vm3 = vcmp.eq.s32.totalorder %v8903_v34, %v8901_v58  ;;  %v8907_v47 = vld [vmem:[#allocation7_spill] sm:$0xff] }
 0xf30   :  { %v3702_v48 = vadd.f32 %v3694_v6, %v3686_v45  ;;  %v3725_v12 = vsel %vm8558_vm6, %v3717_v2, -1e+30  ;;  %5756 = vtanh.f32 %v3717_v2  ;;  %vm8908_vm12 = vcmp.eq.s32.totalorder %v8907_v47, %v8901_v58 }
 0xf31   :  { %v3701_v40 = vadd.f32 %v3693_v57, %v3685_v55  ;;  %3747 = vperm.xlu1 %5635, %v3725_v12   ;;  %v5374_v53 = vpop.f32.mrb[62].mxu1  ;;  %v3724_v17 = vsel %vm8561_vm14, %v3716_v9, -1e+30 }
 0xf32   :  { %v3719_v25 = vadd.f32 %v3712_v62, %v3702_v48  ;;  %v3688_v46 = vmul.f32 %v5374_v53, %v7742_v19  ;;  %3742 = vperm.xlu0 %5634, %v3724_v17   ;;  %v3672_v30 = vpop.f32.mrb[63].mxu1 }
 0xf33   :  { %v3718_v1 = vadd.f32 %v3712_v62, %v3701_v40  ;;  %v3687_v23 = vmul.f32 %v3672_v30, %v7746_v35  ;;  %v8914_v30 = vld [vmem:[#allocation10_spill] sm:$0xff] }
 0xf34   :  { %v3704_v4 = vadd.f32 %v3696_v51, %v3688_v46  ;;  %v3727_v14 = vsel %vm8557_vm1, %v3719_v25, -1e+30  ;;  %v8912_v51 = vld [vmem:[#allocation9_spill] sm:$0xff] }
 0xf35   :  { %v3703_v16 = vadd.f32 %v3695_v7, %v3687_v23  ;;  %3757 = vperm.xlu1 %5635, %v3727_v14   ;;  %v3726_v36 = vsel %vm8560_vm10, %v3718_v1, -1e+30  ;;  %5758 = vtanh.f32 %v3718_v1 }
 0xf36   :  { %v7969_v50 = vadd.f32 %v3712_v62, %v3704_v4  ;;  %3752 = vperm.xlu0 %5634, %v3726_v36   ;;  %5760 = vtanh.f32 %v3716_v9  ;;  %v8918_v36 = vld [vmem:[#allocation11_spill] sm:$0xff] }
 0xf37   :  { %v7971_v19 = vadd.f32 %v3712_v62, %v3703_v16  ;;  %v5753_v0 = vpop.eup %5752  ;;  %5762 = vtanh.f32 %v3719_v25 }
 0xf38   :  { %v3729_v63 = vsel %vm8555_vm2, %v7969_v50, -1e+30  ;;  %v5755_v41 = vpop.eup %5754  ;;  %5764 = vtanh.f32 %v7969_v50 }
 0xf39   :  { %3767 = vperm.xlu1 %5635, %v3729_v63   ;;  %v3728_v35 = vsel %vm8556_vm15, %v7971_v19, -1e+30  ;;  %5766 = vtanh.f32 %v7971_v19 }
 0xf3a   :  { %3762 = vperm.xlu0 %5634, %v3728_v35   ;;  %v5757_v62 = vpop.eup %5756 }
 0xf3d   :  { %3817 = vperm.xlu1 %5635, %v3715_v11  }
 0xf3e   :  { %3812 = vperm.xlu0 %5634, %v3714_v29  }
 0xf3f   :  { %v5759_v10 = vpop.eup %5758 }
 0xf40   :  { %v5761_v18 = vpop.eup %5760 }
 0xf41   :  { %3827 = vperm.xlu1 %5635, %v3717_v2   ;;  %v5763_v11 = vpop.eup %5762 }
 0xf42   :  { %3822 = vperm.xlu0 %5634, %v3716_v9   ;;  %v8909_v9 = vld [vmem:[#allocation8_spill] sm:$0xff] }
 0xf43   :  { %vm8910_vm11 = vcmp.eq.s32.totalorder %v8909_v9, %v8901_v58  ;;  %vm8929_vm1 = vcmp.lt.s32.totalorder %v8901_v58, %v8909_v9  ;;  %v8938_v9 = vld [vmem:[#allocation14_spill] sm:$0xff] }
 0xf45   :  { %3837 = vperm.xlu1 %5635, %v3719_v25  }
 0xf46   :  { %3832 = vperm.xlu0 %5634, %v3718_v1  }
 0xf49   :  { %3847 = vperm.xlu1 %5635, %v7969_v50   ;;  %v4750_v50 = vld [vmem:[%s8428_s4 + $0x90] sm:$0xff] }
 0xf4a   :  { %3842 = vperm.xlu0 %5634, %v7971_v19   ;;  %v4751_v19 = vld [vmem:[%s8428_s4 + $0x98] sm:$0xff] }
 0xf4d   :  { %4004 = vperm.xlu1 %5635, %v5753_v0   ;;  %v8920_v0 = vld [vmem:[#allocation12_spill] sm:$0xff] }
 0xf4e   :  { %4009 = vperm.xlu0 %5634, %v5755_v41  }
 0xf51   :  { %4019 = vperm.xlu1 %5635, %v5757_v62  }
 0xf52   :  { %4024 = vperm.xlu0 %5634, %v5759_v10  }
 0xf55   :  { %4014 = vperm.xlu1 %5635, %v5761_v18  }
 0xf59   :  { %4029 = vperm.xlu1 %5635, %v5763_v11  }
 0xfac   :  { %v3738_v15 = vpop.permute.xlu1 %3737 }
 0xfad   :  { %v3771_v29 = vsel %vm8902_vm8, %v3738_v15, 0.0  ;;  %v3733_v26 = vpop.permute.xlu0 %3732  ;;  %vm8913_vm8 = vcmp.eq.s32.totalorder %v8912_v51, %v8901_v58 }
 0xfae   :  { %v3770_v60 = vsel %vm8904_vm3, %v3733_v26, 0.0  ;;  %v3779_v56 = vsel %vm8905_vm4, %v3771_v29, 0.0  ;;  %vm8915_vm3 = vcmp.eq.s32.totalorder %v8914_v30, %v8901_v58  ;;  %vm8916_vm4 = vmmov %vm8900_vm0 }
 0xfaf   :  { %v3778_v43 = vsel %vm8906_vm7, %v3770_v60, 0.0  ;;  %vm8917_vm7 = vmmov %vm8900_vm0 }
 0xfb0   :  { %v3748_v6 = vpop.permute.xlu1 %3747  ;;  %v3780_v45 = vadd.f32 %v3779_v56, %v3778_v43 }
 0xfb1   :  { %v3743_v2 = vpop.permute.xlu0 %3742  ;;  %v3773_v57 = vsel %vm8908_vm12, %v3748_v6, 0.0  ;;  %vm8919_vm12 = vcmp.eq.s32.totalorder %v8918_v36, %v8901_v58 }
 0xfb2   :  { %v3772_v55 = vsel %vm8910_vm11, %v3743_v2, 0.0  ;;  %v3783_v53 = vsel %vm8900_vm0, %v3773_v57, 0.0  ;;  %vm8921_vm11 = vcmp.eq.s32.totalorder %v8920_v0, %v8901_v58 }
 0xfb3   :  { %v3781_v48 = vsel %vm8911_vm5, %v3772_v55, 0.0  ;;  %vm8922_vm5 = vmmov %vm8900_vm0 }
 0xfb4   :  { %v3782_v12 = vadd.f32 %v3781_v48, %v3780_v45  ;;  %v3758_v40 = vpop.permute.xlu1 %3757  ;;  %v8933_v48 = vld [vmem:[#allocation13_spill] sm:$0xff] }
 0xfb5   :  { %v3753_v17 = vpop.permute.xlu0 %3752  ;;  %v3775_v25 = vsel %vm8913_vm8, %v3758_v40, 0.0 }
 0xfb6   :  { %v3784_v46 = vadd.f32 %v3783_v53, %v3782_v12  ;;  %v3774_v7 = vsel %vm8915_vm3, %v3753_v17, 0.0  ;;  %v3787_v14 = vsel %vm8917_vm7, %v3775_v25, 0.0  ;;  %vm8923_vm7 = vcmp.lt.s32.totalorder %v8901_v58, %v8903_v34 }
 0xfb7   :  { %v3785_v1 = vsel %vm8916_vm4, %v3774_v7, 0.0  ;;  %v8935_v12 = vmov 0  ;;  %v8937_v53 = vmov 0.0  }
 0xfb8   :  { %v3786_v23 = vadd.f32 %v3785_v1, %v3784_v46  ;;  %v3768_v4 = vpop.permute.xlu1 %3767  ;;  %v8943_v1 = vld [vmem:[#allocation19_spill] sm:$0xff]  ;;  %4587 = vst [vmem:[%s8434_s7] sm:$0xff] %v8937_v53 }
 0xfb9   :  { %v3763_v16 = vpop.permute.xlu0 %3762  ;;  %v3777_v63 = vsel %vm8919_vm12, %v3768_v4, 0.0 }
 0xfba   :  { %v3788_v35 = vadd.f32 %v3787_v14, %v3786_v23  ;;  %v3776_v41 = vsel %vm8921_vm11, %v3763_v16, 0.0  ;;  %v3791_v18 = vsel %vm8900_vm0, %v3777_v63, 0.0  ;;  %v8945_v23 = vmov 0  ;;  %v8948_v16 = vld [vmem:[#allocation16_spill] sm:$0xff] }
 0xfbb   :  { %v3789_v62 = vsel %vm8922_vm5, %v3776_v41, 0.0  ;;  %vm8924_vm5 = vcmp.lt.s32.totalorder %v8901_v58, %v8704_v54  ;;  %v8932_v54 = vld [vmem:[#allocation17_spill] sm:$0xff] }
 0xfbc   :  { %v3790_v10 = vadd.f32 %v3789_v62, %v3788_v35  ;;  %v3818_v2 = vpop.permute.xlu1 %3817  ;;  %v8952_v41 = vld [vmem:[#allocation21_spill] sm:$0xff]  ;;  %v8954_v62 = vmov 0 }
 0xfbd   :  { %v3813_v6 = vpop.permute.xlu0 %3812 }
 0xfbe   :  { %v3792_v11 = vadd.f32 %v3791_v18, %v3790_v10  ;;  %v8956_v10 = vld [vmem:[#allocation15_spill] sm:$0xff]  ;;  %v8958_v18 = vmov 0 }
 0xfc0   :  { %v3793_v15 = vrot.slane %v3792_v11, 4 }
 0xfc1   :  { %v3823_v45 = vpop.permute.xlu0 %3822 }
 0xfc2   :  { %v3794_v29 = vadd.f32 %v3793_v15, %v3792_v11  ;;  %v5765_v15 = vpop.eup %5764 }
 0xfc4   :  { %v3795_v26 = vrot.slane %v3794_v29, 2 }
 0xfc5   :  { %v3833_v40 = vpop.permute.xlu0 %3832 }
 0xfc6   :  { %v3796_v60 = vadd.f32 %v3795_v26, %v3794_v29  ;;  %v3828_v26 = vpop.permute.xlu1 %3827 }
 0xfc8   :  { %v3797_v56 = vrot.slane %v3796_v60, 1 }
 0xfca   :  { %v8013_v43 = vadd.f32 %v3797_v56, %v3796_v60  ;;  %v3843_v60 = vpop.permute.xlu0 %3842 }
 0xfcc   :  { %vm3858_vm8 = vcmp.eq.f32.partialorder %v8013_v43, %v3813_v6  ;;  %vm3859_vm3 = vcmp.eq.f32.partialorder %v8013_v43, %v3818_v2  ;;  %vm3850_vm4 = vcmp.gt.f32.partialorder %v8013_v43, %v3813_v6  ;;  %vm3860_vm11 = vcmp.eq.f32.partialorder %v8013_v43, %v3823_v45 }
 0xfcd   :  { %vm3866_vm12 = vmand %vm3858_vm8, %vm8923_vm7  ;;  %vm8564_vm2 = vcmp.gt.f32.partialorder %v8013_v43, -5e+29  ;;  %vm3862_vm9 = vcmp.eq.f32.partialorder %v8013_v43, %v3833_v40 }
 0xfce   :  { %vm8025_vm0 = vmand %vm3859_vm3, %vm8924_vm5  ;;  %vm8934_vm3 = vcmp.eq.f32.partialorder %v8932_v54, %v8933_v48 }
 0xfcf   :  { %vm8030_vm15 = vmor %vm3850_vm4, %vm3866_vm12  ;;  %vm8942_vm12 = vcmask 523264  }
 0xfd0   :  { %vm8037_vm8 = vmand %vm3860_vm11, %vm8929_vm1  ;;  %vm8939_vm1 = vcmp.eq.f32.partialorder %v8932_v54, %v8938_v9  ;;  %vm8944_vm11 = vcmp.eq.f32.partialorder %v8932_v54, %v8943_v1  ;;  %v8979_v9 = vmov 0 }
 0xfd1   :  { %vm8046_vm7 = vmand %vm8934_vm3, %vm8564_vm2  ;;  %vm3851_vm3 = vcmp.gt.f32.partialorder %v8013_v43, %v3818_v2 }
 0xfd2   :  { %v8936_v12 = vsel %vm8046_vm7, 4294967295, %v8935_v12  ;;  %v3923_v17 = vsel %vm8046_vm7, 1.0, %v8937_v53  ;;  %vm8058_vm4 = vmand %vm8939_vm1, %vm8564_vm2  ;;  %vm3852_vm1 = vcmp.gt.f32.partialorder %v8013_v43, %v3823_v45  ;;  %vm8964_vm7 = vcmask 523264  }
 0xfd3   :  { %v3933_v46 = vsel %vm8942_vm12, %v3923_v17, 0.0  ;;  %v3922_v7 = vsel %vm8058_vm4, 1.0, %v8937_v53  ;;  %vm8071_vm5 = vmand %vm8944_vm11, %vm8564_vm2  ;;  %v8970_v45 = vmov 0  ;;  %v3838_v17 = vpop.permute.xlu1 %3837 }
 0xfd4   :  { %v8946_v23 = vsel %vm8071_vm5, 4294967295, %v8945_v23  ;;  %3934 = vadd.xlane.f32.xlu1 %v3933_v46  ;;  %vm8947_vm6 = vmmov %vm8942_vm12  ;;  %v3926_v14 = vsel %vm8071_vm5, 1.0, %v8937_v53  ;;  %vm8949_vm12 = vcmp.eq.f32.partialorder %v8932_v54, %v8948_v16 }
 0xfd5   :  { %v3930_v4 = vsel %vm8947_vm6, %v3922_v7, 0.0  ;;  %vm8086_vm11 = vmand %vm8949_vm12, %vm8564_vm2  ;;  %vm8953_vm6 = vcmp.eq.f32.partialorder %v8932_v54, %v8952_v41  ;;  %vm8957_vm12 = vcmp.eq.f32.partialorder %v8932_v54, %v8956_v10  ;;  %v3942_v29 = vsel %vm8964_vm7, %v3926_v14, 0.0 }
 0xfd6   :  { %3931 = vadd.xlane.f32.xlu0 %v3930_v4  ;;  %v3924_v35 = vsel %vm8086_vm11, 1.0, %v8937_v53  ;;  %vm8099_vm10 = vmand %vm8953_vm6, %vm8564_vm2 }
 0xfd7   :  { %v8955_v62 = vsel %vm8099_vm10, 4294967295, %v8954_v62  ;;  %vm8108_vm14 = vmand %vm8957_vm12, %vm8564_vm2  ;;  %vm3854_vm12 = vcmp.gt.f32.partialorder %v8013_v43, %v3833_v40  ;;  %vm8965_vm2 = vcmp.lt.s32.totalorder %v8901_v58, %v8914_v30  ;;  %v3928_v6 = vsel %vm8099_vm10, 1.0, %v8937_v53  ;;  %v8968_v30 = vld [vmem:[#allocation18_spill] sm:$0xff]  ;;  %v3848_v14 = vpop.permute.xlu1 %3847 }
 0xfd8   :  { %v8959_v18 = vsel %vm8108_vm14, 4294967295, %v8958_v18  ;;  %vm8114_vm13 = vmor %vm3851_vm3, %vm8025_vm0  ;;  %3943 = vadd.xlane.f32.xlu1 %v3942_v29  ;;  %v3925_v2 = vsel %vm8108_vm14, 1.0, %v8937_v53  ;;  %vm3861_vm14 = vcmp.eq.f32.partialorder %v8013_v43, %v3828_v26  ;;  %v5767_v29 = vpop.eup %5766 }
 0xfd9   :  { %vm8120_vm6 = vmor %vm3852_vm1, %vm8037_vm8  ;;  %vm3864_vm8 = vcmp.eq.f32.partialorder %v8013_v43, %v3843_v60 }
 0xfda   :  { %vm3870_vm5 = vmand %vm3862_vm9, %vm8965_vm2  ;;  %vm8967_vm2 = vcmp.gt.f32.partialorder %v8013_v43, -5e+29 }
 0xfdb   :  { %vm8966_vm0 = vmmov %vm8964_vm7  ;;  %vm8969_vm7 = vcmp.eq.f32.partialorder %v8932_v54, %v8968_v30  ;;  %v4755_v30 = vld [vmem:[%s8428_s4 + $0xa0] sm:$0xff] }
 0xfdc   :  { %v3936_v56 = vsel %vm8966_vm0, %v3924_v35, 0.0  ;;  %vm3882_vm9 = vmand %vm8058_vm4, %vm8030_vm15  ;;  %v3948_v34 = vsel %vm8966_vm0, %v3928_v6, 0.0  ;;  %vm8974_vm15 = vcmp.lt.s32.totalorder %v8901_v58, %v8920_v0  ;;  %v8977_v0 = vld [vmem:[#allocation20_spill] sm:$0xff]  ;;  %v5793_v6 = vmov 0.0|0.0  }
 0xfdd   :  { %3937 = vadd.xlane.f32.xlu0 %v3936_v56  ;;  %vm8146_vm3 = vmand %vm8969_vm7, %vm8967_vm2  ;;  %3949 = vadd.xlane.f32.xlu1 %v3948_v34  ;;  %v3890_v48 = vsel %vm3882_vm9, 1.0, %v8937_v53  ;;  %vm3856_vm2 = vcmp.gt.f32.partialorder %v8013_v43, %v3843_v60  ;;  %vm8981_vm9 = vcmp.lt.s32.totalorder %v8901_v58, %v8907_v47  ;;  %v4749_v60 = vld [vmem:[%s8428_s4 + $0x88] sm:$0xff]  ;;  %v4005_v34 = vpop.permute.xlu1 %4004 }
 0xfde   :  { %v8971_v45 = vsel %vm8146_vm3, 4294967295, %v8970_v45  ;;  %vm8150_vm1 = vmor %vm3854_vm12, %vm3870_vm5  ;;  %v3927_v40 = vsel %vm8146_vm3, 1.0, %v8937_v53  ;;  %vm8976_vm12 = vcmp.gt.f32.partialorder %v8013_v43, -5e+29  ;;  %v3898_v25 = vsel %vm8966_vm0, %v3890_v48, 0.0  ;;  %5603 = vmatprep.subr.bf16.mxu0 %v5793_v6  ;;  %5615 = vmatprep.subr.bf16.mxu1 %v5793_v6 }
 0xfdf   :  { %vm3872_vm4 = vmand %vm3864_vm8, %vm8974_vm15  ;;  %vm3853_vm15 = vcmp.gt.f32.partialorder %v8013_v43, %v3828_v26  ;;  %v4748_v26 = vld [vmem:[%s8428_s4 + $0x80] sm:$0xff] }
 0xfe0   :  { %vm8975_vm10 = vmmov %vm8966_vm0  ;;  %v5604_v56 = vpack.c.bf16 %v4749_v60, %v4748_v26 }
 0xfe1   :  { %v3939_v55 = vsel %vm8975_vm10, %v3925_v2, 0.0  ;;  %vm3884_vm5 = vmand %vm8086_vm11, %vm8120_vm6  ;;  %vm8978_vm10 = vcmp.eq.f32.partialorder %v8932_v54, %v8977_v0  ;;  %3899 = vadd.xlane.f32.xlu1 %v3898_v25  ;;  %vm3863_vm6 = vcmp.eq.f32.partialorder %v8013_v43, %v3838_v17  ;;  %v5607_v2 = vpack.c.bf16 %v4751_v19, %v4750_v50 }
 0xfe2   :  { %3940 = vadd.xlane.f32.xlu0 %v3939_v55  ;;  %vm8174_vm8 = vmand %vm8978_vm10, %vm8976_vm12  ;;  %v3892_v54 = vsel %vm3884_vm5, 1.0, %v8937_v53  ;;  %5605 = vmatpush3.bf16.msra.mxu0 %v5604_v56  ;;  %v4020_v55 = vpop.permute.xlu1 %4019 }
 0xfe3   :  { %v8980_v9 = vsel %vm8174_vm8, 4294967295, %v8979_v9  ;;  %vm3869_vm7 = vmand %vm3861_vm14, %vm8981_vm9  ;;  %v3929_v47 = vsel %vm8174_vm8, 1.0, %v8937_v53  ;;  %vm8985_vm14 = vnez %v8946_v23  ;;  %vm3855_vm9 = vcmp.gt.f32.partialorder %v8013_v43, %v3838_v17  ;;  %5606 = vmatprep.subr.bf16.mxu0 %v5793_v6 }
 0xfe4   :  { %vm8183_vm3 = vmor %vm3856_vm2, %vm3872_vm4  ;;  %vm8986_vm2 = vnez %v8936_v12  ;;  %v4045_v26 = vmul.f32 %v4020_v55, %v3414_v21 }
 0xfe5   :  { %vm8984_vm11 = vmmov %vm8966_vm0 }
 0xfe6   :  { %v3945_v7 = vsel %vm8984_vm11, %v3927_v40, 0.0  ;;  %vm3886_vm4 = vmand %vm8985_vm14, %vm8150_vm1  ;;  %vm8992_vm1 = vnez %v8955_v62  ;;  %5608 = vmatpush3.bf16.msra.mxu0 %v5607_v2  ;;  %v4015_v48 = vpop.permute.xlu1 %4014  ;;  %v4010_v40 = vpop.permute.xlu0 %4009 }
 0xfe7   :  { %3946 = vadd.xlane.f32.xlu0 %v3945_v7  ;;  %vm3883_vm12 = vmand %vm8986_vm2, %vm8114_vm13  ;;  %v3894_v16 = vsel %vm3886_vm4, 1.0, %v8937_v53  ;;  %vm3865_vm13 = vcmp.eq.f32.partialorder %v8013_v43, %v3848_v14  ;;  %vm3857_vm4 = vcmp.gt.f32.partialorder %v8013_v43, %v3848_v14  ;;  %vm8997_vm2 = vcmp.lt.s32.totalorder %v8901_v58, %v8918_v36  ;;  %5609 = vmatprep.subr.bf16.mxu0 %v5793_v6 }
 0xfe8   :  { %vm8201_vm10 = vmor %vm3853_vm15, %vm3869_vm7  ;;  %v3891_v12 = vsel %vm3883_vm12, 1.0, %v8937_v53  ;;  %vm8993_vm15 = vnez %v8959_v18 }
 0xfe9   :  { %vm8989_vm5 = vmmov %vm8966_vm0  ;;  %vm8990_vm0 = vcmp.lt.s32.totalorder %v8901_v58, %v8912_v51 }
 0xfea   :  { %v3904_v4 = vsel %vm8989_vm5, %v3892_v54, 0.0  ;;  %vm3871_vm11 = vmand %vm3863_vm6, %vm8990_vm0  ;;  %v3901_v35 = vsel %vm8989_vm5, %v3891_v12, 0.0  ;;  %v4030_v17 = vpop.permute.xlu1 %4029  ;;  %v4025_v0 = vpop.permute.xlu0 %4024  ;;  %v4042_v12 = vmul.f32 %v4005_v34, %v3411_v28 }
 0xfeb   :  { %vm8991_vm8 = vmmov %vm8989_vm5  ;;  %3905 = vadd.xlane.f32.xlu1 %v3904_v4  ;;  %v8297_v24 = vmul.f32 %v4030_v17, %v3416_v59 }
 0xfec   :  { %v3951_v23 = vsel %vm8991_vm8, %v3929_v47, 0.0  ;;  %vm3888_vm7 = vmand %vm8992_vm1, %vm8183_vm3  ;;  %vm8998_vm3 = vnez %v8971_v45  ;;  %v4756_v45 = vld [vmem:[%s8428_s4 + $0xa8] sm:$0xff] }
 0xfed   :  { %3952 = vadd.xlane.f32.xlu0 %v3951_v23  ;;  %vm3885_vm6 = vmand %vm8993_vm15, %vm8201_vm10  ;;  %v3896_v41 = vsel %vm3888_vm7, 1.0, %v8937_v53  ;;  %v5616_v57 = vpack.c.bf16 %v4756_v45, %v4755_v30 }
 0xfee   :  { %vm8222_vm14 = vmor %vm3855_vm9, %vm3871_vm11  ;;  %v3893_v62 = vsel %vm3885_vm6, 1.0, %v8937_v53  ;;  %vm5794_vm6 = vmmov 0  }
 0xfef   :  { %vm8996_vm8 = vmmov %vm8989_vm5  ;;  %5383 = vmatprep.mubr.msk.f32.mxu0 %vm5794_vm6, %v8937_v53  ;;  %5405 = vmatprep.mubr.msk.f32.mxu1 %vm5794_vm6, %v8937_v53 }
 0xff0   :  { %v3910_v63 = vsel %vm8996_vm8, %v3894_v16, 0.0  ;;  %vm3873_vm12 = vmand %vm3865_vm13, %vm8997_vm2  ;;  %vm9001_vm13 = vnez %v8980_v9  ;;  %5617 = vmatpush3.bf16.msra.mxu1 %v5616_v57  ;;  %vm9004_vm8 = vcmp.gt.f32.partialorder %v7468_v52, 0.5 }
 0xff1   :  { %3911 = vadd.xlane.f32.xlu1 %v3910_v63  ;;  %3902 = vadd.xlane.f32.xlu0 %v3901_v35  ;;  %vm3887_vm10 = vmand %vm8998_vm3, %vm8222_vm14 }
 0xff2   :  { %vm3881_vm9 = vmor %vm3857_vm4, %vm3873_vm12  ;;  %v3895_v58 = vsel %vm3887_vm10, 1.0, %v8937_v53  ;;  %5618 = vmatprep.subr.bf16.mxu1 %v5793_v6 }
 0xff3   :  { %vm8999_vm0 = vmmov %vm8989_vm5  ;;  %vm9005_vm5 = vcmp.gt.f32.partialorder %v7496_v22, 0.5  ;;  %v4046_v22 = vmul.f32 %v4025_v0, %v3415_v39 }
 0xff4   :  { %v3916_v43 = vsel %vm8999_vm0, %v3896_v41, 0.0  ;;  %vm9000_vm11 = vmmov %vm8999_vm0 }
 0xff5   :  { %v3907_v10 = vsel %vm9000_vm11, %v3893_v62, 0.0  ;;  %3917 = vadd.xlane.f32.xlu1 %v3916_v43  ;;  %vm3889_vm1 = vmand %vm9001_vm13, %vm3881_vm9 }
 0xff6   :  { %3908 = vadd.xlane.f32.xlu0 %v3907_v10  ;;  %vm9002_vm7 = vmmov %vm8999_vm0  ;;  %v3897_v18 = vsel %vm3889_vm1, 1.0, %v8937_v53  ;;  %vm9007_vm1 = vcmp.gt.f32.partialorder %v7473_v33, 0.5 }
 0xff7   :  { %v3913_v36 = vsel %vm9002_vm7, %v3895_v58, 0.0  ;;  %vm9003_vm15 = vmmov %vm8999_vm0  ;;  %v4044_v58 = vmul.f32 %v4015_v48, %v3413_v37  ;;  %vm9006_vm0 = vcmp.gt.f32.partialorder %v7518_v31, 0.5 }
 0xff8   :  { %v3919_v11 = vsel %vm9003_vm15, %v3897_v18, 0.0  ;;  %v4043_v18 = vmul.f32 %v4010_v40, %v3412_v44  ;;  %vm9008_vm15 = vcmask 261120  }
 0xffa   :  { %3914 = vadd.xlane.f32.xlu0 %v3913_v36 }
 0xffe   :  { %3920 = vadd.xlane.f32.xlu0 %v3919_v11 }
0x1006   :  { %4039 = vperm.xlu1 %5635, %v5765_v15  }
0x1014   :  { %4034 = vperm.xlu0 %5634, %v5767_v29  }
0x1061   :  { %v3935_v9 = vpop.xlane.xlu1 %3934 }
0x1062   :  { %v3955_v41 = vmul.f32 0.5, %v3935_v9 }
0x1063   :  { %v3932_v25 = vpop.xlane.xlu0 %3931 }
0x1064   :  { %v3954_v54 = vmul.f32 0.5, %v3932_v25  ;;  %v3963_v11 = vceil.f32 %v3955_v41 }
0x1065   :  { %v3944_v46 = vpop.xlane.xlu1 %3943 }
0x1066   :  { %v3962_v4 = vceil.f32 %v3954_v54  ;;  %v3958_v51 = vmul.f32 0.5, %v3944_v46 }
0x1068   :  { %v3966_v52 = vceil.f32 %v3958_v51 }
0x106a   :  { %v3938_v7 = vpop.xlane.xlu0 %3937  ;;  %v3950_v47 = vpop.xlane.xlu1 %3949 }
0x106b   :  { %v3956_v14 = vmul.f32 0.5, %v3938_v7  ;;  %v3960_v36 = vmul.f32 0.5, %v3950_v47 }
0x106d   :  { %v3964_v63 = vceil.f32 %v3956_v14  ;;  %v3968_v44 = vceil.f32 %v3960_v36 }
0x106e   :  { %v3900_v23 = vpop.xlane.xlu1 %3899 }
0x106f   :  { %v3941_v1 = vpop.xlane.xlu0 %3940  ;;  %vm3970_vm14 = vcmp.lt.f32.partialorder %v3900_v23, %v3962_v4 }
0x1070   :  { %vm3978_vm4 = vmand %vm3970_vm14, %vm9004_vm8  ;;  %v3957_v3 = vmul.f32 0.5, %v3941_v1 }
0x1071   :  { %v3986_v35 = vsel %vm3978_vm4, 1.0, %v8937_v53  ;;  %vm9009_vm14 = vmmov %vm9008_vm15 }
0x1072   :  { %v4050_v43 = vmul.f32 %v4042_v12, %v3986_v35  ;;  %vm4065_vm12 = vcmp.gt.f32.partialorder %v3986_v35, 0.5  ;;  %v3965_v13 = vceil.f32 %v3957_v3  ;;  %vm9010_vm4 = vmmov %vm9009_vm14 }
0x1074   :  { %v3947_v16 = vpop.xlane.xlu0 %3946  ;;  %v4071_v32 = vsel %vm4065_vm12, %v4050_v43, -3.4028235e+38  ;;  %v4086_v39 = vsel %vm9009_vm14, %v4050_v43, 0.0 }
0x1075   :  { %v3959_v15 = vmul.f32 0.5, %v3947_v16  ;;  %v4073_v49 = vsel %vm9008_vm15, %v4071_v32, -inf }
0x1077   :  { %v3967_v50 = vceil.f32 %v3959_v15 }
0x1078   :  { %v3906_v62 = vpop.xlane.xlu1 %3905 }
0x1079   :  { %vm3972_vm2 = vcmp.lt.f32.partialorder %v3906_v62, %v3964_v63 }
0x107a   :  { %v3953_v10 = vpop.xlane.xlu0 %3952  ;;  %vm3980_vm3 = vmand %vm3972_vm2, %vm9005_vm5 }
0x107b   :  { %v3988_v28 = vsel %vm3980_vm3, 1.0, %v8937_v53  ;;  %v8291_v56 = vmul.f32 0.5, %v3953_v10  ;;  %vm9011_vm5 = vmmov %vm9010_vm4  ;;  %vm9012_vm3 = vcmp.gt.f32.partialorder %v7501_v8, 0.5 }
0x107c   :  { %v4052_v37 = vmul.f32 %v4044_v58, %v3988_v28  ;;  %vm4111_vm9 = vcmp.gt.f32.partialorder %v3988_v28, 0.5 }
0x107d   :  { %v3969_v45 = vceil.f32 %v8291_v56 }
0x107e   :  { %v3912_v29 = vpop.xlane.xlu1 %3911  ;;  %v3903_v60 = vpop.xlane.xlu0 %3902  ;;  %v4117_v19 = vsel %vm4111_vm9, %v4052_v37, -3.4028235e+38  ;;  %v4132_v30 = vsel %vm9010_vm4, %v4052_v37, 0.0  ;;  %vm9013_vm9 = vmmov %vm9010_vm4 }
0x107f   :  { %vm3974_vm10 = vcmp.lt.f32.partialorder %v3912_v29, %v3966_v52  ;;  %vm3971_vm13 = vcmp.lt.f32.partialorder %v3903_v60, %v3963_v11  ;;  %v4119_v40 = vsel %vm9013_vm9, %v4117_v19, -inf }
0x1080   :  { %vm3982_vm11 = vmand %vm3974_vm10, %vm9006_vm0 }
0x1081   :  { %v8300_v21 = vsel %vm3982_vm11, 1.0, %v8937_v53  ;;  %vm3979_vm7 = vmand %vm3971_vm13, %vm9007_vm1 }
0x1082   :  { %v3987_v31 = vsel %vm3979_vm7, 1.0, %v8937_v53  ;;  %v4054_v57 = vmul.f32 %v4046_v22, %v8300_v21  ;;  %v3918_v33 = vpop.xlane.xlu1 %3917  ;;  %vm4157_vm12 = vcmp.gt.f32.partialorder %v8300_v21, 0.5  ;;  %vm9014_vm0 = vmmov %vm9010_vm4  ;;  %vm9021_vm4 = vcmp.gt.f32.partialorder %v7523_v20, 0.5 }
0x1083   :  { %v4051_v2 = vmul.f32 %v4043_v18, %v3987_v31  ;;  %v4058_v5 = vadd.f32 %v3987_v31, %v3986_v35  ;;  %vm4066_vm8 = vcmp.gt.f32.partialorder %v3987_v31, 0.5  ;;  %v3909_v59 = vpop.xlane.xlu0 %3908  ;;  %vm8317_vm11 = vcmp.lt.f32.partialorder %v3918_v33, %v3968_v44  ;;  %vm9017_vm1 = vmmov %vm9014_vm0 }
0x1084   :  { %vm3973_vm2 = vcmp.lt.f32.partialorder %v3909_v59, %v3965_v13  ;;  %v4163_v47 = vsel %vm4157_vm12, %v4054_v57, -3.4028235e+38  ;;  %vm9018_vm7 = vmmov %vm9014_vm0  ;;  %vm9022_vm12 = vcmp.gt.f32.partialorder %v7540_v27, 0.5 }
0x1085   :  { %v4059_v34 = vrot.slane %v4058_v5, 4  ;;  %v4072_v55 = vsel %vm4066_vm8, %v4051_v2, -3.4028235e+38  ;;  %v4087_v48 = vsel %vm9011_vm5, %v4051_v2, 0.0  ;;  %vm3981_vm10 = vmand %vm3973_vm2, %vm9012_vm3 }
0x1086   :  { %v4074_v17 = vsel %vm9014_vm0, %v4072_v55, -inf  ;;  %v4088_v0 = vadd.f32 %v4087_v48, %v4086_v39  ;;  %v3989_v9 = vsel %vm3981_vm10, 1.0, %v8937_v53  ;;  %vm9019_vm14 = vmmov %vm9014_vm0  ;;  %v4040_v15 = vpop.permute.xlu1 %4039  ;;  %v9023_v39 = vmax.f32 %v7897_v38, 0.0 }
0x1087   :  { %v4060_v25 = vadd.f32 %v4059_v34, %v4058_v5  ;;  %v4075_v46 = vmax.f32 %v4073_v49, %v4074_v17  ;;  %v4053_v54 = vmul.f32 %v4045_v26, %v3989_v9  ;;  %v4104_v4 = vadd.f32 %v3989_v9, %v3988_v28  ;;  %v3915_v8 = vpop.xlane.xlu0 %3914  ;;  %vm9020_vm8 = vmmov %vm9014_vm0 }
0x1088   :  { %v4089_v1 = vrot.slane %v4088_v0, 4  ;;  %vm4112_vm13 = vcmp.gt.f32.partialorder %v3989_v9, 0.5  ;;  %vm3975_vm15 = vcmp.lt.f32.partialorder %v3915_v8, %v3967_v50  ;;  %v4165_v58 = vsel %vm9019_vm14, %v4163_v47, -inf  ;;  %vm3984_vm5 = vmand %vm8317_vm11, %vm9022_vm12 }
0x1089   :  { %v4061_v14 = vrot.slane %v4060_v25, 2  ;;  %v4076_v23 = vrot.slane %v4075_v46, 4  ;;  %v4118_v16 = vsel %vm4112_vm13, %v4053_v54, -3.4028235e+38  ;;  %v4133_v12 = vsel %vm9017_vm1, %v4053_v54, 0.0  ;;  %vm3983_vm2 = vmand %vm3975_vm15, %vm9021_vm4 }
0x108a   :  { %v4090_v51 = vadd.f32 %v4089_v1, %v4088_v0  ;;  %v4105_v63 = vrot.slane %v4104_v4, 4  ;;  %v4120_v35 = vsel %vm9018_vm7, %v4118_v16, -inf  ;;  %v4134_v41 = vadd.f32 %v4133_v12, %v4132_v30  ;;  %vm9026_vm11 = vmmov %vm9014_vm0  ;;  %v4144_v12 = vld [vmem:[#allocation2 + $0x1] sm:$0x1] }
0x108b   :  { %v4062_v62 = vadd.f32 %v4061_v14, %v4060_v25  ;;  %v4077_v43 = vmax.f32 %v4075_v46, %v4076_v23  ;;  %v4121_v10 = vmax.f32 %v4119_v40, %v4120_v35  ;;  %v4178_v52 = vsel %vm9020_vm8, %v4054_v57, 0.0  ;;  %v3921_v22 = vpop.xlane.xlu0 %3920  ;;  %v4098_v40 = vld [vmem:[#allocation2] sm:$0x1]  ;;  %vm9032_vm12 = vmmov %vm9014_vm0 }
0x108c   :  { %v4106_v36 = vadd.f32 %v4105_v63, %v4104_v4  ;;  %v4135_v3 = vrot.slane %v4134_v41, 4  ;;  %v3991_v29 = vsel %vm3983_vm2, 1.0, %v8937_v53  ;;  %v4091_v26 = vrot.slane %v4090_v51, 2  ;;  %vm9031_vm2 = vmmov %vm9014_vm0 }
0x108d   :  { %v4063_v28 = vrot.slane %v4062_v62, 1  ;;  %v4078_v18 = vrot.slane %v4077_v43, 2  ;;  %v4122_v11 = vrot.slane %v4121_v10, 4  ;;  %v4055_v60 = vmul.f32 %v8297_v24, %v3991_v29 }
0x108e   :  { %v4107_v32 = vrot.slane %v4106_v36, 2  ;;  %v4136_v37 = vadd.f32 %v4135_v3, %v4134_v41  ;;  %v4150_v13 = vadd.f32 %v3991_v29, %v8300_v21  ;;  %v8335_v27 = vsel %vm3984_vm5, 1.0, %v8937_v53  ;;  %vm9033_vm5 = vmmov %vm9014_vm0 }
0x108f   :  { %v4064_v56 = vadd.f32 %v4063_v28, %v4062_v62  ;;  %v4079_v20 = vmax.f32 %v4077_v43, %v4078_v18  ;;  %v4123_v44 = vmax.f32 %v4121_v10, %v4122_v11  ;;  %v4049_v50 = vmul.f32 %v4040_v15, %v9023_v39 }
0x1090   :  { %v4108_v49 = vadd.f32 %v4107_v32, %v4106_v36  ;;  %vm4158_vm3 = vcmp.gt.f32.partialorder %v3991_v29, 0.5  ;;  %vm8339_vm10 = vcmp.lt.f32.partialorder %v3921_v22, %v3969_v45  ;;  %v4092_v24 = vadd.f32 %v4091_v26, %v4090_v51 }
0x1091   :  { %v4080_v31 = vrot.slane %v4079_v20, 1  ;;  %v4095_v19 = vmax.f32 %v4064_v56, 1.0  ;;  %v4124_v2 = vrot.slane %v4123_v44, 2  ;;  %v4137_v30 = vrot.slane %v4136_v37, 2 }
0x1092   :  { %v4109_v59 = vrot.slane %v4108_v49, 1  ;;  %v4151_v57 = vrot.slane %v4150_v13, 4  ;;  %v4164_v34 = vsel %vm4158_vm3, %v4055_v60, -3.4028235e+38  ;;  %vm4082_vm9 = vcmp.gt.f32.partialorder %v4064_v56, 0.5  ;;  %vm9034_vm3 = vmmov %vm9014_vm0 }
0x1093   :  { %v4081_v21 = vmax.f32 %v4079_v20, %v4080_v31  ;;  %5768 = vrcp.f32 %v4095_v19  ;;  %v4125_v33 = vmax.f32 %v4123_v44, %v4124_v2  ;;  %v4166_v48 = vsel %vm9014_vm0, %v4164_v34, -inf  ;;  %v4035_v25 = vpop.permute.xlu0 %4034  ;;  %v4101_v20 = vld [vmem:[#allocation3] sm:$0x1]  ;;  %v4190_v34 = vld [vmem:[#allocation2 + $0x2] sm:$0x1] }
0x1094   :  { %v4110_v55 = vadd.f32 %v4109_v59, %v4108_v49  ;;  %v4152_v38 = vadd.f32 %v4151_v57, %v4150_v13  ;;  %v4167_v45 = vmax.f32 %v4165_v58, %v4166_v48  ;;  %v4179_v9 = vsel %vm9026_vm11, %v4055_v60, 0.0  ;;  %v4147_v48 = vld [vmem:[#allocation3 + $0x1] sm:$0x1] }
0x1095   :  { %v4085_v17 = vsel %vm4082_vm9, %v4081_v21, 0.0  ;;  %v4126_v0 = vrot.slane %v4125_v33, 1  ;;  %vm9027_vm13 = vcmp.gt.f32.partialorder %v7545_v42, 0.5  ;;  %v4093_v46 = vrot.slane %v4092_v24, 1 }
0x1096   :  { %vm3985_vm1 = vmand %vm8339_vm10, %vm9027_vm13  ;;  %v4099_v7 = vadd.f32 %v4098_v40, %v4085_v17  ;;  %v4138_v54 = vadd.f32 %v4137_v30, %v4136_v37  ;;  %v4141_v47 = vmax.f32 %v4110_v55, 1.0  ;;  %v4153_v4 = vrot.slane %v4152_v38, 2 }
0x1097   :  { %v4127_v1 = vmax.f32 %v4125_v33, %v4126_v0  ;;  %v4168_v8 = vrot.slane %v4167_v45, 4  ;;  %v4180_v14 = vadd.f32 %v4179_v9, %v4178_v52  ;;  %vm9028_vm7 = vcmask 253952  }
0x1098   :  { %4100 = vst.msk [vmem:[#allocation2] sm:$0x1] %vm9028_vm7, %v4099_v7  ;;  %vm4128_vm15 = vcmp.gt.f32.partialorder %v4110_v55, 0.5  ;;  %5770 = vrcp.f32 %v4141_v47  ;;  %v3993_v23 = vsel %vm3985_vm1, 1.0, %v8937_v53  ;;  %v9029_v42 = vmax.f32 %v7899_v61, 0.0  ;;  %vm9030_vm4 = vmmov %vm9028_vm7 }
0x1099   :  { %v4131_v51 = vsel %vm4128_vm15, %v4127_v1, 0.0  ;;  %v4154_v63 = vadd.f32 %v4153_v4, %v4152_v38  ;;  %v4169_v35 = vmax.f32 %v4167_v45, %v4168_v8  ;;  %v4181_v41 = vrot.slane %v4180_v14, 4  ;;  %vm9035_vm10 = vmmov %vm9030_vm4 }
0x109a   :  { %v4048_v16 = vmul.f32 %v4035_v25, %v9029_v42  ;;  %v4145_v62 = vadd.f32 %v4144_v12, %v4131_v51  ;;  %v4057_v43 = vmul.f32 %v4049_v50, %v3993_v23  ;;  %v4196_v10 = vadd.f32 %v3993_v23, %v8335_v27  ;;  %vm9036_vm0 = vmmov %vm9030_vm4 }
0x109b   :  { %vm4204_vm14 = vcmp.gt.f32.partialorder %v3993_v23, 0.5  ;;  %v4155_v58 = vrot.slane %v4154_v63, 1  ;;  %v4170_v52 = vrot.slane %v4169_v35, 2  ;;  %v4182_v36 = vadd.f32 %v4181_v41, %v4180_v14  ;;  %vm9037_vm11 = vmmov %vm9036_vm0 }
0x109c   :  { %v4056_v3 = vmul.f32 %v4048_v16, %v8335_v27  ;;  %v4094_v28 = vadd.f32 %v4093_v46, %v4092_v24  ;;  %vm4203_vm8 = vcmp.gt.f32.partialorder %v8335_v27, 0.5  ;;  %4146 = vst.msk [vmem:[#allocation2 + $0x1] sm:$0x1] %vm9030_vm4, %v4145_v62  ;;  %v4197_v61 = vrot.slane %v4196_v10, 4  ;;  %v4193_v16 = vld [vmem:[#allocation3 + $0x2] sm:$0x1]  ;;  %vm9038_vm1 = vmmov %vm9036_vm0 }
0x109d   :  { %v4210_v18 = vsel %vm4204_vm14, %v4057_v43, -3.4028235e+38  ;;  %v5769_v11 = vpop.eup %5768  ;;  %v4139_v15 = vrot.slane %v4138_v54, 1  ;;  %v4156_v29 = vadd.f32 %v4155_v58, %v4154_v63  ;;  %v4171_v26 = vmax.f32 %v4169_v35, %v4170_v52  ;;  %v4236_v63 = vld [vmem:[#allocation2 + $0x3] sm:$0x1]  ;;  %vm9039_vm7 = vmmov %vm9036_vm0 }
0x109e   :  { %v4183_v32 = vrot.slane %v4182_v36, 2  ;;  %v4097_v37 = vmul.f32 %v5769_v11, %v4094_v28  ;;  %v4198_v60 = vadd.f32 %v4197_v61, %v4196_v10  ;;  %v4209_v22 = vsel %vm4203_vm8, %v4056_v3, -3.4028235e+38  ;;  %v4239_v52 = vld [vmem:[#allocation3 + $0x3] sm:$0x1]  ;;  %vm9040_vm15 = vmmov %vm9036_vm0  ;;  %v4745_v28 = vld [vmem:[%s8428_s4 + $0x68] sm:$0xff] }
0x109f   :  { %v4224_v56 = vsel %vm9031_vm2, %v4056_v3, 0.0  ;;  %v4172_v44 = vrot.slane %v4171_v26, 1  ;;  %v4187_v13 = vmax.f32 %v4156_v29, 1.0  ;;  %v4212_v49 = vsel %vm9032_vm12, %v4210_v18, -inf  ;;  %v4744_v3 = vld [vmem:[%s8428_s4 + $0x60] sm:$0xff]  ;;  %v4746_v18 = vld [vmem:[%s8428_s4 + $0x70] sm:$0xff]  ;;  %vm9041_vm14 = vmmov %vm9031_vm2 }
0x10a0   :  { %v4225_v27 = vsel %vm9033_vm5, %v4057_v43, 0.0  ;;  %v4102_v39 = vadd.f32 %v4101_v20, %v4097_v37  ;;  %v4199_v50 = vrot.slane %v4198_v60, 2  ;;  %v4211_v31 = vsel %vm9034_vm3, %v4209_v22, -inf  ;;  %v4747_v11 = vld [vmem:[%s8428_s4 + $0x78] sm:$0xff]  ;;  %vm9042_vm8 = vmmov %vm9031_vm2  ;;  %v4761_v22 = vld [vmem:[%s8428_s4 + $0xc0] sm:$0xff] }
0x10a1   :  { %v4226_v19 = vadd.f32 %v4225_v27, %v4224_v56  ;;  %v4140_v2 = vadd.f32 %v4139_v15, %v4138_v54  ;;  %v4173_v5 = vmax.f32 %v4171_v26, %v4172_v44  ;;  %5772 = vrcp.f32 %v4187_v13  ;;  %v4758_v37 = vld [vmem:[%s8428_s4 + $0xb8] sm:$0xff]  ;;  %v4762_v56 = vld [vmem:[%s8428_s4 + $0xc8] sm:$0xff]  ;;  %v4754_v27 = vld [vmem:[%s8431_s6 + $0x4] ss:$0 sm:$0xff] }
0x10a2   :  { %v4213_v24 = vmax.f32 %v4211_v31, %v4212_v49  ;;  %v5771_v59 = vpop.eup %5770  ;;  %4103 = vst.msk [vmem:[#allocation3] sm:$0x1] %vm9035_vm10, %v4102_v39  ;;  %vm4174_vm9 = vcmp.gt.f32.partialorder %v4156_v29, 0.5  ;;  %v4184_v30 = vadd.f32 %v4183_v32, %v4182_v36  ;;  %v4200_v57 = vadd.f32 %v4199_v50, %v4198_v60  ;;  %v4757_v32 = vld [vmem:[%s8428_s4 + $0xb0] sm:$0xff]  ;;  %vm9044_vm4 = vmmov %vm9031_vm2 }
0x10a3   :  { %v4227_v21 = vrot.slane %v4226_v19, 4  ;;  %v4143_v33 = vmul.f32 %v5771_v59, %v4140_v2  ;;  %v4177_v55 = vsel %vm4174_vm9, %v4173_v5, 0.0  ;;  %v5610_v61 = vpack.c.bf16 %v4745_v28, %v4744_v3  ;;  %v4763_v2 = vld [vmem:[%s8428_s4 + $0xd0] sm:$0xff] }
0x10a4   :  { %v4214_v38 = vrot.slane %v4213_v24, 4  ;;  %v4191_v40 = vadd.f32 %v4190_v34, %v4177_v55  ;;  %v4201_v17 = vrot.slane %v4200_v57, 1  ;;  %v4185_v25 = vrot.slane %v4184_v30, 1 }
0x10a5   :  { %v4228_v0 = vadd.f32 %v4227_v21, %v4226_v19  ;;  %v4148_v45 = vadd.f32 %v4147_v48, %v4143_v33  ;;  %v5613_v29 = vpack.c.bf16 %v4747_v11, %v4746_v18  ;;  %v5619_v60 = vpack.c.bf16 %v4758_v37, %v4757_v32  ;;  %v4765_v33 = vld [vmem:[%s8431_s6 + $0x6] ss:$0 sm:$0xff] }
0x10a6   :  { %v4215_v9 = vmax.f32 %v4213_v24, %v4214_v38  ;;  %4192 = vst.msk [vmem:[#allocation2 + $0x2] sm:$0x1] %vm9036_vm0, %v4191_v40  ;;  %v4202_v46 = vadd.f32 %v4201_v17, %v4200_v57  ;;  %v4186_v4 = vadd.f32 %v4185_v25, %v4184_v30  ;;  %v5622_v20 = vpack.c.bf16 %v4762_v56, %v4761_v22  ;;  %v4759_v24 = vld [vmem:[%s8431_s6 + $0x5] ss:$0 sm:$0xff] }
0x10a7   :  { %4149 = vst.msk [vmem:[#allocation3 + $0x1] sm:$0x1] %vm9037_vm11, %v4148_v45  ;;  %v4229_v54 = vrot.slane %v4228_v0, 2  ;;  %5620 = vmatpush3.bf16.msra.mxu1 %v5619_v60 }
0x10a8   :  { %v4216_v7 = vrot.slane %v4215_v9, 2  ;;  %v4233_v47 = vmax.f32 %v4202_v46, 1.0  ;;  %vm4220_vm13 = vcmp.gt.f32.partialorder %v4202_v46, 0.5 }
0x10a9   :  { %v4230_v23 = vadd.f32 %v4229_v54, %v4228_v0 }
0x10aa   :  { %v4217_v1 = vmax.f32 %v4215_v9, %v4216_v7  ;;  %5774 = vrcp.f32 %v4233_v47 }
0x10ab   :  { %v5773_v8 = vpop.eup %5772  ;;  %v4231_v41 = vrot.slane %v4230_v23, 1 }
0x10ac   :  { %v4218_v14 = vrot.slane %v4217_v1, 1  ;;  %v4189_v42 = vmul.f32 %v5773_v8, %v4186_v4 }
0x10ad   :  { %v4232_v43 = vadd.f32 %v4231_v41, %v4230_v23 }
0x10ae   :  { %v4219_v12 = vmax.f32 %v4217_v1, %v4218_v14  ;;  %v4194_v51 = vadd.f32 %v4193_v16, %v4189_v42 }
0x10b0   :  { %v4223_v35 = vsel %vm4220_vm13, %v4219_v12, 0.0  ;;  %4195 = vst.msk [vmem:[#allocation3 + $0x2] sm:$0x1] %vm9038_vm1, %v4194_v51 }
0x10b1   :  { %v4237_v62 = vadd.f32 %v4236_v63, %v4223_v35 }
0x10b3   :  { %4238 = vst.msk [vmem:[#allocation2 + $0x3] sm:$0x1] %vm9039_vm7, %v4237_v62 }
0x10b4   :  { %v5775_v10 = vpop.eup %5774 }
0x10b5   :  { %v4235_v58 = vmul.f32 %v5775_v10, %v4232_v43 }
0x10b7   :  { %v4240_v36 = vadd.f32 %v4239_v52, %v4235_v58 }
0x10b9   :  { %4241 = vst.msk [vmem:[#allocation3 + $0x3] sm:$0x1] %vm9040_vm15, %v4240_v36 }
0x10ba   :  { %v4242_v26 = vld [vmem:[#allocation2] sm:$0xf] }
0x10c0   :  { %v4248_v15 = vld [vmem:[#allocation3] sm:$0xf] }
0x10c1   :  { %5384 = vmatmul.mubr.msk.f32.vlgmr.msra.gmra.mrb[56].mxu0 %vm9041_vm14, %v4248_v15 }
0x10c2   :  { %5611 = vmatpush3.bf16.msra.mxu0 %v5610_v61  ;;  %5394 = vmatprep.mubr.msk.f32.mxu0 %vm5794_vm6, %v8937_v53 }
0x10c3   :  { %5612 = vmatprep.subr.bf16.mxu0 %v5793_v6 }
0x10c6   :  { %5614 = vmatpush3.bf16.msra.mxu0 %v5613_v29 }
0x10c7   :  { %5621 = vmatprep.subr.bf16.mxu0 %v5793_v6 }
0x10c9   :  { %5395 = vmatmul.mubr.msk.f32.vlgmr.msra.gmra.mrb[58].mxu0 %vm9042_vm8, %v4242_v26 }
0x10ca   :  { %5416 = vmatprep.mubr.msk.f32.mxu0 %vm5794_vm6, %v8937_v53  ;;  %5623 = vmatpush3.bf16.msra.mxu0 %v5622_v20  ;;  %vm9043_vm6 = vmmov %vm9031_vm2  ;;  %vm4574_vm2 = vcmask 27648  }
0x10cb   :  { %5624 = vmatprep.subr.bf16.mxu0 %v5793_v6  ;;  %v4764_v6 = vld [vmem:[%s8428_s4 + $0xd8] sm:$0xff] }
0x10cc   :  { %v5625_v5 = vpack.c.bf16 %v4764_v6, %v4763_v2 }
0x10ce   :  { %5626 = vmatpush3.bf16.msra.mxu0 %v5625_v5 }
0x1194   :  { %v4323_v44 = vpop.f32.mrb[56].mxu0 }
0x1195   :  { %v5385_v13 = vpop.f32.mrb[57].mxu0 }
0x119c   :  { %v4396_v49 = vpop.f32.mrb[58].mxu0 }
0x119d   :  { %v4397_v39 = vadd.f32 %v4396_v49, %v4323_v44  ;;  %v5396_v50 = vpop.f32.mrb[59].mxu0 }
0x119f   :  { %v4405_v31 = vadd.f32 %v4754_v27, %v4397_v39 }
0x11a1   :  { %v4406_v19 = vmax.f32 %v4405_v31, 0.0 }
0x11a3   :  { %5406 = vmatmul.mubr.msk.f32.vlgmr.msra.gmra.mrb[64].mxu1 %vm9043_vm6, %v4406_v19 }
0x1276   :  { %v4486_v59 = vpop.f32.mrb[64].mxu1 }
0x1277   :  { %v4487_v30 = vadd.f32 %v4759_v24, %v4486_v59  ;;  %v5407_v57 = vpop.f32.mrb[65].mxu1 }
0x1279   :  { %v4490_v21 = vmax.f32 %v4487_v30, 0.0 }
0x127b   :  { %5417 = vmatmul.mubr.msk.f32.vlgmr.msra.gmra.mrb[60].mxu0 %vm9044_vm4, %v4490_v21 }
0x134e   :  { %v4570_v34 = vpop.f32.mrb[60].mxu0 }
0x134f   :  { %v4571_v55 = vadd.f32 %v4765_v33, %v4570_v34  ;;  %v5418_v38 = vpop.f32.mrb[61].mxu0 }
0x1351   :  { %v4575_v48 = vsel %vm4574_vm2, %v4571_v55, -inf }
0x1352   :  { %4576 = vmax.xlane.f32.xlu0 %v4575_v48 }
0x13df   :  { %v4577_v40 = vpop.xlane.xlu0 %4576 }
0x13e0   :  { %v4578_v17 = vsub.f32 %v4571_v55, %v4577_v40 }
0x13e2   :  { %v4579_v0 = vmul.f32 1.442695, %v4578_v17 }
0x13e4   :  { %5776 = vpow2.f32 %v4579_v0 }
0x13ee   :  { %v5777_v45 = vpop.eup %5776 }
0x13ef   :  { %v4581_v9 = vsel %vm4574_vm2, %v5777_v45, 0.0 }
0x13f0   :  { %4582 = vadd.xlane.f32.xlu1 %v4581_v9 }
0x147d   :  { %v4583_v25 = vpop.xlane.xlu1 %4582 }
0x147e   :  { %5778 = vlog2.f32 %v4583_v25 }
0x1488   :  { %v5779_v46 = vpop.eup %5778 }
0x1489   :  { %v4585_v7 = vmul.f32 0.6931472, %v5779_v46 }
0x148b   :  { %v4586_v54 = vsub.f32 %v4578_v17, %v4585_v7 }
0x148d   :  { %4588 = vst.msk [vmem:[%s8434_s7] sm:$0xf] %vm4574_vm2, %v4586_v54 }

</bundles_post_ra>
